<compile_context>
chip_gen: v5e
topology: v5e:2x2
jax: 0.10.0
libtpu: 0.0.40
codegen_flags: <defaults>
</compile_context>

<pallas_src>
import functools

import jax
import jax.numpy as jnp
from jax import lax
from jax.experimental import pallas as pl
from jax.experimental.pallas import tpu as pltpu


def _sigmoid(x):
    # Exact sigmoid via tanh identity: numerically stable (no exp(-x) -> inf
    # intermediate) and a single EUP op on TPU.
    return 0.5 * jnp.tanh(0.5 * x) + 0.5


# ---------------------------------------------------------------------------
# Fused encoder kernel (single invocation, everything resident in VMEM).
#
# Inputs:
#   src_ref    (S*B, 1)   int32 token ids, time-major rows (row t*B + b)
#   emb_ref    (Vp, E)    embedding table, vocab zero-padded to Vp (lane mult.)
#   per layer l:
#     w_ih_l   (In_l, 8H) [fwd gates | bwd gates], PyTorch gate order i,f,g,o
#     w_hh_l   (H, 8H)    [fwd | bwd]
#     b_l      (1, 8H)    folded b_ih + b_hh, [fwd | bwd]
#   fc_w       (2H, H)
#   fc_b       (1, H)
# Outputs:
#   out_ref    (S*B, 2H)  last layer sequence output [fwd h | bwd h]
#   hid_ref    (B, H)     tanh(cat(h_fwd, h_bwd) @ W_fc + b_fc)
#   c_out_ref  (2*n_layers, B, H)  final cell states (PyTorch order)
# Scratch:
#   seq_scr    (S*B, 2H)  inter-layer activation slab (VMEM)
#   xg_scr     (S, 2B, 4H) staged per-step gate addends, bwd time pre-reversed
# ---------------------------------------------------------------------------
def _encoder_kernel(*refs, S, B, H, n_layers):
    src_ref = refs[0]
    emb_ref = refs[1]
    lw = refs[2:2 + 3 * n_layers]
    fc_w_ref = refs[2 + 3 * n_layers]
    fc_b_ref = refs[3 + 3 * n_layers]
    out_ref, hid_ref, c_out_ref = refs[4 + 3 * n_layers:7 + 3 * n_layers]
    seq_scr, xg_scr = refs[7 + 3 * n_layers], refs[8 + 3 * n_layers]

    G = 4 * H
    SB = S * B
    TB = 2 * B

    # Row mask selecting fwd rows (0:B) vs bwd rows (B:2B); built ONCE (hoisted
    # out of all loops -- JAX does not CSE broadcasts).
    fwd_rows = lax.broadcasted_iota(jnp.int32, (TB, G), 0) < B

    # ---- Embedding gather in-kernel: one-hot @ table (vocab tiny, MXU idle).
    # Padded vocab rows are zero so out-of-range columns contribute nothing.
    ids = src_ref[...]                                              # (SB, 1) i32
    vp = emb_ref.shape[0]
    onehot = (ids == lax.broadcasted_iota(jnp.int32, (SB, vp), 1)
              ).astype(jnp.float32)                                 # (SB, Vp)
    # TODO(synk): embedding dropout omitted (p=0.0 / eval mode in this config).
    x_in = jnp.dot(onehot, emb_ref[...],
                   preferred_element_type=jnp.float32)              # (SB, E)

    h_last = None
    for l in range(n_layers):
        w_ih_ref, w_hh_ref, b_ref = lw[3 * l], lw[3 * l + 1], lw[3 * l + 2]
        is_last = (l == n_layers - 1)
        out_buf = out_ref if is_last else seq_scr

        # Phase 1 (hoisted): input projection of the whole sequence, both
        # directions, as ONE GEMM; stage per-step (2B,4H) gate addends into
        # VMEM scratch with the backward direction's time already reversed.
        xg = jnp.dot(x_in, w_ih_ref[...],
                     preferred_element_type=jnp.float32) + b_ref[...]   # (SB, 8H)
        for t in range(S):
            xg_scr[t, 0:B, :] = xg[t * B:(t + 1) * B, 0:G]
            xg_scr[t, B:TB, :] = xg[(S - 1 - t) * B:(S - t) * B, G:2 * G]

        # Phase 2: fused fwd+bwd recurrence.  One matmul + one cell per step;
        # per-step hidden states stream straight into the output buffer.
        w_hh = w_hh_ref[...]                                        # (H, 8H)
        h_st = jnp.zeros((TB, H), jnp.float32)                      # [h_f; h_b]
        c_st = jnp.zeros((TB, H), jnp.float32)
        # TODO(synk): for long sequences, switch this Python unroll to a
        # lax.fori_loop over coarser time blocks with pl.ds indexing.
        for t in range(S):
            hh = jnp.dot(h_st, w_hh,
                         preferred_element_type=jnp.float32)        # (2B, 8H)
            # fwd rows use cols 0:4H, bwd rows use cols 4H:8H (cross blocks
            # are discarded -- MXU is >99% idle so they are free).
            gates = xg_scr[t] + jnp.where(fwd_rows, hh[:, 0:G], hh[:, G:2 * G])
            i_g = _sigmoid(gates[:, 0:H])
            f_g = _sigmoid(gates[:, H:2 * H])
            g_g = jnp.tanh(gates[:, 2 * H:3 * H])
            o_g = _sigmoid(gates[:, 3 * H:4 * H])
            c_st = f_g * c_st + i_g * g_g
            h_st = o_g * jnp.tanh(c_st)
            out_buf[t * B:(t + 1) * B, 0:H] = h_st[0:B, :]
            out_buf[(S - 1 - t) * B:(S - t) * B, H:2 * H] = h_st[B:TB, :]

        # Final cell states, written exactly once (PyTorch order: 2l fwd, 2l+1 bwd).
        c_out_ref[2 * l] = c_st[0:B, :]
        c_out_ref[2 * l + 1] = c_st[B:TB, :]

        h_last = h_st
        if not is_last:
            # TODO(synk): inter-layer dropout omitted (p=0.0 / eval mode).
            x_in = seq_scr[...]                                     # (SB, 2H)

    # Fused head: hidden = tanh(cat(h_fwd, h_bwd) @ W_fc + b_fc); the concat is
    # folded into two row-block matmuls (avoids a lane concat).
    fc_w = fc_w_ref[...]                                            # (2H, H)
    hid = (jnp.dot(h_last[0:B, :], fc_w[0:H, :],
                   preferred_element_type=jnp.float32)
           + jnp.dot(h_last[B:TB, :], fc_w[H:2 * H, :],
                     preferred_element_type=jnp.float32)
           + fc_b_ref[...])
    hid_ref[...] = jnp.tanh(hid)


def encoder_forward(params, src):
    """src: (S, B) int32 tokens.  Returns (outputs, hidden, cell)."""
    S, B = src.shape
    emb = params["embedding"]                       # (Vp, E), vocab zero-padded
    n_layers = len(params["lstm"])
    H = params["lstm"][0]["w_hh"].shape[0]
    dt = jnp.float32

    src2 = src.reshape(S * B, 1).astype(jnp.int32)  # time-major rows

    inputs = [src2, emb]
    for lp in params["lstm"]:
        inputs += [lp["w_ih"], lp["w_hh"], lp["b"]]
    inputs += [params["fc_w"], params["fc_b"]]

    vmem = functools.partial(pl.BlockSpec, memory_space=pltpu.MemorySpace.VMEM)
    kernel = functools.partial(_encoder_kernel, S=S, B=B, H=H,
                               n_layers=n_layers)

    out, hidden, cell = pl.pallas_call(
        kernel,
        out_shape=(
            jax.ShapeDtypeStruct((S * B, 2 * H), dt),
            jax.ShapeDtypeStruct((B, H), dt),
            jax.ShapeDtypeStruct((2 * n_layers, B, H), dt),
        ),
        in_specs=[vmem() for _ in inputs],
        out_specs=(vmem(), vmem(), vmem()),
        scratch_shapes=[
            pltpu.VMEM((S * B, 2 * H), jnp.float32),       # inter-layer slab
            pltpu.VMEM((S, 2 * B, 4 * H), jnp.float32),    # staged gate addends
        ],
    )(*inputs)

    return out.reshape(S, B, 2 * H), hidden, cell


# ---------------------------------------------------------------------------
# Parameter init (deterministic; matches nn.Embedding / nn.LSTM / nn.Linear
# shapes).  NOTE for checkpoint loading: weights here are stored TRANSPOSED
# relative to PyTorch ((In, 4H) instead of (4H, In)), the two directions are
# pre-concatenated along the gate axis ([fwd | bwd]), and b = b_ih + b_hh is
# pre-folded.  The embedding table is zero-padded to a lane-aligned vocab.
# ---------------------------------------------------------------------------
def init_encoder_params(key, input_dim, emb_dim, hid_dim, n_layers,
                        bidirectional):
    # TODO(synk): only the bidirectional=True configuration is implemented.
    assert bidirectional, "only bidirectional=True is implemented"
    k = 1.0 / (hid_dim ** 0.5)

    def nxt():
        nonlocal key
        key, sub = jax.random.split(key)
        return sub

    def u(shape):
        return jax.random.uniform(nxt(), shape, jnp.float32, -k, k)

    v_pad = ((input_dim + 127) // 128) * 128
    emb = jax.random.normal(nxt(), (input_dim, emb_dim), jnp.float32) * 0.1
    emb_padded = jnp.zeros((v_pad, emb_dim), jnp.float32).at[:input_dim].set(emb)

    params = {
        "embedding": emb_padded,                       # (Vp, E)
        "lstm": [],
        "fc_w": u((2 * hid_dim, hid_dim)),             # (2H, H)
        "fc_b": u((1, hid_dim)),                       # (1, H)
    }
    for layer in range(n_layers):
        in_sz = emb_dim if layer == 0 else 2 * hid_dim
        w_ih_f = u((in_sz, 4 * hid_dim))
        w_ih_b = u((in_sz, 4 * hid_dim))
        w_hh_f = u((hid_dim, 4 * hid_dim))
        w_hh_b = u((hid_dim, 4 * hid_dim))
        b_f = u((1, 4 * hid_dim)) + u((1, 4 * hid_dim))   # b_ih + b_hh folded
        b_b = u((1, 4 * hid_dim)) + u((1, 4 * hid_dim))
        params["lstm"].append({
            "w_ih": jnp.concatenate([w_ih_f, w_ih_b], axis=1),   # (In, 8H)
            "w_hh": jnp.concatenate([w_hh_f, w_hh_b], axis=1),   # (H, 8H)
            "b": jnp.concatenate([b_f, b_b], axis=1),            # (1, 8H)
        })
    return params


if __name__ == "__main__":
    INPUT_DIM = 50      # vocab size
    EMB_DIM = 16
    HID_DIM = 32
    N_LAYERS = 2
    DROPOUT = 0.0
    BIDIRECTIONAL = True
    SEQ_LEN = 8
    BATCH = 2

    key = jax.random.PRNGKey(0)
    k_param, k_src = jax.random.split(key)

    params = init_encoder_params(k_param, INPUT_DIM, EMB_DIM, HID_DIM,
                                 N_LAYERS, BIDIRECTIONAL)
    src = jax.random.randint(k_src, (SEQ_LEN, BATCH), 0, INPUT_DIM,
                             dtype=jnp.int32)

    fwd = jax.jit(encoder_forward)
    outputs, hidden, cell = fwd(params, src)
    jax.block_until_ready((outputs, hidden, cell))

    assert outputs.shape == (SEQ_LEN, BATCH, HID_DIM * 2)
    assert hidden.shape == (BATCH, HID_DIM)
    assert cell.shape == (N_LAYERS * 2, BATCH, HID_DIM)
    assert bool(jnp.all(jnp.isfinite(outputs)))
    assert bool(jnp.all(jnp.isfinite(hidden)))
    assert bool(jnp.all(jnp.isfinite(cell)))
    print("KERNEL_OK")
</pallas_src>

<mosaic_0001>
module attributes {stable_mosaic.version = 11 : i64} {
  func.func @_encoder_kernel(%arg0: memref<16x1xi32, #tpu.memory_space<vmem>>, %arg1: memref<128x16xf32, #tpu.memory_space<vmem>>, %arg2: memref<16x256xf32, #tpu.memory_space<vmem>>, %arg3: memref<32x256xf32, #tpu.memory_space<vmem>>, %arg4: memref<1x256xf32, #tpu.memory_space<vmem>>, %arg5: memref<64x256xf32, #tpu.memory_space<vmem>>, %arg6: memref<32x256xf32, #tpu.memory_space<vmem>>, %arg7: memref<1x256xf32, #tpu.memory_space<vmem>>, %arg8: memref<64x32xf32, #tpu.memory_space<vmem>>, %arg9: memref<1x32xf32, #tpu.memory_space<vmem>>, %arg10: memref<16x64xf32, #tpu.memory_space<vmem>>, %arg11: memref<2x32xf32, #tpu.memory_space<vmem>>, %arg12: memref<4x2x32xf32, #tpu.memory_space<vmem>>, %arg13: memref<16x64xf32, #tpu.memory_space<vmem>>, %arg14: memref<8x4x128xf32, #tpu.memory_space<vmem>>) attributes {dimension_semantics = [], scalar_prefetch = 0 : i64, scratch_operands = 2 : i64, tpu.core_type = #tpu.core_type<tc>} {
    %0 = tpu.iota {dimensions = array<i32: 0>} : vector<4x128xi32>
    %c2_i32 = arith.constant 2 : i32
    %1 = vector.broadcast %c2_i32 : i32 to vector<4x128xi32>
    %2 = arith.cmpi slt, %0, %1 : vector<4x128xi32>
    %c0 = arith.constant 0 : index
    %c0_0 = arith.constant 0 : index
    %3 = vector.load %arg0[%c0, %c0_0] : memref<16x1xi32, #tpu.memory_space<vmem>>, vector<16x1xi32>
    %4 = tpu.iota {dimensions = array<i32: 1>} : vector<16x128xi32>
    %5 = vector.broadcast %3 : vector<16x1xi32> to vector<16x128xi32>
    %6 = arith.cmpi eq, %5, %4 : vector<16x128xi32>
    %7 = arith.extui %6 : vector<16x128xi1> to vector<16x128xi32>
    %8 = arith.sitofp %7 : vector<16x128xi32> to vector<16x128xf32>
    %c0_1 = arith.constant 0 : index
    %c0_2 = arith.constant 0 : index
    %9 = vector.load %arg1[%c0_1, %c0_2] : memref<128x16xf32, #tpu.memory_space<vmem>>, vector<128x16xf32>
    %cst = arith.constant dense<0.000000e+00> : vector<16x16xf32>
    %10 = tpu.matmul %8, %9, %cst {dimension_numbers = #tpu.dot_dimension_numbers<[1], [0], [0], [1], [0, 0, 1, 1], [], []>} : vector<16x128xf32>, vector<128x16xf32>, vector<16x16xf32> -> vector<16x16xf32>
    %c0_3 = arith.constant 0 : index
    %c0_4 = arith.constant 0 : index
    %11 = vector.load %arg2[%c0_3, %c0_4] : memref<16x256xf32, #tpu.memory_space<vmem>>, vector<16x256xf32>
    %cst_5 = arith.constant dense<0.000000e+00> : vector<16x256xf32>
    %12 = tpu.matmul %10, %11, %cst_5 {dimension_numbers = #tpu.dot_dimension_numbers<[1], [0], [0], [1], [0, 0, 1, 1], [], []>} : vector<16x16xf32>, vector<16x256xf32>, vector<16x256xf32> -> vector<16x256xf32>
    %c0_6 = arith.constant 0 : index
    %c0_7 = arith.constant 0 : index
    %13 = vector.load %arg4[%c0_6, %c0_7] : memref<1x256xf32, #tpu.memory_space<vmem>>, vector<1x256xf32>
    %14 = vector.broadcast %13 : vector<1x256xf32> to vector<16x256xf32>
    %15 = arith.addf %12, %14 : vector<16x256xf32>
    %16 = vector.extract_strided_slice %15 {offsets = [0, 0], sizes = [2, 128], strides = [1, 1]} : vector<16x256xf32> to vector<2x128xf32>
    %c0_8 = arith.constant 0 : index
    %c0_9 = arith.constant 0 : index
    %c0_10 = arith.constant 0 : index
    %17 = vector.load %arg14[%c0_8, %c0_9, %c0_10] : memref<8x4x128xf32, #tpu.memory_space<vmem>>, vector<1x2x128xf32>
    %18 = vector.shape_cast %17 : vector<1x2x128xf32> to vector<2x128xf32>
    %19 = vector.shape_cast %16 : vector<2x128xf32> to vector<1x2x128xf32>
    tpu.vector_store %arg14[%c0_8, %c0_9, %c0_10], %19 {strides = array<i32>} : memref<8x4x128xf32, #tpu.memory_space<vmem>>, vector<1x2x128xf32>,
    %20 = vector.extract_strided_slice %15 {offsets = [14, 128], sizes = [2, 128], strides = [1, 1]} : vector<16x256xf32> to vector<2x128xf32>
    %c0_11 = arith.constant 0 : index
    %c2 = arith.constant 2 : index
    %c0_12 = arith.constant 0 : index
    %21 = vector.load %arg14[%c0_11, %c2, %c0_12] : memref<8x4x128xf32, #tpu.memory_space<vmem>>, vector<1x2x128xf32>
    %22 = vector.shape_cast %21 : vector<1x2x128xf32> to vector<2x128xf32>
    %23 = vector.shape_cast %20 : vector<2x128xf32> to vector<1x2x128xf32>
    tpu.vector_store %arg14[%c0_11, %c2, %c0_12], %23 {strides = array<i32>} : memref<8x4x128xf32, #tpu.memory_space<vmem>>, vector<1x2x128xf32>,
    %24 = vector.extract_strided_slice %15 {offsets = [2, 0], sizes = [2, 128], strides = [1, 1]} : vector<16x256xf32> to vector<2x128xf32>
    %c1 = arith.constant 1 : index
    %c0_13 = arith.constant 0 : index
    %c0_14 = arith.constant 0 : index
    %25 = vector.load %arg14[%c1, %c0_13, %c0_14] : memref<8x4x128xf32, #tpu.memory_space<vmem>>, vector<1x2x128xf32>
    %26 = vector.shape_cast %25 : vector<1x2x128xf32> to vector<2x128xf32>
    %27 = vector.shape_cast %24 : vector<2x128xf32> to vector<1x2x128xf32>
    tpu.vector_store %arg14[%c1, %c0_13, %c0_14], %27 {strides = array<i32>} : memref<8x4x128xf32, #tpu.memory_space<vmem>>, vector<1x2x128xf32>,
    %28 = vector.extract_strided_slice %15 {offsets = [12, 128], sizes = [2, 128], strides = [1, 1]} : vector<16x256xf32> to vector<2x128xf32>
    %c1_15 = arith.constant 1 : index
    %c2_16 = arith.constant 2 : index
    %c0_17 = arith.constant 0 : index
    %29 = vector.load %arg14[%c1_15, %c2_16, %c0_17] : memref<8x4x128xf32, #tpu.memory_space<vmem>>, vector<1x2x128xf32>
    %30 = vector.shape_cast %29 : vector<1x2x128xf32> to vector<2x128xf32>
    %31 = vector.shape_cast %28 : vector<2x128xf32> to vector<1x2x128xf32>
    tpu.vector_store %arg14[%c1_15, %c2_16, %c0_17], %31 {strides = array<i32>} : memref<8x4x128xf32, #tpu.memory_space<vmem>>, vector<1x2x128xf32>,
    %32 = vector.extract_strided_slice %15 {offsets = [4, 0], sizes = [2, 128], strides = [1, 1]} : vector<16x256xf32> to vector<2x128xf32>
    %c2_18 = arith.constant 2 : index
    %c0_19 = arith.constant 0 : index
    %c0_20 = arith.constant 0 : index
    %33 = vector.load %arg14[%c2_18, %c0_19, %c0_20] : memref<8x4x128xf32, #tpu.memory_space<vmem>>, vector<1x2x128xf32>
    %34 = vector.shape_cast %33 : vector<1x2x128xf32> to vector<2x128xf32>
    %35 = vector.shape_cast %32 : vector<2x128xf32> to vector<1x2x128xf32>
    tpu.vector_store %arg14[%c2_18, %c0_19, %c0_20], %35 {strides = array<i32>} : memref<8x4x128xf32, #tpu.memory_space<vmem>>, vector<1x2x128xf32>,
    %36 = vector.extract_strided_slice %15 {offsets = [10, 128], sizes = [2, 128], strides = [1, 1]} : vector<16x256xf32> to vector<2x128xf32>
    %c2_21 = arith.constant 2 : index
    %c2_22 = arith.constant 2 : index
    %c0_23 = arith.constant 0 : index
    %37 = vector.load %arg14[%c2_21, %c2_22, %c0_23] : memref<8x4x128xf32, #tpu.memory_space<vmem>>, vector<1x2x128xf32>
    %38 = vector.shape_cast %37 : vector<1x2x128xf32> to vector<2x128xf32>
    %39 = vector.shape_cast %36 : vector<2x128xf32> to vector<1x2x128xf32>
    tpu.vector_store %arg14[%c2_21, %c2_22, %c0_23], %39 {strides = array<i32>} : memref<8x4x128xf32, #tpu.memory_space<vmem>>, vector<1x2x128xf32>,
    %40 = vector.extract_strided_slice %15 {offsets = [6, 0], sizes = [2, 128], strides = [1, 1]} : vector<16x256xf32> to vector<2x128xf32>
    %c3 = arith.constant 3 : index
    %c0_24 = arith.constant 0 : index
    %c0_25 = arith.constant 0 : index
    %41 = vector.load %arg14[%c3, %c0_24, %c0_25] : memref<8x4x128xf32, #tpu.memory_space<vmem>>, vector<1x2x128xf32>
    %42 = vector.shape_cast %41 : vector<1x2x128xf32> to vector<2x128xf32>
    %43 = vector.shape_cast %40 : vector<2x128xf32> to vector<1x2x128xf32>
    tpu.vector_store %arg14[%c3, %c0_24, %c0_25], %43 {strides = array<i32>} : memref<8x4x128xf32, #tpu.memory_space<vmem>>, vector<1x2x128xf32>,
    %44 = vector.extract_strided_slice %15 {offsets = [8, 128], sizes = [2, 128], strides = [1, 1]} : vector<16x256xf32> to vector<2x128xf32>
    %c3_26 = arith.constant 3 : index
    %c2_27 = arith.constant 2 : index
    %c0_28 = arith.constant 0 : index
    %45 = vector.load %arg14[%c3_26, %c2_27, %c0_28] : memref<8x4x128xf32, #tpu.memory_space<vmem>>, vector<1x2x128xf32>
    %46 = vector.shape_cast %45 : vector<1x2x128xf32> to vector<2x128xf32>
    %47 = vector.shape_cast %44 : vector<2x128xf32> to vector<1x2x128xf32>
    tpu.vector_store %arg14[%c3_26, %c2_27, %c0_28], %47 {strides = array<i32>} : memref<8x4x128xf32, #tpu.memory_space<vmem>>, vector<1x2x128xf32>,
    %48 = vector.extract_strided_slice %15 {offsets = [8, 0], sizes = [2, 128], strides = [1, 1]} : vector<16x256xf32> to vector<2x128xf32>
    %c4 = arith.constant 4 : index
    %c0_29 = arith.constant 0 : index
    %c0_30 = arith.constant 0 : index
    %49 = vector.load %arg14[%c4, %c0_29, %c0_30] : memref<8x4x128xf32, #tpu.memory_space<vmem>>, vector<1x2x128xf32>
    %50 = vector.shape_cast %49 : vector<1x2x128xf32> to vector<2x128xf32>
    %51 = vector.shape_cast %48 : vector<2x128xf32> to vector<1x2x128xf32>
    tpu.vector_store %arg14[%c4, %c0_29, %c0_30], %51 {strides = array<i32>} : memref<8x4x128xf32, #tpu.memory_space<vmem>>, vector<1x2x128xf32>,
    %52 = vector.extract_strided_slice %15 {offsets = [6, 128], sizes = [2, 128], strides = [1, 1]} : vector<16x256xf32> to vector<2x128xf32>
    %c4_31 = arith.constant 4 : index
    %c2_32 = arith.constant 2 : index
    %c0_33 = arith.constant 0 : index
    %53 = vector.load %arg14[%c4_31, %c2_32, %c0_33] : memref<8x4x128xf32, #tpu.memory_space<vmem>>, vector<1x2x128xf32>
    %54 = vector.shape_cast %53 : vector<1x2x128xf32> to vector<2x128xf32>
    %55 = vector.shape_cast %52 : vector<2x128xf32> to vector<1x2x128xf32>
    tpu.vector_store %arg14[%c4_31, %c2_32, %c0_33], %55 {strides = array<i32>} : memref<8x4x128xf32, #tpu.memory_space<vmem>>, vector<1x2x128xf32>,
    %56 = vector.extract_strided_slice %15 {offsets = [10, 0], sizes = [2, 128], strides = [1, 1]} : vector<16x256xf32> to vector<2x128xf32>
    %c5 = arith.constant 5 : index
    %c0_34 = arith.constant 0 : index
    %c0_35 = arith.constant 0 : index
    %57 = vector.load %arg14[%c5, %c0_34, %c0_35] : memref<8x4x128xf32, #tpu.memory_space<vmem>>, vector<1x2x128xf32>
    %58 = vector.shape_cast %57 : vector<1x2x128xf32> to vector<2x128xf32>
    %59 = vector.shape_cast %56 : vector<2x128xf32> to vector<1x2x128xf32>
    tpu.vector_store %arg14[%c5, %c0_34, %c0_35], %59 {strides = array<i32>} : memref<8x4x128xf32, #tpu.memory_space<vmem>>, vector<1x2x128xf32>,
    %60 = vector.extract_strided_slice %15 {offsets = [4, 128], sizes = [2, 128], strides = [1, 1]} : vector<16x256xf32> to vector<2x128xf32>
    %c5_36 = arith.constant 5 : index
    %c2_37 = arith.constant 2 : index
    %c0_38 = arith.constant 0 : index
    %61 = vector.load %arg14[%c5_36, %c2_37, %c0_38] : memref<8x4x128xf32, #tpu.memory_space<vmem>>, vector<1x2x128xf32>
    %62 = vector.shape_cast %61 : vector<1x2x128xf32> to vector<2x128xf32>
    %63 = vector.shape_cast %60 : vector<2x128xf32> to vector<1x2x128xf32>
    tpu.vector_store %arg14[%c5_36, %c2_37, %c0_38], %63 {strides = array<i32>} : memref<8x4x128xf32, #tpu.memory_space<vmem>>, vector<1x2x128xf32>,
    %64 = vector.extract_strided_slice %15 {offsets = [12, 0], sizes = [2, 128], strides = [1, 1]} : vector<16x256xf32> to vector<2x128xf32>
    %c6 = arith.constant 6 : index
    %c0_39 = arith.constant 0 : index
    %c0_40 = arith.constant 0 : index
    %65 = vector.load %arg14[%c6, %c0_39, %c0_40] : memref<8x4x128xf32, #tpu.memory_space<vmem>>, vector<1x2x128xf32>
    %66 = vector.shape_cast %65 : vector<1x2x128xf32> to vector<2x128xf32>
    %67 = vector.shape_cast %64 : vector<2x128xf32> to vector<1x2x128xf32>
    tpu.vector_store %arg14[%c6, %c0_39, %c0_40], %67 {strides = array<i32>} : memref<8x4x128xf32, #tpu.memory_space<vmem>>, vector<1x2x128xf32>,
    %68 = vector.extract_strided_slice %15 {offsets = [2, 128], sizes = [2, 128], strides = [1, 1]} : vector<16x256xf32> to vector<2x128xf32>
    %c6_41 = arith.constant 6 : index
    %c2_42 = arith.constant 2 : index
    %c0_43 = arith.constant 0 : index
    %69 = vector.load %arg14[%c6_41, %c2_42, %c0_43] : memref<8x4x128xf32, #tpu.memory_space<vmem>>, vector<1x2x128xf32>
    %70 = vector.shape_cast %69 : vector<1x2x128xf32> to vector<2x128xf32>
    %71 = vector.shape_cast %68 : vector<2x128xf32> to vector<1x2x128xf32>
    tpu.vector_store %arg14[%c6_41, %c2_42, %c0_43], %71 {strides = array<i32>} : memref<8x4x128xf32, #tpu.memory_space<vmem>>, vector<1x2x128xf32>,
    %72 = vector.extract_strided_slice %15 {offsets = [14, 0], sizes = [2, 128], strides = [1, 1]} : vector<16x256xf32> to vector<2x128xf32>
    %c7 = arith.constant 7 : index
    %c0_44 = arith.constant 0 : index
    %c0_45 = arith.constant 0 : index
    %73 = vector.load %arg14[%c7, %c0_44, %c0_45] : memref<8x4x128xf32, #tpu.memory_space<vmem>>, vector<1x2x128xf32>
    %74 = vector.shape_cast %73 : vector<1x2x128xf32> to vector<2x128xf32>
    %75 = vector.shape_cast %72 : vector<2x128xf32> to vector<1x2x128xf32>
    tpu.vector_store %arg14[%c7, %c0_44, %c0_45], %75 {strides = array<i32>} : memref<8x4x128xf32, #tpu.memory_space<vmem>>, vector<1x2x128xf32>,
    %76 = vector.extract_strided_slice %15 {offsets = [0, 128], sizes = [2, 128], strides = [1, 1]} : vector<16x256xf32> to vector<2x128xf32>
    %c7_46 = arith.constant 7 : index
    %c2_47 = arith.constant 2 : index
    %c0_48 = arith.constant 0 : index
    %77 = vector.load %arg14[%c7_46, %c2_47, %c0_48] : memref<8x4x128xf32, #tpu.memory_space<vmem>>, vector<1x2x128xf32>
    %78 = vector.shape_cast %77 : vector<1x2x128xf32> to vector<2x128xf32>
    %79 = vector.shape_cast %76 : vector<2x128xf32> to vector<1x2x128xf32>
    tpu.vector_store %arg14[%c7_46, %c2_47, %c0_48], %79 {strides = array<i32>} : memref<8x4x128xf32, #tpu.memory_space<vmem>>, vector<1x2x128xf32>,
    %c0_49 = arith.constant 0 : index
    %c0_50 = arith.constant 0 : index
    %80 = vector.load %arg3[%c0_49, %c0_50] : memref<32x256xf32, #tpu.memory_space<vmem>>, vector<32x256xf32>
    %cst_51 = arith.constant 0.000000e+00 : f32
    %81 = vector.broadcast %cst_51 : f32 to vector<4x32xf32>
    %cst_52 = arith.constant 0.000000e+00 : f32
    %82 = vector.broadcast %cst_52 : f32 to vector<4x32xf32>
    %cst_53 = arith.constant dense<0.000000e+00> : vector<4x256xf32>
    %83 = tpu.matmul %81, %80, %cst_53 {dimension_numbers = #tpu.dot_dimension_numbers<[1], [0], [0], [1], [0, 0, 1, 1], [], []>} : vector<4x32xf32>, vector<32x256xf32>, vector<4x256xf32> -> vector<4x256xf32>
    %c0_54 = arith.constant 0 : index
    %c0_55 = arith.constant 0 : index
    %c0_56 = arith.constant 0 : index
    %84 = vector.load %arg14[%c0_54, %c0_55, %c0_56] : memref<8x4x128xf32, #tpu.memory_space<vmem>>, vector<1x4x128xf32>
    %85 = vector.shape_cast %84 : vector<1x4x128xf32> to vector<4x128xf32>
    %86 = vector.extract_strided_slice %83 {offsets = [0, 0], sizes = [4, 128], strides = [1, 1]} : vector<4x256xf32> to vector<4x128xf32>
    %87 = vector.extract_strided_slice %83 {offsets = [0, 128], sizes = [4, 128], strides = [1, 1]} : vector<4x256xf32> to vector<4x128xf32>
    %88 = arith.select %2, %86, %87 : vector<4x128xi1>, vector<4x128xf32>
    %89 = arith.addf %85, %88 : vector<4x128xf32>
    %90 = vector.extract_strided_slice %89 {offsets = [0, 0], sizes = [4, 32], strides = [1, 1]} : vector<4x128xf32> to vector<4x32xf32>
    %cst_57 = arith.constant 5.000000e-01 : f32
    %91 = vector.broadcast %cst_57 : f32 to vector<4x32xf32>
    %92 = arith.mulf %91, %90 : vector<4x32xf32>
    %93 = math.tanh %92 : vector<4x32xf32>
    %cst_58 = arith.constant 5.000000e-01 : f32
    %94 = vector.broadcast %cst_58 : f32 to vector<4x32xf32>
    %95 = arith.mulf %94, %93 : vector<4x32xf32>
    %cst_59 = arith.constant 5.000000e-01 : f32
    %96 = vector.broadcast %cst_59 : f32 to vector<4x32xf32>
    %97 = arith.addf %95, %96 : vector<4x32xf32>
    %98 = vector.extract_strided_slice %89 {offsets = [0, 32], sizes = [4, 32], strides = [1, 1]} : vector<4x128xf32> to vector<4x32xf32>
    %cst_60 = arith.constant 5.000000e-01 : f32
    %99 = vector.broadcast %cst_60 : f32 to vector<4x32xf32>
    %100 = arith.mulf %99, %98 : vector<4x32xf32>
    %101 = math.tanh %100 : vector<4x32xf32>
    %cst_61 = arith.constant 5.000000e-01 : f32
    %102 = vector.broadcast %cst_61 : f32 to vector<4x32xf32>
    %103 = arith.mulf %102, %101 : vector<4x32xf32>
    %cst_62 = arith.constant 5.000000e-01 : f32
    %104 = vector.broadcast %cst_62 : f32 to vector<4x32xf32>
    %105 = arith.addf %103, %104 : vector<4x32xf32>
    %106 = vector.extract_strided_slice %89 {offsets = [0, 64], sizes = [4, 32], strides = [1, 1]} : vector<4x128xf32> to vector<4x32xf32>
    %107 = math.tanh %106 : vector<4x32xf32>
    %108 = vector.extract_strided_slice %89 {offsets = [0, 96], sizes = [4, 32], strides = [1, 1]} : vector<4x128xf32> to vector<4x32xf32>
    %cst_63 = arith.constant 5.000000e-01 : f32
    %109 = vector.broadcast %cst_63 : f32 to vector<4x32xf32>
    %110 = arith.mulf %109, %108 : vector<4x32xf32>
    %111 = math.tanh %110 : vector<4x32xf32>
    %cst_64 = arith.constant 5.000000e-01 : f32
    %112 = vector.broadcast %cst_64 : f32 to vector<4x32xf32>
    %113 = arith.mulf %112, %111 : vector<4x32xf32>
    %cst_65 = arith.constant 5.000000e-01 : f32
    %114 = vector.broadcast %cst_65 : f32 to vector<4x32xf32>
    %115 = arith.addf %113, %114 : vector<4x32xf32>
    %116 = arith.mulf %105, %82 : vector<4x32xf32>
    %117 = arith.mulf %97, %107 : vector<4x32xf32>
    %118 = arith.addf %116, %117 : vector<4x32xf32>
    %119 = math.tanh %118 : vector<4x32xf32>
    %120 = arith.mulf %115, %119 : vector<4x32xf32>
    %121 = vector.extract_strided_slice %120 {offsets = [0, 0], sizes = [2, 32], strides = [1, 1]} : vector<4x32xf32> to vector<2x32xf32>
    %c0_66 = arith.constant 0 : index
    %c0_67 = arith.constant 0 : index
    %122 = vector.load %arg13[%c0_66, %c0_67] : memref<16x64xf32, #tpu.memory_space<vmem>>, vector<2x32xf32>
    tpu.vector_store %arg13[%c0_66, %c0_67], %121 {strides = array<i32>} : memref<16x64xf32, #tpu.memory_space<vmem>>, vector<2x32xf32>,
    %123 = vector.extract_strided_slice %120 {offsets = [2, 0], sizes = [2, 32], strides = [1, 1]} : vector<4x32xf32> to vector<2x32xf32>
    %c14 = arith.constant 14 : index
    %c32 = arith.constant 32 : index
    %124 = vector.load %arg13[%c14, %c32] : memref<16x64xf32, #tpu.memory_space<vmem>>, vector<2x32xf32>
    tpu.vector_store %arg13[%c14, %c32], %123 {strides = array<i32>} : memref<16x64xf32, #tpu.memory_space<vmem>>, vector<2x32xf32>,
    %cst_68 = arith.constant dense<0.000000e+00> : vector<4x256xf32>
    %125 = tpu.matmul %120, %80, %cst_68 {dimension_numbers = #tpu.dot_dimension_numbers<[1], [0], [0], [1], [0, 0, 1, 1], [], []>} : vector<4x32xf32>, vector<32x256xf32>, vector<4x256xf32> -> vector<4x256xf32>
    %c1_69 = arith.constant 1 : index
    %c0_70 = arith.constant 0 : index
    %c0_71 = arith.constant 0 : index
    %126 = vector.load %arg14[%c1_69, %c0_70, %c0_71] : memref<8x4x128xf32, #tpu.memory_space<vmem>>, vector<1x4x128xf32>
    %127 = vector.shape_cast %126 : vector<1x4x128xf32> to vector<4x128xf32>
    %128 = vector.extract_strided_slice %125 {offsets = [0, 0], sizes = [4, 128], strides = [1, 1]} : vector<4x256xf32> to vector<4x128xf32>
    %129 = vector.extract_strided_slice %125 {offsets = [0, 128], sizes = [4, 128], strides = [1, 1]} : vector<4x256xf32> to vector<4x128xf32>
    %130 = arith.select %2, %128, %129 : vector<4x128xi1>, vector<4x128xf32>
    %131 = arith.addf %127, %130 : vector<4x128xf32>
    %132 = vector.extract_strided_slice %131 {offsets = [0, 0], sizes = [4, 32], strides = [1, 1]} : vector<4x128xf32> to vector<4x32xf32>
    %cst_72 = arith.constant 5.000000e-01 : f32
    %133 = vector.broadcast %cst_72 : f32 to vector<4x32xf32>
    %134 = arith.mulf %133, %132 : vector<4x32xf32>
    %135 = math.tanh %134 : vector<4x32xf32>
    %cst_73 = arith.constant 5.000000e-01 : f32
    %136 = vector.broadcast %cst_73 : f32 to vector<4x32xf32>
    %137 = arith.mulf %136, %135 : vector<4x32xf32>
    %cst_74 = arith.constant 5.000000e-01 : f32
    %138 = vector.broadcast %cst_74 : f32 to vector<4x32xf32>
    %139 = arith.addf %137, %138 : vector<4x32xf32>
    %140 = vector.extract_strided_slice %131 {offsets = [0, 32], sizes = [4, 32], strides = [1, 1]} : vector<4x128xf32> to vector<4x32xf32>
    %cst_75 = arith.constant 5.000000e-01 : f32
    %141 = vector.broadcast %cst_75 : f32 to vector<4x32xf32>
    %142 = arith.mulf %141, %140 : vector<4x32xf32>
    %143 = math.tanh %142 : vector<4x32xf32>
    %cst_76 = arith.constant 5.000000e-01 : f32
    %144 = vector.broadcast %cst_76 : f32 to vector<4x32xf32>
    %145 = arith.mulf %144, %143 : vector<4x32xf32>
    %cst_77 = arith.constant 5.000000e-01 : f32
    %146 = vector.broadcast %cst_77 : f32 to vector<4x32xf32>
    %147 = arith.addf %145, %146 : vector<4x32xf32>
    %148 = vector.extract_strided_slice %131 {offsets = [0, 64], sizes = [4, 32], strides = [1, 1]} : vector<4x128xf32> to vector<4x32xf32>
    %149 = math.tanh %148 : vector<4x32xf32>
    %150 = vector.extract_strided_slice %131 {offsets = [0, 96], sizes = [4, 32], strides = [1, 1]} : vector<4x128xf32> to vector<4x32xf32>
    %cst_78 = arith.constant 5.000000e-01 : f32
    %151 = vector.broadcast %cst_78 : f32 to vector<4x32xf32>
    %152 = arith.mulf %151, %150 : vector<4x32xf32>
    %153 = math.tanh %152 : vector<4x32xf32>
    %cst_79 = arith.constant 5.000000e-01 : f32
    %154 = vector.broadcast %cst_79 : f32 to vector<4x32xf32>
    %155 = arith.mulf %154, %153 : vector<4x32xf32>
    %cst_80 = arith.constant 5.000000e-01 : f32
    %156 = vector.broadcast %cst_80 : f32 to vector<4x32xf32>
    %157 = arith.addf %155, %156 : vector<4x32xf32>
    %158 = arith.mulf %147, %118 : vector<4x32xf32>
    %159 = arith.mulf %139, %149 : vector<4x32xf32>
    %160 = arith.addf %158, %159 : vector<4x32xf32>
    %161 = math.tanh %160 : vector<4x32xf32>
    %162 = arith.mulf %157, %161 : vector<4x32xf32>
    %163 = vector.extract_strided_slice %162 {offsets = [0, 0], sizes = [2, 32], strides = [1, 1]} : vector<4x32xf32> to vector<2x32xf32>
    %c2_81 = arith.constant 2 : index
    %c0_82 = arith.constant 0 : index
    %164 = vector.load %arg13[%c2_81, %c0_82] : memref<16x64xf32, #tpu.memory_space<vmem>>, vector<2x32xf32>
    tpu.vector_store %arg13[%c2_81, %c0_82], %163 {strides = array<i32>} : memref<16x64xf32, #tpu.memory_space<vmem>>, vector<2x32xf32>,
    %165 = vector.extract_strided_slice %162 {offsets = [2, 0], sizes = [2, 32], strides = [1, 1]} : vector<4x32xf32> to vector<2x32xf32>
    %c12 = arith.constant 12 : index
    %c32_83 = arith.constant 32 : index
    %166 = vector.load %arg13[%c12, %c32_83] : memref<16x64xf32, #tpu.memory_space<vmem>>, vector<2x32xf32>
    tpu.vector_store %arg13[%c12, %c32_83], %165 {strides = array<i32>} : memref<16x64xf32, #tpu.memory_space<vmem>>, vector<2x32xf32>,
    %cst_84 = arith.constant dense<0.000000e+00> : vector<4x256xf32>
    %167 = tpu.matmul %162, %80, %cst_84 {dimension_numbers = #tpu.dot_dimension_numbers<[1], [0], [0], [1], [0, 0, 1, 1], [], []>} : vector<4x32xf32>, vector<32x256xf32>, vector<4x256xf32> -> vector<4x256xf32>
    %c2_85 = arith.constant 2 : index
    %c0_86 = arith.constant 0 : index
    %c0_87 = arith.constant 0 : index
    %168 = vector.load %arg14[%c2_85, %c0_86, %c0_87] : memref<8x4x128xf32, #tpu.memory_space<vmem>>, vector<1x4x128xf32>
    %169 = vector.shape_cast %168 : vector<1x4x128xf32> to vector<4x128xf32>
    %170 = vector.extract_strided_slice %167 {offsets = [0, 0], sizes = [4, 128], strides = [1, 1]} : vector<4x256xf32> to vector<4x128xf32>
    %171 = vector.extract_strided_slice %167 {offsets = [0, 128], sizes = [4, 128], strides = [1, 1]} : vector<4x256xf32> to vector<4x128xf32>
    %172 = arith.select %2, %170, %171 : vector<4x128xi1>, vector<4x128xf32>
    %173 = arith.addf %169, %172 : vector<4x128xf32>
    %174 = vector.extract_strided_slice %173 {offsets = [0, 0], sizes = [4, 32], strides = [1, 1]} : vector<4x128xf32> to vector<4x32xf32>
    %cst_88 = arith.constant 5.000000e-01 : f32
    %175 = vector.broadcast %cst_88 : f32 to vector<4x32xf32>
    %176 = arith.mulf %175, %174 : vector<4x32xf32>
    %177 = math.tanh %176 : vector<4x32xf32>
    %cst_89 = arith.constant 5.000000e-01 : f32
    %178 = vector.broadcast %cst_89 : f32 to vector<4x32xf32>
    %179 = arith.mulf %178, %177 : vector<4x32xf32>
    %cst_90 = arith.constant 5.000000e-01 : f32
    %180 = vector.broadcast %cst_90 : f32 to vector<4x32xf32>
    %181 = arith.addf %179, %180 : vector<4x32xf32>
    %182 = vector.extract_strided_slice %173 {offsets = [0, 32], sizes = [4, 32], strides = [1, 1]} : vector<4x128xf32> to vector<4x32xf32>
    %cst_91 = arith.constant 5.000000e-01 : f32
    %183 = vector.broadcast %cst_91 : f32 to vector<4x32xf32>
    %184 = arith.mulf %183, %182 : vector<4x32xf32>
    %185 = math.tanh %184 : vector<4x32xf32>
    %cst_92 = arith.constant 5.000000e-01 : f32
    %186 = vector.broadcast %cst_92 : f32 to vector<4x32xf32>
    %187 = arith.mulf %186, %185 : vector<4x32xf32>
    %cst_93 = arith.constant 5.000000e-01 : f32
    %188 = vector.broadcast %cst_93 : f32 to vector<4x32xf32>
    %189 = arith.addf %187, %188 : vector<4x32xf32>
    %190 = vector.extract_strided_slice %173 {offsets = [0, 64], sizes = [4, 32], strides = [1, 1]} : vector<4x128xf32> to vector<4x32xf32>
    %191 = math.tanh %190 : vector<4x32xf32>
    %192 = vector.extract_strided_slice %173 {offsets = [0, 96], sizes = [4, 32], strides = [1, 1]} : vector<4x128xf32> to vector<4x32xf32>
    %cst_94 = arith.constant 5.000000e-01 : f32
    %193 = vector.broadcast %cst_94 : f32 to vector<4x32xf32>
    %194 = arith.mulf %193, %192 : vector<4x32xf32>
    %195 = math.tanh %194 : vector<4x32xf32>
    %cst_95 = arith.constant 5.000000e-01 : f32
    %196 = vector.broadcast %cst_95 : f32 to vector<4x32xf32>
    %197 = arith.mulf %196, %195 : vector<4x32xf32>
    %cst_96 = arith.constant 5.000000e-01 : f32
    %198 = vector.broadcast %cst_96 : f32 to vector<4x32xf32>
    %199 = arith.addf %197, %198 : vector<4x32xf32>
    %200 = arith.mulf %189, %160 : vector<4x32xf32>
    %201 = arith.mulf %181, %191 : vector<4x32xf32>
    %202 = arith.addf %200, %201 : vector<4x32xf32>
    %203 = math.tanh %202 : vector<4x32xf32>
    %204 = arith.mulf %199, %203 : vector<4x32xf32>
    %205 = vector.extract_strided_slice %204 {offsets = [0, 0], sizes = [2, 32], strides = [1, 1]} : vector<4x32xf32> to vector<2x32xf32>
    %c4_97 = arith.constant 4 : index
    %c0_98 = arith.constant 0 : index
    %206 = vector.load %arg13[%c4_97, %c0_98] : memref<16x64xf32, #tpu.memory_space<vmem>>, vector<2x32xf32>
    tpu.vector_store %arg13[%c4_97, %c0_98], %205 {strides = array<i32>} : memref<16x64xf32, #tpu.memory_space<vmem>>, vector<2x32xf32>,
    %207 = vector.extract_strided_slice %204 {offsets = [2, 0], sizes = [2, 32], strides = [1, 1]} : vector<4x32xf32> to vector<2x32xf32>
    %c10 = arith.constant 10 : index
    %c32_99 = arith.constant 32 : index
    %208 = vector.load %arg13[%c10, %c32_99] : memref<16x64xf32, #tpu.memory_space<vmem>>, vector<2x32xf32>
    tpu.vector_store %arg13[%c10, %c32_99], %207 {strides = array<i32>} : memref<16x64xf32, #tpu.memory_space<vmem>>, vector<2x32xf32>,
    %cst_100 = arith.constant dense<0.000000e+00> : vector<4x256xf32>
    %209 = tpu.matmul %204, %80, %cst_100 {dimension_numbers = #tpu.dot_dimension_numbers<[1], [0], [0], [1], [0, 0, 1, 1], [], []>} : vector<4x32xf32>, vector<32x256xf32>, vector<4x256xf32> -> vector<4x256xf32>
    %c3_101 = arith.constant 3 : index
    %c0_102 = arith.constant 0 : index
    %c0_103 = arith.constant 0 : index
    %210 = vector.load %arg14[%c3_101, %c0_102, %c0_103] : memref<8x4x128xf32, #tpu.memory_space<vmem>>, vector<1x4x128xf32>
    %211 = vector.shape_cast %210 : vector<1x4x128xf32> to vector<4x128xf32>
    %212 = vector.extract_strided_slice %209 {offsets = [0, 0], sizes = [4, 128], strides = [1, 1]} : vector<4x256xf32> to vector<4x128xf32>
    %213 = vector.extract_strided_slice %209 {offsets = [0, 128], sizes = [4, 128], strides = [1, 1]} : vector<4x256xf32> to vector<4x128xf32>
    %214 = arith.select %2, %212, %213 : vector<4x128xi1>, vector<4x128xf32>
    %215 = arith.addf %211, %214 : vector<4x128xf32>
    %216 = vector.extract_strided_slice %215 {offsets = [0, 0], sizes = [4, 32], strides = [1, 1]} : vector<4x128xf32> to vector<4x32xf32>
    %cst_104 = arith.constant 5.000000e-01 : f32
    %217 = vector.broadcast %cst_104 : f32 to vector<4x32xf32>
    %218 = arith.mulf %217, %216 : vector<4x32xf32>
    %219 = math.tanh %218 : vector<4x32xf32>
    %cst_105 = arith.constant 5.000000e-01 : f32
    %220 = vector.broadcast %cst_105 : f32 to vector<4x32xf32>
    %221 = arith.mulf %220, %219 : vector<4x32xf32>
    %cst_106 = arith.constant 5.000000e-01 : f32
    %222 = vector.broadcast %cst_106 : f32 to vector<4x32xf32>
    %223 = arith.addf %221, %222 : vector<4x32xf32>
    %224 = vector.extract_strided_slice %215 {offsets = [0, 32], sizes = [4, 32], strides = [1, 1]} : vector<4x128xf32> to vector<4x32xf32>
    %cst_107 = arith.constant 5.000000e-01 : f32
    %225 = vector.broadcast %cst_107 : f32 to vector<4x32xf32>
    %226 = arith.mulf %225, %224 : vector<4x32xf32>
    %227 = math.tanh %226 : vector<4x32xf32>
    %cst_108 = arith.constant 5.000000e-01 : f32
    %228 = vector.broadcast %cst_108 : f32 to vector<4x32xf32>
    %229 = arith.mulf %228, %227 : vector<4x32xf32>
    %cst_109 = arith.constant 5.000000e-01 : f32
    %230 = vector.broadcast %cst_109 : f32 to vector<4x32xf32>
    %231 = arith.addf %229, %230 : vector<4x32xf32>
    %232 = vector.extract_strided_slice %215 {offsets = [0, 64], sizes = [4, 32], strides = [1, 1]} : vector<4x128xf32> to vector<4x32xf32>
    %233 = math.tanh %232 : vector<4x32xf32>
    %234 = vector.extract_strided_slice %215 {offsets = [0, 96], sizes = [4, 32], strides = [1, 1]} : vector<4x128xf32> to vector<4x32xf32>
    %cst_110 = arith.constant 5.000000e-01 : f32
    %235 = vector.broadcast %cst_110 : f32 to vector<4x32xf32>
    %236 = arith.mulf %235, %234 : vector<4x32xf32>
    %237 = math.tanh %236 : vector<4x32xf32>
    %cst_111 = arith.constant 5.000000e-01 : f32
    %238 = vector.broadcast %cst_111 : f32 to vector<4x32xf32>
    %239 = arith.mulf %238, %237 : vector<4x32xf32>
    %cst_112 = arith.constant 5.000000e-01 : f32
    %240 = vector.broadcast %cst_112 : f32 to vector<4x32xf32>
    %241 = arith.addf %239, %240 : vector<4x32xf32>
    %242 = arith.mulf %231, %202 : vector<4x32xf32>
    %243 = arith.mulf %223, %233 : vector<4x32xf32>
    %244 = arith.addf %242, %243 : vector<4x32xf32>
    %245 = math.tanh %244 : vector<4x32xf32>
    %246 = arith.mulf %241, %245 : vector<4x32xf32>
    %247 = vector.extract_strided_slice %246 {offsets = [0, 0], sizes = [2, 32], strides = [1, 1]} : vector<4x32xf32> to vector<2x32xf32>
    %c6_113 = arith.constant 6 : index
    %c0_114 = arith.constant 0 : index
    %248 = vector.load %arg13[%c6_113, %c0_114] : memref<16x64xf32, #tpu.memory_space<vmem>>, vector<2x32xf32>
    tpu.vector_store %arg13[%c6_113, %c0_114], %247 {strides = array<i32>} : memref<16x64xf32, #tpu.memory_space<vmem>>, vector<2x32xf32>,
    %249 = vector.extract_strided_slice %246 {offsets = [2, 0], sizes = [2, 32], strides = [1, 1]} : vector<4x32xf32> to vector<2x32xf32>
    %c8 = arith.constant 8 : index
    %c32_115 = arith.constant 32 : index
    %250 = vector.load %arg13[%c8, %c32_115] : memref<16x64xf32, #tpu.memory_space<vmem>>, vector<2x32xf32>
    tpu.vector_store %arg13[%c8, %c32_115], %249 {strides = array<i32>} : memref<16x64xf32, #tpu.memory_space<vmem>>, vector<2x32xf32>,
    %cst_116 = arith.constant dense<0.000000e+00> : vector<4x256xf32>
    %251 = tpu.matmul %246, %80, %cst_116 {dimension_numbers = #tpu.dot_dimension_numbers<[1], [0], [0], [1], [0, 0, 1, 1], [], []>} : vector<4x32xf32>, vector<32x256xf32>, vector<4x256xf32> -> vector<4x256xf32>
    %c4_117 = arith.constant 4 : index
    %c0_118 = arith.constant 0 : index
    %c0_119 = arith.constant 0 : index
    %252 = vector.load %arg14[%c4_117, %c0_118, %c0_119] : memref<8x4x128xf32, #tpu.memory_space<vmem>>, vector<1x4x128xf32>
    %253 = vector.shape_cast %252 : vector<1x4x128xf32> to vector<4x128xf32>
    %254 = vector.extract_strided_slice %251 {offsets = [0, 0], sizes = [4, 128], strides = [1, 1]} : vector<4x256xf32> to vector<4x128xf32>
    %255 = vector.extract_strided_slice %251 {offsets = [0, 128], sizes = [4, 128], strides = [1, 1]} : vector<4x256xf32> to vector<4x128xf32>
    %256 = arith.select %2, %254, %255 : vector<4x128xi1>, vector<4x128xf32>
    %257 = arith.addf %253, %256 : vector<4x128xf32>
    %258 = vector.extract_strided_slice %257 {offsets = [0, 0], sizes = [4, 32], strides = [1, 1]} : vector<4x128xf32> to vector<4x32xf32>
    %cst_120 = arith.constant 5.000000e-01 : f32
    %259 = vector.broadcast %cst_120 : f32 to vector<4x32xf32>
    %260 = arith.mulf %259, %258 : vector<4x32xf32>
    %261 = math.tanh %260 : vector<4x32xf32>
    %cst_121 = arith.constant 5.000000e-01 : f32
    %262 = vector.broadcast %cst_121 : f32 to vector<4x32xf32>
    %263 = arith.mulf %262, %261 : vector<4x32xf32>
    %cst_122 = arith.constant 5.000000e-01 : f32
    %264 = vector.broadcast %cst_122 : f32 to vector<4x32xf32>
    %265 = arith.addf %263, %264 : vector<4x32xf32>
    %266 = vector.extract_strided_slice %257 {offsets = [0, 32], sizes = [4, 32], strides = [1, 1]} : vector<4x128xf32> to vector<4x32xf32>
    %cst_123 = arith.constant 5.000000e-01 : f32
    %267 = vector.broadcast %cst_123 : f32 to vector<4x32xf32>
    %268 = arith.mulf %267, %266 : vector<4x32xf32>
    %269 = math.tanh %268 : vector<4x32xf32>
    %cst_124 = arith.constant 5.000000e-01 : f32
    %270 = vector.broadcast %cst_124 : f32 to vector<4x32xf32>
    %271 = arith.mulf %270, %269 : vector<4x32xf32>
    %cst_125 = arith.constant 5.000000e-01 : f32
    %272 = vector.broadcast %cst_125 : f32 to vector<4x32xf32>
    %273 = arith.addf %271, %272 : vector<4x32xf32>
    %274 = vector.extract_strided_slice %257 {offsets = [0, 64], sizes = [4, 32], strides = [1, 1]} : vector<4x128xf32> to vector<4x32xf32>
    %275 = math.tanh %274 : vector<4x32xf32>
    %276 = vector.extract_strided_slice %257 {offsets = [0, 96], sizes = [4, 32], strides = [1, 1]} : vector<4x128xf32> to vector<4x32xf32>
    %cst_126 = arith.constant 5.000000e-01 : f32
    %277 = vector.broadcast %cst_126 : f32 to vector<4x32xf32>
    %278 = arith.mulf %277, %276 : vector<4x32xf32>
    %279 = math.tanh %278 : vector<4x32xf32>
    %cst_127 = arith.constant 5.000000e-01 : f32
    %280 = vector.broadcast %cst_127 : f32 to vector<4x32xf32>
    %281 = arith.mulf %280, %279 : vector<4x32xf32>
    %cst_128 = arith.constant 5.000000e-01 : f32
    %282 = vector.broadcast %cst_128 : f32 to vector<4x32xf32>
    %283 = arith.addf %281, %282 : vector<4x32xf32>
    %284 = arith.mulf %273, %244 : vector<4x32xf32>
    %285 = arith.mulf %265, %275 : vector<4x32xf32>
    %286 = arith.addf %284, %285 : vector<4x32xf32>
    %287 = math.tanh %286 : vector<4x32xf32>
    %288 = arith.mulf %283, %287 : vector<4x32xf32>
    %289 = vector.extract_strided_slice %288 {offsets = [0, 0], sizes = [2, 32], strides = [1, 1]} : vector<4x32xf32> to vector<2x32xf32>
    %c8_129 = arith.constant 8 : index
    %c0_130 = arith.constant 0 : index
    %290 = vector.load %arg13[%c8_129, %c0_130] : memref<16x64xf32, #tpu.memory_space<vmem>>, vector<2x32xf32>
    tpu.vector_store %arg13[%c8_129, %c0_130], %289 {strides = array<i32>} : memref<16x64xf32, #tpu.memory_space<vmem>>, vector<2x32xf32>,
    %291 = vector.extract_strided_slice %288 {offsets = [2, 0], sizes = [2, 32], strides = [1, 1]} : vector<4x32xf32> to vector<2x32xf32>
    %c6_131 = arith.constant 6 : index
    %c32_132 = arith.constant 32 : index
    %292 = vector.load %arg13[%c6_131, %c32_132] : memref<16x64xf32, #tpu.memory_space<vmem>>, vector<2x32xf32>
    tpu.vector_store %arg13[%c6_131, %c32_132], %291 {strides = array<i32>} : memref<16x64xf32, #tpu.memory_space<vmem>>, vector<2x32xf32>,
    %cst_133 = arith.constant dense<0.000000e+00> : vector<4x256xf32>
    %293 = tpu.matmul %288, %80, %cst_133 {dimension_numbers = #tpu.dot_dimension_numbers<[1], [0], [0], [1], [0, 0, 1, 1], [], []>} : vector<4x32xf32>, vector<32x256xf32>, vector<4x256xf32> -> vector<4x256xf32>
    %c5_134 = arith.constant 5 : index
    %c0_135 = arith.constant 0 : index
    %c0_136 = arith.constant 0 : index
    %294 = vector.load %arg14[%c5_134, %c0_135, %c0_136] : memref<8x4x128xf32, #tpu.memory_space<vmem>>, vector<1x4x128xf32>
    %295 = vector.shape_cast %294 : vector<1x4x128xf32> to vector<4x128xf32>
    %296 = vector.extract_strided_slice %293 {offsets = [0, 0], sizes = [4, 128], strides = [1, 1]} : vector<4x256xf32> to vector<4x128xf32>
    %297 = vector.extract_strided_slice %293 {offsets = [0, 128], sizes = [4, 128], strides = [1, 1]} : vector<4x256xf32> to vector<4x128xf32>
    %298 = arith.select %2, %296, %297 : vector<4x128xi1>, vector<4x128xf32>
    %299 = arith.addf %295, %298 : vector<4x128xf32>
    %300 = vector.extract_strided_slice %299 {offsets = [0, 0], sizes = [4, 32], strides = [1, 1]} : vector<4x128xf32> to vector<4x32xf32>
    %cst_137 = arith.constant 5.000000e-01 : f32
    %301 = vector.broadcast %cst_137 : f32 to vector<4x32xf32>
    %302 = arith.mulf %301, %300 : vector<4x32xf32>
    %303 = math.tanh %302 : vector<4x32xf32>
    %cst_138 = arith.constant 5.000000e-01 : f32
    %304 = vector.broadcast %cst_138 : f32 to vector<4x32xf32>
    %305 = arith.mulf %304, %303 : vector<4x32xf32>
    %cst_139 = arith.constant 5.000000e-01 : f32
    %306 = vector.broadcast %cst_139 : f32 to vector<4x32xf32>
    %307 = arith.addf %305, %306 : vector<4x32xf32>
    %308 = vector.extract_strided_slice %299 {offsets = [0, 32], sizes = [4, 32], strides = [1, 1]} : vector<4x128xf32> to vector<4x32xf32>
    %cst_140 = arith.constant 5.000000e-01 : f32
    %309 = vector.broadcast %cst_140 : f32 to vector<4x32xf32>
    %310 = arith.mulf %309, %308 : vector<4x32xf32>
    %311 = math.tanh %310 : vector<4x32xf32>
    %cst_141 = arith.constant 5.000000e-01 : f32
    %312 = vector.broadcast %cst_141 : f32 to vector<4x32xf32>
    %313 = arith.mulf %312, %311 : vector<4x32xf32>
    %cst_142 = arith.constant 5.000000e-01 : f32
    %314 = vector.broadcast %cst_142 : f32 to vector<4x32xf32>
    %315 = arith.addf %313, %314 : vector<4x32xf32>
    %316 = vector.extract_strided_slice %299 {offsets = [0, 64], sizes = [4, 32], strides = [1, 1]} : vector<4x128xf32> to vector<4x32xf32>
    %317 = math.tanh %316 : vector<4x32xf32>
    %318 = vector.extract_strided_slice %299 {offsets = [0, 96], sizes = [4, 32], strides = [1, 1]} : vector<4x128xf32> to vector<4x32xf32>
    %cst_143 = arith.constant 5.000000e-01 : f32
    %319 = vector.broadcast %cst_143 : f32 to vector<4x32xf32>
    %320 = arith.mulf %319, %318 : vector<4x32xf32>
    %321 = math.tanh %320 : vector<4x32xf32>
    %cst_144 = arith.constant 5.000000e-01 : f32
    %322 = vector.broadcast %cst_144 : f32 to vector<4x32xf32>
    %323 = arith.mulf %322, %321 : vector<4x32xf32>
    %cst_145 = arith.constant 5.000000e-01 : f32
    %324 = vector.broadcast %cst_145 : f32 to vector<4x32xf32>
    %325 = arith.addf %323, %324 : vector<4x32xf32>
    %326 = arith.mulf %315, %286 : vector<4x32xf32>
    %327 = arith.mulf %307, %317 : vector<4x32xf32>
    %328 = arith.addf %326, %327 : vector<4x32xf32>
    %329 = math.tanh %328 : vector<4x32xf32>
    %330 = arith.mulf %325, %329 : vector<4x32xf32>
    %331 = vector.extract_strided_slice %330 {offsets = [0, 0], sizes = [2, 32], strides = [1, 1]} : vector<4x32xf32> to vector<2x32xf32>
    %c10_146 = arith.constant 10 : index
    %c0_147 = arith.constant 0 : index
    %332 = vector.load %arg13[%c10_146, %c0_147] : memref<16x64xf32, #tpu.memory_space<vmem>>, vector<2x32xf32>
    tpu.vector_store %arg13[%c10_146, %c0_147], %331 {strides = array<i32>} : memref<16x64xf32, #tpu.memory_space<vmem>>, vector<2x32xf32>,
    %333 = vector.extract_strided_slice %330 {offsets = [2, 0], sizes = [2, 32], strides = [1, 1]} : vector<4x32xf32> to vector<2x32xf32>
    %c4_148 = arith.constant 4 : index
    %c32_149 = arith.constant 32 : index
    %334 = vector.load %arg13[%c4_148, %c32_149] : memref<16x64xf32, #tpu.memory_space<vmem>>, vector<2x32xf32>
    tpu.vector_store %arg13[%c4_148, %c32_149], %333 {strides = array<i32>} : memref<16x64xf32, #tpu.memory_space<vmem>>, vector<2x32xf32>,
    %cst_150 = arith.constant dense<0.000000e+00> : vector<4x256xf32>
    %335 = tpu.matmul %330, %80, %cst_150 {dimension_numbers = #tpu.dot_dimension_numbers<[1], [0], [0], [1], [0, 0, 1, 1], [], []>} : vector<4x32xf32>, vector<32x256xf32>, vector<4x256xf32> -> vector<4x256xf32>
    %c6_151 = arith.constant 6 : index
    %c0_152 = arith.constant 0 : index
    %c0_153 = arith.constant 0 : index
    %336 = vector.load %arg14[%c6_151, %c0_152, %c0_153] : memref<8x4x128xf32, #tpu.memory_space<vmem>>, vector<1x4x128xf32>
    %337 = vector.shape_cast %336 : vector<1x4x128xf32> to vector<4x128xf32>
    %338 = vector.extract_strided_slice %335 {offsets = [0, 0], sizes = [4, 128], strides = [1, 1]} : vector<4x256xf32> to vector<4x128xf32>
    %339 = vector.extract_strided_slice %335 {offsets = [0, 128], sizes = [4, 128], strides = [1, 1]} : vector<4x256xf32> to vector<4x128xf32>
    %340 = arith.select %2, %338, %339 : vector<4x128xi1>, vector<4x128xf32>
    %341 = arith.addf %337, %340 : vector<4x128xf32>
    %342 = vector.extract_strided_slice %341 {offsets = [0, 0], sizes = [4, 32], strides = [1, 1]} : vector<4x128xf32> to vector<4x32xf32>
    %cst_154 = arith.constant 5.000000e-01 : f32
    %343 = vector.broadcast %cst_154 : f32 to vector<4x32xf32>
    %344 = arith.mulf %343, %342 : vector<4x32xf32>
    %345 = math.tanh %344 : vector<4x32xf32>
    %cst_155 = arith.constant 5.000000e-01 : f32
    %346 = vector.broadcast %cst_155 : f32 to vector<4x32xf32>
    %347 = arith.mulf %346, %345 : vector<4x32xf32>
    %cst_156 = arith.constant 5.000000e-01 : f32
    %348 = vector.broadcast %cst_156 : f32 to vector<4x32xf32>
    %349 = arith.addf %347, %348 : vector<4x32xf32>
    %350 = vector.extract_strided_slice %341 {offsets = [0, 32], sizes = [4, 32], strides = [1, 1]} : vector<4x128xf32> to vector<4x32xf32>
    %cst_157 = arith.constant 5.000000e-01 : f32
    %351 = vector.broadcast %cst_157 : f32 to vector<4x32xf32>
    %352 = arith.mulf %351, %350 : vector<4x32xf32>
    %353 = math.tanh %352 : vector<4x32xf32>
    %cst_158 = arith.constant 5.000000e-01 : f32
    %354 = vector.broadcast %cst_158 : f32 to vector<4x32xf32>
    %355 = arith.mulf %354, %353 : vector<4x32xf32>
    %cst_159 = arith.constant 5.000000e-01 : f32
    %356 = vector.broadcast %cst_159 : f32 to vector<4x32xf32>
    %357 = arith.addf %355, %356 : vector<4x32xf32>
    %358 = vector.extract_strided_slice %341 {offsets = [0, 64], sizes = [4, 32], strides = [1, 1]} : vector<4x128xf32> to vector<4x32xf32>
    %359 = math.tanh %358 : vector<4x32xf32>
    %360 = vector.extract_strided_slice %341 {offsets = [0, 96], sizes = [4, 32], strides = [1, 1]} : vector<4x128xf32> to vector<4x32xf32>
    %cst_160 = arith.constant 5.000000e-01 : f32
    %361 = vector.broadcast %cst_160 : f32 to vector<4x32xf32>
    %362 = arith.mulf %361, %360 : vector<4x32xf32>
    %363 = math.tanh %362 : vector<4x32xf32>
    %cst_161 = arith.constant 5.000000e-01 : f32
    %364 = vector.broadcast %cst_161 : f32 to vector<4x32xf32>
    %365 = arith.mulf %364, %363 : vector<4x32xf32>
    %cst_162 = arith.constant 5.000000e-01 : f32
    %366 = vector.broadcast %cst_162 : f32 to vector<4x32xf32>
    %367 = arith.addf %365, %366 : vector<4x32xf32>
    %368 = arith.mulf %357, %328 : vector<4x32xf32>
    %369 = arith.mulf %349, %359 : vector<4x32xf32>
    %370 = arith.addf %368, %369 : vector<4x32xf32>
    %371 = math.tanh %370 : vector<4x32xf32>
    %372 = arith.mulf %367, %371 : vector<4x32xf32>
    %373 = vector.extract_strided_slice %372 {offsets = [0, 0], sizes = [2, 32], strides = [1, 1]} : vector<4x32xf32> to vector<2x32xf32>
    %c12_163 = arith.constant 12 : index
    %c0_164 = arith.constant 0 : index
    %374 = vector.load %arg13[%c12_163, %c0_164] : memref<16x64xf32, #tpu.memory_space<vmem>>, vector<2x32xf32>
    tpu.vector_store %arg13[%c12_163, %c0_164], %373 {strides = array<i32>} : memref<16x64xf32, #tpu.memory_space<vmem>>, vector<2x32xf32>,
    %375 = vector.extract_strided_slice %372 {offsets = [2, 0], sizes = [2, 32], strides = [1, 1]} : vector<4x32xf32> to vector<2x32xf32>
    %c2_165 = arith.constant 2 : index
    %c32_166 = arith.constant 32 : index
    %376 = vector.load %arg13[%c2_165, %c32_166] : memref<16x64xf32, #tpu.memory_space<vmem>>, vector<2x32xf32>
    tpu.vector_store %arg13[%c2_165, %c32_166], %375 {strides = array<i32>} : memref<16x64xf32, #tpu.memory_space<vmem>>, vector<2x32xf32>,
    %cst_167 = arith.constant dense<0.000000e+00> : vector<4x256xf32>
    %377 = tpu.matmul %372, %80, %cst_167 {dimension_numbers = #tpu.dot_dimension_numbers<[1], [0], [0], [1], [0, 0, 1, 1], [], []>} : vector<4x32xf32>, vector<32x256xf32>, vector<4x256xf32> -> vector<4x256xf32>
    %c7_168 = arith.constant 7 : index
    %c0_169 = arith.constant 0 : index
    %c0_170 = arith.constant 0 : index
    %378 = vector.load %arg14[%c7_168, %c0_169, %c0_170] : memref<8x4x128xf32, #tpu.memory_space<vmem>>, vector<1x4x128xf32>
    %379 = vector.shape_cast %378 : vector<1x4x128xf32> to vector<4x128xf32>
    %380 = vector.extract_strided_slice %377 {offsets = [0, 0], sizes = [4, 128], strides = [1, 1]} : vector<4x256xf32> to vector<4x128xf32>
    %381 = vector.extract_strided_slice %377 {offsets = [0, 128], sizes = [4, 128], strides = [1, 1]} : vector<4x256xf32> to vector<4x128xf32>
    %382 = arith.select %2, %380, %381 : vector<4x128xi1>, vector<4x128xf32>
    %383 = arith.addf %379, %382 : vector<4x128xf32>
    %384 = vector.extract_strided_slice %383 {offsets = [0, 0], sizes = [4, 32], strides = [1, 1]} : vector<4x128xf32> to vector<4x32xf32>
    %cst_171 = arith.constant 5.000000e-01 : f32
    %385 = vector.broadcast %cst_171 : f32 to vector<4x32xf32>
    %386 = arith.mulf %385, %384 : vector<4x32xf32>
    %387 = math.tanh %386 : vector<4x32xf32>
    %cst_172 = arith.constant 5.000000e-01 : f32
    %388 = vector.broadcast %cst_172 : f32 to vector<4x32xf32>
    %389 = arith.mulf %388, %387 : vector<4x32xf32>
    %cst_173 = arith.constant 5.000000e-01 : f32
    %390 = vector.broadcast %cst_173 : f32 to vector<4x32xf32>
    %391 = arith.addf %389, %390 : vector<4x32xf32>
    %392 = vector.extract_strided_slice %383 {offsets = [0, 32], sizes = [4, 32], strides = [1, 1]} : vector<4x128xf32> to vector<4x32xf32>
    %cst_174 = arith.constant 5.000000e-01 : f32
    %393 = vector.broadcast %cst_174 : f32 to vector<4x32xf32>
    %394 = arith.mulf %393, %392 : vector<4x32xf32>
    %395 = math.tanh %394 : vector<4x32xf32>
    %cst_175 = arith.constant 5.000000e-01 : f32
    %396 = vector.broadcast %cst_175 : f32 to vector<4x32xf32>
    %397 = arith.mulf %396, %395 : vector<4x32xf32>
    %cst_176 = arith.constant 5.000000e-01 : f32
    %398 = vector.broadcast %cst_176 : f32 to vector<4x32xf32>
    %399 = arith.addf %397, %398 : vector<4x32xf32>
    %400 = vector.extract_strided_slice %383 {offsets = [0, 64], sizes = [4, 32], strides = [1, 1]} : vector<4x128xf32> to vector<4x32xf32>
    %401 = math.tanh %400 : vector<4x32xf32>
    %402 = vector.extract_strided_slice %383 {offsets = [0, 96], sizes = [4, 32], strides = [1, 1]} : vector<4x128xf32> to vector<4x32xf32>
    %cst_177 = arith.constant 5.000000e-01 : f32
    %403 = vector.broadcast %cst_177 : f32 to vector<4x32xf32>
    %404 = arith.mulf %403, %402 : vector<4x32xf32>
    %405 = math.tanh %404 : vector<4x32xf32>
    %cst_178 = arith.constant 5.000000e-01 : f32
    %406 = vector.broadcast %cst_178 : f32 to vector<4x32xf32>
    %407 = arith.mulf %406, %405 : vector<4x32xf32>
    %cst_179 = arith.constant 5.000000e-01 : f32
    %408 = vector.broadcast %cst_179 : f32 to vector<4x32xf32>
    %409 = arith.addf %407, %408 : vector<4x32xf32>
    %410 = arith.mulf %399, %370 : vector<4x32xf32>
    %411 = arith.mulf %391, %401 : vector<4x32xf32>
    %412 = arith.addf %410, %411 : vector<4x32xf32>
    %413 = math.tanh %412 : vector<4x32xf32>
    %414 = arith.mulf %409, %413 : vector<4x32xf32>
    %415 = vector.extract_strided_slice %414 {offsets = [0, 0], sizes = [2, 32], strides = [1, 1]} : vector<4x32xf32> to vector<2x32xf32>
    %c14_180 = arith.constant 14 : index
    %c0_181 = arith.constant 0 : index
    %416 = vector.load %arg13[%c14_180, %c0_181] : memref<16x64xf32, #tpu.memory_space<vmem>>, vector<2x32xf32>
    tpu.vector_store %arg13[%c14_180, %c0_181], %415 {strides = array<i32>} : memref<16x64xf32, #tpu.memory_space<vmem>>, vector<2x32xf32>,
    %417 = vector.extract_strided_slice %414 {offsets = [2, 0], sizes = [2, 32], strides = [1, 1]} : vector<4x32xf32> to vector<2x32xf32>
    %c0_182 = arith.constant 0 : index
    %c32_183 = arith.constant 32 : index
    %418 = vector.load %arg13[%c0_182, %c32_183] : memref<16x64xf32, #tpu.memory_space<vmem>>, vector<2x32xf32>
    tpu.vector_store %arg13[%c0_182, %c32_183], %417 {strides = array<i32>} : memref<16x64xf32, #tpu.memory_space<vmem>>, vector<2x32xf32>,
    %419 = vector.extract_strided_slice %412 {offsets = [0, 0], sizes = [2, 32], strides = [1, 1]} : vector<4x32xf32> to vector<2x32xf32>
    %c0_184 = arith.constant 0 : index
    %c0_185 = arith.constant 0 : index
    %c0_186 = arith.constant 0 : index
    %420 = vector.load %arg12[%c0_184, %c0_185, %c0_186] : memref<4x2x32xf32, #tpu.memory_space<vmem>>, vector<1x2x32xf32>
    %421 = vector.shape_cast %420 : vector<1x2x32xf32> to vector<2x32xf32>
    %422 = vector.shape_cast %419 : vector<2x32xf32> to vector<1x2x32xf32>
    tpu.vector_store %arg12[%c0_184, %c0_185, %c0_186], %422 {strides = array<i32>} : memref<4x2x32xf32, #tpu.memory_space<vmem>>, vector<1x2x32xf32>,
    %423 = vector.extract_strided_slice %412 {offsets = [2, 0], sizes = [2, 32], strides = [1, 1]} : vector<4x32xf32> to vector<2x32xf32>
    %c1_187 = arith.constant 1 : index
    %c0_188 = arith.constant 0 : index
    %c0_189 = arith.constant 0 : index
    %424 = vector.load %arg12[%c1_187, %c0_188, %c0_189] : memref<4x2x32xf32, #tpu.memory_space<vmem>>, vector<1x2x32xf32>
    %425 = vector.shape_cast %424 : vector<1x2x32xf32> to vector<2x32xf32>
    %426 = vector.shape_cast %423 : vector<2x32xf32> to vector<1x2x32xf32>
    tpu.vector_store %arg12[%c1_187, %c0_188, %c0_189], %426 {strides = array<i32>} : memref<4x2x32xf32, #tpu.memory_space<vmem>>, vector<1x2x32xf32>,
    %c0_190 = arith.constant 0 : index
    %c0_191 = arith.constant 0 : index
    %427 = vector.load %arg13[%c0_190, %c0_191] : memref<16x64xf32, #tpu.memory_space<vmem>>, vector<16x64xf32>
    %c0_192 = arith.constant 0 : index
    %c0_193 = arith.constant 0 : index
    %428 = vector.load %arg5[%c0_192, %c0_193] : memref<64x256xf32, #tpu.memory_space<vmem>>, vector<64x256xf32>
    %cst_194 = arith.constant dense<0.000000e+00> : vector<16x256xf32>
    %429 = tpu.matmul %427, %428, %cst_194 {dimension_numbers = #tpu.dot_dimension_numbers<[1], [0], [0], [1], [0, 0, 1, 1], [], []>} : vector<16x64xf32>, vector<64x256xf32>, vector<16x256xf32> -> vector<16x256xf32>
    %c0_195 = arith.constant 0 : index
    %c0_196 = arith.constant 0 : index
    %430 = vector.load %arg7[%c0_195, %c0_196] : memref<1x256xf32, #tpu.memory_space<vmem>>, vector<1x256xf32>
    %431 = vector.broadcast %430 : vector<1x256xf32> to vector<16x256xf32>
    %432 = arith.addf %429, %431 : vector<16x256xf32>
    %433 = vector.extract_strided_slice %432 {offsets = [0, 0], sizes = [2, 128], strides = [1, 1]} : vector<16x256xf32> to vector<2x128xf32>
    %c0_197 = arith.constant 0 : index
    %c0_198 = arith.constant 0 : index
    %c0_199 = arith.constant 0 : index
    %434 = vector.load %arg14[%c0_197, %c0_198, %c0_199] : memref<8x4x128xf32, #tpu.memory_space<vmem>>, vector<1x2x128xf32>
    %435 = vector.shape_cast %434 : vector<1x2x128xf32> to vector<2x128xf32>
    %436 = vector.shape_cast %433 : vector<2x128xf32> to vector<1x2x128xf32>
    tpu.vector_store %arg14[%c0_197, %c0_198, %c0_199], %436 {strides = array<i32>} : memref<8x4x128xf32, #tpu.memory_space<vmem>>, vector<1x2x128xf32>,
    %437 = vector.extract_strided_slice %432 {offsets = [14, 128], sizes = [2, 128], strides = [1, 1]} : vector<16x256xf32> to vector<2x128xf32>
    %c0_200 = arith.constant 0 : index
    %c2_201 = arith.constant 2 : index
    %c0_202 = arith.constant 0 : index
    %438 = vector.load %arg14[%c0_200, %c2_201, %c0_202] : memref<8x4x128xf32, #tpu.memory_space<vmem>>, vector<1x2x128xf32>
    %439 = vector.shape_cast %438 : vector<1x2x128xf32> to vector<2x128xf32>
    %440 = vector.shape_cast %437 : vector<2x128xf32> to vector<1x2x128xf32>
    tpu.vector_store %arg14[%c0_200, %c2_201, %c0_202], %440 {strides = array<i32>} : memref<8x4x128xf32, #tpu.memory_space<vmem>>, vector<1x2x128xf32>,
    %441 = vector.extract_strided_slice %432 {offsets = [2, 0], sizes = [2, 128], strides = [1, 1]} : vector<16x256xf32> to vector<2x128xf32>
    %c1_203 = arith.constant 1 : index
    %c0_204 = arith.constant 0 : index
    %c0_205 = arith.constant 0 : index
    %442 = vector.load %arg14[%c1_203, %c0_204, %c0_205] : memref<8x4x128xf32, #tpu.memory_space<vmem>>, vector<1x2x128xf32>
    %443 = vector.shape_cast %442 : vector<1x2x128xf32> to vector<2x128xf32>
    %444 = vector.shape_cast %441 : vector<2x128xf32> to vector<1x2x128xf32>
    tpu.vector_store %arg14[%c1_203, %c0_204, %c0_205], %444 {strides = array<i32>} : memref<8x4x128xf32, #tpu.memory_space<vmem>>, vector<1x2x128xf32>,
    %445 = vector.extract_strided_slice %432 {offsets = [12, 128], sizes = [2, 128], strides = [1, 1]} : vector<16x256xf32> to vector<2x128xf32>
    %c1_206 = arith.constant 1 : index
    %c2_207 = arith.constant 2 : index
    %c0_208 = arith.constant 0 : index
    %446 = vector.load %arg14[%c1_206, %c2_207, %c0_208] : memref<8x4x128xf32, #tpu.memory_space<vmem>>, vector<1x2x128xf32>
    %447 = vector.shape_cast %446 : vector<1x2x128xf32> to vector<2x128xf32>
    %448 = vector.shape_cast %445 : vector<2x128xf32> to vector<1x2x128xf32>
    tpu.vector_store %arg14[%c1_206, %c2_207, %c0_208], %448 {strides = array<i32>} : memref<8x4x128xf32, #tpu.memory_space<vmem>>, vector<1x2x128xf32>,
    %449 = vector.extract_strided_slice %432 {offsets = [4, 0], sizes = [2, 128], strides = [1, 1]} : vector<16x256xf32> to vector<2x128xf32>
    %c2_209 = arith.constant 2 : index
    %c0_210 = arith.constant 0 : index
    %c0_211 = arith.constant 0 : index
    %450 = vector.load %arg14[%c2_209, %c0_210, %c0_211] : memref<8x4x128xf32, #tpu.memory_space<vmem>>, vector<1x2x128xf32>
    %451 = vector.shape_cast %450 : vector<1x2x128xf32> to vector<2x128xf32>
    %452 = vector.shape_cast %449 : vector<2x128xf32> to vector<1x2x128xf32>
    tpu.vector_store %arg14[%c2_209, %c0_210, %c0_211], %452 {strides = array<i32>} : memref<8x4x128xf32, #tpu.memory_space<vmem>>, vector<1x2x128xf32>,
    %453 = vector.extract_strided_slice %432 {offsets = [10, 128], sizes = [2, 128], strides = [1, 1]} : vector<16x256xf32> to vector<2x128xf32>
    %c2_212 = arith.constant 2 : index
    %c2_213 = arith.constant 2 : index
    %c0_214 = arith.constant 0 : index
    %454 = vector.load %arg14[%c2_212, %c2_213, %c0_214] : memref<8x4x128xf32, #tpu.memory_space<vmem>>, vector<1x2x128xf32>
    %455 = vector.shape_cast %454 : vector<1x2x128xf32> to vector<2x128xf32>
    %456 = vector.shape_cast %453 : vector<2x128xf32> to vector<1x2x128xf32>
    tpu.vector_store %arg14[%c2_212, %c2_213, %c0_214], %456 {strides = array<i32>} : memref<8x4x128xf32, #tpu.memory_space<vmem>>, vector<1x2x128xf32>,
    %457 = vector.extract_strided_slice %432 {offsets = [6, 0], sizes = [2, 128], strides = [1, 1]} : vector<16x256xf32> to vector<2x128xf32>
    %c3_215 = arith.constant 3 : index
    %c0_216 = arith.constant 0 : index
    %c0_217 = arith.constant 0 : index
    %458 = vector.load %arg14[%c3_215, %c0_216, %c0_217] : memref<8x4x128xf32, #tpu.memory_space<vmem>>, vector<1x2x128xf32>
    %459 = vector.shape_cast %458 : vector<1x2x128xf32> to vector<2x128xf32>
    %460 = vector.shape_cast %457 : vector<2x128xf32> to vector<1x2x128xf32>
    tpu.vector_store %arg14[%c3_215, %c0_216, %c0_217], %460 {strides = array<i32>} : memref<8x4x128xf32, #tpu.memory_space<vmem>>, vector<1x2x128xf32>,
    %461 = vector.extract_strided_slice %432 {offsets = [8, 128], sizes = [2, 128], strides = [1, 1]} : vector<16x256xf32> to vector<2x128xf32>
    %c3_218 = arith.constant 3 : index
    %c2_219 = arith.constant 2 : index
    %c0_220 = arith.constant 0 : index
    %462 = vector.load %arg14[%c3_218, %c2_219, %c0_220] : memref<8x4x128xf32, #tpu.memory_space<vmem>>, vector<1x2x128xf32>
    %463 = vector.shape_cast %462 : vector<1x2x128xf32> to vector<2x128xf32>
    %464 = vector.shape_cast %461 : vector<2x128xf32> to vector<1x2x128xf32>
    tpu.vector_store %arg14[%c3_218, %c2_219, %c0_220], %464 {strides = array<i32>} : memref<8x4x128xf32, #tpu.memory_space<vmem>>, vector<1x2x128xf32>,
    %465 = vector.extract_strided_slice %432 {offsets = [8, 0], sizes = [2, 128], strides = [1, 1]} : vector<16x256xf32> to vector<2x128xf32>
    %c4_221 = arith.constant 4 : index
    %c0_222 = arith.constant 0 : index
    %c0_223 = arith.constant 0 : index
    %466 = vector.load %arg14[%c4_221, %c0_222, %c0_223] : memref<8x4x128xf32, #tpu.memory_space<vmem>>, vector<1x2x128xf32>
    %467 = vector.shape_cast %466 : vector<1x2x128xf32> to vector<2x128xf32>
    %468 = vector.shape_cast %465 : vector<2x128xf32> to vector<1x2x128xf32>
    tpu.vector_store %arg14[%c4_221, %c0_222, %c0_223], %468 {strides = array<i32>} : memref<8x4x128xf32, #tpu.memory_space<vmem>>, vector<1x2x128xf32>,
    %469 = vector.extract_strided_slice %432 {offsets = [6, 128], sizes = [2, 128], strides = [1, 1]} : vector<16x256xf32> to vector<2x128xf32>
    %c4_224 = arith.constant 4 : index
    %c2_225 = arith.constant 2 : index
    %c0_226 = arith.constant 0 : index
    %470 = vector.load %arg14[%c4_224, %c2_225, %c0_226] : memref<8x4x128xf32, #tpu.memory_space<vmem>>, vector<1x2x128xf32>
    %471 = vector.shape_cast %470 : vector<1x2x128xf32> to vector<2x128xf32>
    %472 = vector.shape_cast %469 : vector<2x128xf32> to vector<1x2x128xf32>
    tpu.vector_store %arg14[%c4_224, %c2_225, %c0_226], %472 {strides = array<i32>} : memref<8x4x128xf32, #tpu.memory_space<vmem>>, vector<1x2x128xf32>,
    %473 = vector.extract_strided_slice %432 {offsets = [10, 0], sizes = [2, 128], strides = [1, 1]} : vector<16x256xf32> to vector<2x128xf32>
    %c5_227 = arith.constant 5 : index
    %c0_228 = arith.constant 0 : index
    %c0_229 = arith.constant 0 : index
    %474 = vector.load %arg14[%c5_227, %c0_228, %c0_229] : memref<8x4x128xf32, #tpu.memory_space<vmem>>, vector<1x2x128xf32>
    %475 = vector.shape_cast %474 : vector<1x2x128xf32> to vector<2x128xf32>
    %476 = vector.shape_cast %473 : vector<2x128xf32> to vector<1x2x128xf32>
    tpu.vector_store %arg14[%c5_227, %c0_228, %c0_229], %476 {strides = array<i32>} : memref<8x4x128xf32, #tpu.memory_space<vmem>>, vector<1x2x128xf32>,
    %477 = vector.extract_strided_slice %432 {offsets = [4, 128], sizes = [2, 128], strides = [1, 1]} : vector<16x256xf32> to vector<2x128xf32>
    %c5_230 = arith.constant 5 : index
    %c2_231 = arith.constant 2 : index
    %c0_232 = arith.constant 0 : index
    %478 = vector.load %arg14[%c5_230, %c2_231, %c0_232] : memref<8x4x128xf32, #tpu.memory_space<vmem>>, vector<1x2x128xf32>
    %479 = vector.shape_cast %478 : vector<1x2x128xf32> to vector<2x128xf32>
    %480 = vector.shape_cast %477 : vector<2x128xf32> to vector<1x2x128xf32>
    tpu.vector_store %arg14[%c5_230, %c2_231, %c0_232], %480 {strides = array<i32>} : memref<8x4x128xf32, #tpu.memory_space<vmem>>, vector<1x2x128xf32>,
    %481 = vector.extract_strided_slice %432 {offsets = [12, 0], sizes = [2, 128], strides = [1, 1]} : vector<16x256xf32> to vector<2x128xf32>
    %c6_233 = arith.constant 6 : index
    %c0_234 = arith.constant 0 : index
    %c0_235 = arith.constant 0 : index
    %482 = vector.load %arg14[%c6_233, %c0_234, %c0_235] : memref<8x4x128xf32, #tpu.memory_space<vmem>>, vector<1x2x128xf32>
    %483 = vector.shape_cast %482 : vector<1x2x128xf32> to vector<2x128xf32>
    %484 = vector.shape_cast %481 : vector<2x128xf32> to vector<1x2x128xf32>
    tpu.vector_store %arg14[%c6_233, %c0_234, %c0_235], %484 {strides = array<i32>} : memref<8x4x128xf32, #tpu.memory_space<vmem>>, vector<1x2x128xf32>,
    %485 = vector.extract_strided_slice %432 {offsets = [2, 128], sizes = [2, 128], strides = [1, 1]} : vector<16x256xf32> to vector<2x128xf32>
    %c6_236 = arith.constant 6 : index
    %c2_237 = arith.constant 2 : index
    %c0_238 = arith.constant 0 : index
    %486 = vector.load %arg14[%c6_236, %c2_237, %c0_238] : memref<8x4x128xf32, #tpu.memory_space<vmem>>, vector<1x2x128xf32>
    %487 = vector.shape_cast %486 : vector<1x2x128xf32> to vector<2x128xf32>
    %488 = vector.shape_cast %485 : vector<2x128xf32> to vector<1x2x128xf32>
    tpu.vector_store %arg14[%c6_236, %c2_237, %c0_238], %488 {strides = array<i32>} : memref<8x4x128xf32, #tpu.memory_space<vmem>>, vector<1x2x128xf32>,
    %489 = vector.extract_strided_slice %432 {offsets = [14, 0], sizes = [2, 128], strides = [1, 1]} : vector<16x256xf32> to vector<2x128xf32>
    %c7_239 = arith.constant 7 : index
    %c0_240 = arith.constant 0 : index
    %c0_241 = arith.constant 0 : index
    %490 = vector.load %arg14[%c7_239, %c0_240, %c0_241] : memref<8x4x128xf32, #tpu.memory_space<vmem>>, vector<1x2x128xf32>
    %491 = vector.shape_cast %490 : vector<1x2x128xf32> to vector<2x128xf32>
    %492 = vector.shape_cast %489 : vector<2x128xf32> to vector<1x2x128xf32>
    tpu.vector_store %arg14[%c7_239, %c0_240, %c0_241], %492 {strides = array<i32>} : memref<8x4x128xf32, #tpu.memory_space<vmem>>, vector<1x2x128xf32>,
    %493 = vector.extract_strided_slice %432 {offsets = [0, 128], sizes = [2, 128], strides = [1, 1]} : vector<16x256xf32> to vector<2x128xf32>
    %c7_242 = arith.constant 7 : index
    %c2_243 = arith.constant 2 : index
    %c0_244 = arith.constant 0 : index
    %494 = vector.load %arg14[%c7_242, %c2_243, %c0_244] : memref<8x4x128xf32, #tpu.memory_space<vmem>>, vector<1x2x128xf32>
    %495 = vector.shape_cast %494 : vector<1x2x128xf32> to vector<2x128xf32>
    %496 = vector.shape_cast %493 : vector<2x128xf32> to vector<1x2x128xf32>
    tpu.vector_store %arg14[%c7_242, %c2_243, %c0_244], %496 {strides = array<i32>} : memref<8x4x128xf32, #tpu.memory_space<vmem>>, vector<1x2x128xf32>,
    %c0_245 = arith.constant 0 : index
    %c0_246 = arith.constant 0 : index
    %497 = vector.load %arg6[%c0_245, %c0_246] : memref<32x256xf32, #tpu.memory_space<vmem>>, vector<32x256xf32>
    %cst_247 = arith.constant 0.000000e+00 : f32
    %498 = vector.broadcast %cst_247 : f32 to vector<4x32xf32>
    %cst_248 = arith.constant 0.000000e+00 : f32
    %499 = vector.broadcast %cst_248 : f32 to vector<4x32xf32>
    %cst_249 = arith.constant dense<0.000000e+00> : vector<4x256xf32>
    %500 = tpu.matmul %498, %497, %cst_249 {dimension_numbers = #tpu.dot_dimension_numbers<[1], [0], [0], [1], [0, 0, 1, 1], [], []>} : vector<4x32xf32>, vector<32x256xf32>, vector<4x256xf32> -> vector<4x256xf32>
    %c0_250 = arith.constant 0 : index
    %c0_251 = arith.constant 0 : index
    %c0_252 = arith.constant 0 : index
    %501 = vector.load %arg14[%c0_250, %c0_251, %c0_252] : memref<8x4x128xf32, #tpu.memory_space<vmem>>, vector<1x4x128xf32>
    %502 = vector.shape_cast %501 : vector<1x4x128xf32> to vector<4x128xf32>
    %503 = vector.extract_strided_slice %500 {offsets = [0, 0], sizes = [4, 128], strides = [1, 1]} : vector<4x256xf32> to vector<4x128xf32>
    %504 = vector.extract_strided_slice %500 {offsets = [0, 128], sizes = [4, 128], strides = [1, 1]} : vector<4x256xf32> to vector<4x128xf32>
    %505 = arith.select %2, %503, %504 : vector<4x128xi1>, vector<4x128xf32>
    %506 = arith.addf %502, %505 : vector<4x128xf32>
    %507 = vector.extract_strided_slice %506 {offsets = [0, 0], sizes = [4, 32], strides = [1, 1]} : vector<4x128xf32> to vector<4x32xf32>
    %cst_253 = arith.constant 5.000000e-01 : f32
    %508 = vector.broadcast %cst_253 : f32 to vector<4x32xf32>
    %509 = arith.mulf %508, %507 : vector<4x32xf32>
    %510 = math.tanh %509 : vector<4x32xf32>
    %cst_254 = arith.constant 5.000000e-01 : f32
    %511 = vector.broadcast %cst_254 : f32 to vector<4x32xf32>
    %512 = arith.mulf %511, %510 : vector<4x32xf32>
    %cst_255 = arith.constant 5.000000e-01 : f32
    %513 = vector.broadcast %cst_255 : f32 to vector<4x32xf32>
    %514 = arith.addf %512, %513 : vector<4x32xf32>
    %515 = vector.extract_strided_slice %506 {offsets = [0, 32], sizes = [4, 32], strides = [1, 1]} : vector<4x128xf32> to vector<4x32xf32>
    %cst_256 = arith.constant 5.000000e-01 : f32
    %516 = vector.broadcast %cst_256 : f32 to vector<4x32xf32>
    %517 = arith.mulf %516, %515 : vector<4x32xf32>
    %518 = math.tanh %517 : vector<4x32xf32>
    %cst_257 = arith.constant 5.000000e-01 : f32
    %519 = vector.broadcast %cst_257 : f32 to vector<4x32xf32>
    %520 = arith.mulf %519, %518 : vector<4x32xf32>
    %cst_258 = arith.constant 5.000000e-01 : f32
    %521 = vector.broadcast %cst_258 : f32 to vector<4x32xf32>
    %522 = arith.addf %520, %521 : vector<4x32xf32>
    %523 = vector.extract_strided_slice %506 {offsets = [0, 64], sizes = [4, 32], strides = [1, 1]} : vector<4x128xf32> to vector<4x32xf32>
    %524 = math.tanh %523 : vector<4x32xf32>
    %525 = vector.extract_strided_slice %506 {offsets = [0, 96], sizes = [4, 32], strides = [1, 1]} : vector<4x128xf32> to vector<4x32xf32>
    %cst_259 = arith.constant 5.000000e-01 : f32
    %526 = vector.broadcast %cst_259 : f32 to vector<4x32xf32>
    %527 = arith.mulf %526, %525 : vector<4x32xf32>
    %528 = math.tanh %527 : vector<4x32xf32>
    %cst_260 = arith.constant 5.000000e-01 : f32
    %529 = vector.broadcast %cst_260 : f32 to vector<4x32xf32>
    %530 = arith.mulf %529, %528 : vector<4x32xf32>
    %cst_261 = arith.constant 5.000000e-01 : f32
    %531 = vector.broadcast %cst_261 : f32 to vector<4x32xf32>
    %532 = arith.addf %530, %531 : vector<4x32xf32>
    %533 = arith.mulf %522, %499 : vector<4x32xf32>
    %534 = arith.mulf %514, %524 : vector<4x32xf32>
    %535 = arith.addf %533, %534 : vector<4x32xf32>
    %536 = math.tanh %535 : vector<4x32xf32>
    %537 = arith.mulf %532, %536 : vector<4x32xf32>
    %538 = vector.extract_strided_slice %537 {offsets = [0, 0], sizes = [2, 32], strides = [1, 1]} : vector<4x32xf32> to vector<2x32xf32>
    %c0_262 = arith.constant 0 : index
    %c0_263 = arith.constant 0 : index
    %539 = vector.load %arg10[%c0_262, %c0_263] : memref<16x64xf32, #tpu.memory_space<vmem>>, vector<2x32xf32>
    tpu.vector_store %arg10[%c0_262, %c0_263], %538 {strides = array<i32>} : memref<16x64xf32, #tpu.memory_space<vmem>>, vector<2x32xf32>,
    %540 = vector.extract_strided_slice %537 {offsets = [2, 0], sizes = [2, 32], strides = [1, 1]} : vector<4x32xf32> to vector<2x32xf32>
    %c14_264 = arith.constant 14 : index
    %c32_265 = arith.constant 32 : index
    %541 = vector.load %arg10[%c14_264, %c32_265] : memref<16x64xf32, #tpu.memory_space<vmem>>, vector<2x32xf32>
    tpu.vector_store %arg10[%c14_264, %c32_265], %540 {strides = array<i32>} : memref<16x64xf32, #tpu.memory_space<vmem>>, vector<2x32xf32>,
    %cst_266 = arith.constant dense<0.000000e+00> : vector<4x256xf32>
    %542 = tpu.matmul %537, %497, %cst_266 {dimension_numbers = #tpu.dot_dimension_numbers<[1], [0], [0], [1], [0, 0, 1, 1], [], []>} : vector<4x32xf32>, vector<32x256xf32>, vector<4x256xf32> -> vector<4x256xf32>
    %c1_267 = arith.constant 1 : index
    %c0_268 = arith.constant 0 : index
    %c0_269 = arith.constant 0 : index
    %543 = vector.load %arg14[%c1_267, %c0_268, %c0_269] : memref<8x4x128xf32, #tpu.memory_space<vmem>>, vector<1x4x128xf32>
    %544 = vector.shape_cast %543 : vector<1x4x128xf32> to vector<4x128xf32>
    %545 = vector.extract_strided_slice %542 {offsets = [0, 0], sizes = [4, 128], strides = [1, 1]} : vector<4x256xf32> to vector<4x128xf32>
    %546 = vector.extract_strided_slice %542 {offsets = [0, 128], sizes = [4, 128], strides = [1, 1]} : vector<4x256xf32> to vector<4x128xf32>
    %547 = arith.select %2, %545, %546 : vector<4x128xi1>, vector<4x128xf32>
    %548 = arith.addf %544, %547 : vector<4x128xf32>
    %549 = vector.extract_strided_slice %548 {offsets = [0, 0], sizes = [4, 32], strides = [1, 1]} : vector<4x128xf32> to vector<4x32xf32>
    %cst_270 = arith.constant 5.000000e-01 : f32
    %550 = vector.broadcast %cst_270 : f32 to vector<4x32xf32>
    %551 = arith.mulf %550, %549 : vector<4x32xf32>
    %552 = math.tanh %551 : vector<4x32xf32>
    %cst_271 = arith.constant 5.000000e-01 : f32
    %553 = vector.broadcast %cst_271 : f32 to vector<4x32xf32>
    %554 = arith.mulf %553, %552 : vector<4x32xf32>
    %cst_272 = arith.constant 5.000000e-01 : f32
    %555 = vector.broadcast %cst_272 : f32 to vector<4x32xf32>
    %556 = arith.addf %554, %555 : vector<4x32xf32>
    %557 = vector.extract_strided_slice %548 {offsets = [0, 32], sizes = [4, 32], strides = [1, 1]} : vector<4x128xf32> to vector<4x32xf32>
    %cst_273 = arith.constant 5.000000e-01 : f32
    %558 = vector.broadcast %cst_273 : f32 to vector<4x32xf32>
    %559 = arith.mulf %558, %557 : vector<4x32xf32>
    %560 = math.tanh %559 : vector<4x32xf32>
    %cst_274 = arith.constant 5.000000e-01 : f32
    %561 = vector.broadcast %cst_274 : f32 to vector<4x32xf32>
    %562 = arith.mulf %561, %560 : vector<4x32xf32>
    %cst_275 = arith.constant 5.000000e-01 : f32
    %563 = vector.broadcast %cst_275 : f32 to vector<4x32xf32>
    %564 = arith.addf %562, %563 : vector<4x32xf32>
    %565 = vector.extract_strided_slice %548 {offsets = [0, 64], sizes = [4, 32], strides = [1, 1]} : vector<4x128xf32> to vector<4x32xf32>
    %566 = math.tanh %565 : vector<4x32xf32>
    %567 = vector.extract_strided_slice %548 {offsets = [0, 96], sizes = [4, 32], strides = [1, 1]} : vector<4x128xf32> to vector<4x32xf32>
    %cst_276 = arith.constant 5.000000e-01 : f32
    %568 = vector.broadcast %cst_276 : f32 to vector<4x32xf32>
    %569 = arith.mulf %568, %567 : vector<4x32xf32>
    %570 = math.tanh %569 : vector<4x32xf32>
    %cst_277 = arith.constant 5.000000e-01 : f32
    %571 = vector.broadcast %cst_277 : f32 to vector<4x32xf32>
    %572 = arith.mulf %571, %570 : vector<4x32xf32>
    %cst_278 = arith.constant 5.000000e-01 : f32
    %573 = vector.broadcast %cst_278 : f32 to vector<4x32xf32>
    %574 = arith.addf %572, %573 : vector<4x32xf32>
    %575 = arith.mulf %564, %535 : vector<4x32xf32>
    %576 = arith.mulf %556, %566 : vector<4x32xf32>
    %577 = arith.addf %575, %576 : vector<4x32xf32>
    %578 = math.tanh %577 : vector<4x32xf32>
    %579 = arith.mulf %574, %578 : vector<4x32xf32>
    %580 = vector.extract_strided_slice %579 {offsets = [0, 0], sizes = [2, 32], strides = [1, 1]} : vector<4x32xf32> to vector<2x32xf32>
    %c2_279 = arith.constant 2 : index
    %c0_280 = arith.constant 0 : index
    %581 = vector.load %arg10[%c2_279, %c0_280] : memref<16x64xf32, #tpu.memory_space<vmem>>, vector<2x32xf32>
    tpu.vector_store %arg10[%c2_279, %c0_280], %580 {strides = array<i32>} : memref<16x64xf32, #tpu.memory_space<vmem>>, vector<2x32xf32>,
    %582 = vector.extract_strided_slice %579 {offsets = [2, 0], sizes = [2, 32], strides = [1, 1]} : vector<4x32xf32> to vector<2x32xf32>
    %c12_281 = arith.constant 12 : index
    %c32_282 = arith.constant 32 : index
    %583 = vector.load %arg10[%c12_281, %c32_282] : memref<16x64xf32, #tpu.memory_space<vmem>>, vector<2x32xf32>
    tpu.vector_store %arg10[%c12_281, %c32_282], %582 {strides = array<i32>} : memref<16x64xf32, #tpu.memory_space<vmem>>, vector<2x32xf32>,
    %cst_283 = arith.constant dense<0.000000e+00> : vector<4x256xf32>
    %584 = tpu.matmul %579, %497, %cst_283 {dimension_numbers = #tpu.dot_dimension_numbers<[1], [0], [0], [1], [0, 0, 1, 1], [], []>} : vector<4x32xf32>, vector<32x256xf32>, vector<4x256xf32> -> vector<4x256xf32>
    %c2_284 = arith.constant 2 : index
    %c0_285 = arith.constant 0 : index
    %c0_286 = arith.constant 0 : index
    %585 = vector.load %arg14[%c2_284, %c0_285, %c0_286] : memref<8x4x128xf32, #tpu.memory_space<vmem>>, vector<1x4x128xf32>
    %586 = vector.shape_cast %585 : vector<1x4x128xf32> to vector<4x128xf32>
    %587 = vector.extract_strided_slice %584 {offsets = [0, 0], sizes = [4, 128], strides = [1, 1]} : vector<4x256xf32> to vector<4x128xf32>
    %588 = vector.extract_strided_slice %584 {offsets = [0, 128], sizes = [4, 128], strides = [1, 1]} : vector<4x256xf32> to vector<4x128xf32>
    %589 = arith.select %2, %587, %588 : vector<4x128xi1>, vector<4x128xf32>
    %590 = arith.addf %586, %589 : vector<4x128xf32>
    %591 = vector.extract_strided_slice %590 {offsets = [0, 0], sizes = [4, 32], strides = [1, 1]} : vector<4x128xf32> to vector<4x32xf32>
    %cst_287 = arith.constant 5.000000e-01 : f32
    %592 = vector.broadcast %cst_287 : f32 to vector<4x32xf32>
    %593 = arith.mulf %592, %591 : vector<4x32xf32>
    %594 = math.tanh %593 : vector<4x32xf32>
    %cst_288 = arith.constant 5.000000e-01 : f32
    %595 = vector.broadcast %cst_288 : f32 to vector<4x32xf32>
    %596 = arith.mulf %595, %594 : vector<4x32xf32>
    %cst_289 = arith.constant 5.000000e-01 : f32
    %597 = vector.broadcast %cst_289 : f32 to vector<4x32xf32>
    %598 = arith.addf %596, %597 : vector<4x32xf32>
    %599 = vector.extract_strided_slice %590 {offsets = [0, 32], sizes = [4, 32], strides = [1, 1]} : vector<4x128xf32> to vector<4x32xf32>
    %cst_290 = arith.constant 5.000000e-01 : f32
    %600 = vector.broadcast %cst_290 : f32 to vector<4x32xf32>
    %601 = arith.mulf %600, %599 : vector<4x32xf32>
    %602 = math.tanh %601 : vector<4x32xf32>
    %cst_291 = arith.constant 5.000000e-01 : f32
    %603 = vector.broadcast %cst_291 : f32 to vector<4x32xf32>
    %604 = arith.mulf %603, %602 : vector<4x32xf32>
    %cst_292 = arith.constant 5.000000e-01 : f32
    %605 = vector.broadcast %cst_292 : f32 to vector<4x32xf32>
    %606 = arith.addf %604, %605 : vector<4x32xf32>
    %607 = vector.extract_strided_slice %590 {offsets = [0, 64], sizes = [4, 32], strides = [1, 1]} : vector<4x128xf32> to vector<4x32xf32>
    %608 = math.tanh %607 : vector<4x32xf32>
    %609 = vector.extract_strided_slice %590 {offsets = [0, 96], sizes = [4, 32], strides = [1, 1]} : vector<4x128xf32> to vector<4x32xf32>
    %cst_293 = arith.constant 5.000000e-01 : f32
    %610 = vector.broadcast %cst_293 : f32 to vector<4x32xf32>
    %611 = arith.mulf %610, %609 : vector<4x32xf32>
    %612 = math.tanh %611 : vector<4x32xf32>
    %cst_294 = arith.constant 5.000000e-01 : f32
    %613 = vector.broadcast %cst_294 : f32 to vector<4x32xf32>
    %614 = arith.mulf %613, %612 : vector<4x32xf32>
    %cst_295 = arith.constant 5.000000e-01 : f32
    %615 = vector.broadcast %cst_295 : f32 to vector<4x32xf32>
    %616 = arith.addf %614, %615 : vector<4x32xf32>
    %617 = arith.mulf %606, %577 : vector<4x32xf32>
    %618 = arith.mulf %598, %608 : vector<4x32xf32>
    %619 = arith.addf %617, %618 : vector<4x32xf32>
    %620 = math.tanh %619 : vector<4x32xf32>
    %621 = arith.mulf %616, %620 : vector<4x32xf32>
    %622 = vector.extract_strided_slice %621 {offsets = [0, 0], sizes = [2, 32], strides = [1, 1]} : vector<4x32xf32> to vector<2x32xf32>
    %c4_296 = arith.constant 4 : index
    %c0_297 = arith.constant 0 : index
    %623 = vector.load %arg10[%c4_296, %c0_297] : memref<16x64xf32, #tpu.memory_space<vmem>>, vector<2x32xf32>
    tpu.vector_store %arg10[%c4_296, %c0_297], %622 {strides = array<i32>} : memref<16x64xf32, #tpu.memory_space<vmem>>, vector<2x32xf32>,
    %624 = vector.extract_strided_slice %621 {offsets = [2, 0], sizes = [2, 32], strides = [1, 1]} : vector<4x32xf32> to vector<2x32xf32>
    %c10_298 = arith.constant 10 : index
    %c32_299 = arith.constant 32 : index
    %625 = vector.load %arg10[%c10_298, %c32_299] : memref<16x64xf32, #tpu.memory_space<vmem>>, vector<2x32xf32>
    tpu.vector_store %arg10[%c10_298, %c32_299], %624 {strides = array<i32>} : memref<16x64xf32, #tpu.memory_space<vmem>>, vector<2x32xf32>,
    %cst_300 = arith.constant dense<0.000000e+00> : vector<4x256xf32>
    %626 = tpu.matmul %621, %497, %cst_300 {dimension_numbers = #tpu.dot_dimension_numbers<[1], [0], [0], [1], [0, 0, 1, 1], [], []>} : vector<4x32xf32>, vector<32x256xf32>, vector<4x256xf32> -> vector<4x256xf32>
    %c3_301 = arith.constant 3 : index
    %c0_302 = arith.constant 0 : index
    %c0_303 = arith.constant 0 : index
    %627 = vector.load %arg14[%c3_301, %c0_302, %c0_303] : memref<8x4x128xf32, #tpu.memory_space<vmem>>, vector<1x4x128xf32>
    %628 = vector.shape_cast %627 : vector<1x4x128xf32> to vector<4x128xf32>
    %629 = vector.extract_strided_slice %626 {offsets = [0, 0], sizes = [4, 128], strides = [1, 1]} : vector<4x256xf32> to vector<4x128xf32>
    %630 = vector.extract_strided_slice %626 {offsets = [0, 128], sizes = [4, 128], strides = [1, 1]} : vector<4x256xf32> to vector<4x128xf32>
    %631 = arith.select %2, %629, %630 : vector<4x128xi1>, vector<4x128xf32>
    %632 = arith.addf %628, %631 : vector<4x128xf32>
    %633 = vector.extract_strided_slice %632 {offsets = [0, 0], sizes = [4, 32], strides = [1, 1]} : vector<4x128xf32> to vector<4x32xf32>
    %cst_304 = arith.constant 5.000000e-01 : f32
    %634 = vector.broadcast %cst_304 : f32 to vector<4x32xf32>
    %635 = arith.mulf %634, %633 : vector<4x32xf32>
    %636 = math.tanh %635 : vector<4x32xf32>
    %cst_305 = arith.constant 5.000000e-01 : f32
    %637 = vector.broadcast %cst_305 : f32 to vector<4x32xf32>
    %638 = arith.mulf %637, %636 : vector<4x32xf32>
    %cst_306 = arith.constant 5.000000e-01 : f32
    %639 = vector.broadcast %cst_306 : f32 to vector<4x32xf32>
    %640 = arith.addf %638, %639 : vector<4x32xf32>
    %641 = vector.extract_strided_slice %632 {offsets = [0, 32], sizes = [4, 32], strides = [1, 1]} : vector<4x128xf32> to vector<4x32xf32>
    %cst_307 = arith.constant 5.000000e-01 : f32
    %642 = vector.broadcast %cst_307 : f32 to vector<4x32xf32>
    %643 = arith.mulf %642, %641 : vector<4x32xf32>
    %644 = math.tanh %643 : vector<4x32xf32>
    %cst_308 = arith.constant 5.000000e-01 : f32
    %645 = vector.broadcast %cst_308 : f32 to vector<4x32xf32>
    %646 = arith.mulf %645, %644 : vector<4x32xf32>
    %cst_309 = arith.constant 5.000000e-01 : f32
    %647 = vector.broadcast %cst_309 : f32 to vector<4x32xf32>
    %648 = arith.addf %646, %647 : vector<4x32xf32>
    %649 = vector.extract_strided_slice %632 {offsets = [0, 64], sizes = [4, 32], strides = [1, 1]} : vector<4x128xf32> to vector<4x32xf32>
    %650 = math.tanh %649 : vector<4x32xf32>
    %651 = vector.extract_strided_slice %632 {offsets = [0, 96], sizes = [4, 32], strides = [1, 1]} : vector<4x128xf32> to vector<4x32xf32>
    %cst_310 = arith.constant 5.000000e-01 : f32
    %652 = vector.broadcast %cst_310 : f32 to vector<4x32xf32>
    %653 = arith.mulf %652, %651 : vector<4x32xf32>
    %654 = math.tanh %653 : vector<4x32xf32>
    %cst_311 = arith.constant 5.000000e-01 : f32
    %655 = vector.broadcast %cst_311 : f32 to vector<4x32xf32>
    %656 = arith.mulf %655, %654 : vector<4x32xf32>
    %cst_312 = arith.constant 5.000000e-01 : f32
    %657 = vector.broadcast %cst_312 : f32 to vector<4x32xf32>
    %658 = arith.addf %656, %657 : vector<4x32xf32>
    %659 = arith.mulf %648, %619 : vector<4x32xf32>
    %660 = arith.mulf %640, %650 : vector<4x32xf32>
    %661 = arith.addf %659, %660 : vector<4x32xf32>
    %662 = math.tanh %661 : vector<4x32xf32>
    %663 = arith.mulf %658, %662 : vector<4x32xf32>
    %664 = vector.extract_strided_slice %663 {offsets = [0, 0], sizes = [2, 32], strides = [1, 1]} : vector<4x32xf32> to vector<2x32xf32>
    %c6_313 = arith.constant 6 : index
    %c0_314 = arith.constant 0 : index
    %665 = vector.load %arg10[%c6_313, %c0_314] : memref<16x64xf32, #tpu.memory_space<vmem>>, vector<2x32xf32>
    tpu.vector_store %arg10[%c6_313, %c0_314], %664 {strides = array<i32>} : memref<16x64xf32, #tpu.memory_space<vmem>>, vector<2x32xf32>,
    %666 = vector.extract_strided_slice %663 {offsets = [2, 0], sizes = [2, 32], strides = [1, 1]} : vector<4x32xf32> to vector<2x32xf32>
    %c8_315 = arith.constant 8 : index
    %c32_316 = arith.constant 32 : index
    %667 = vector.load %arg10[%c8_315, %c32_316] : memref<16x64xf32, #tpu.memory_space<vmem>>, vector<2x32xf32>
    tpu.vector_store %arg10[%c8_315, %c32_316], %666 {strides = array<i32>} : memref<16x64xf32, #tpu.memory_space<vmem>>, vector<2x32xf32>,
    %cst_317 = arith.constant dense<0.000000e+00> : vector<4x256xf32>
    %668 = tpu.matmul %663, %497, %cst_317 {dimension_numbers = #tpu.dot_dimension_numbers<[1], [0], [0], [1], [0, 0, 1, 1], [], []>} : vector<4x32xf32>, vector<32x256xf32>, vector<4x256xf32> -> vector<4x256xf32>
    %c4_318 = arith.constant 4 : index
    %c0_319 = arith.constant 0 : index
    %c0_320 = arith.constant 0 : index
    %669 = vector.load %arg14[%c4_318, %c0_319, %c0_320] : memref<8x4x128xf32, #tpu.memory_space<vmem>>, vector<1x4x128xf32>
    %670 = vector.shape_cast %669 : vector<1x4x128xf32> to vector<4x128xf32>
    %671 = vector.extract_strided_slice %668 {offsets = [0, 0], sizes = [4, 128], strides = [1, 1]} : vector<4x256xf32> to vector<4x128xf32>
    %672 = vector.extract_strided_slice %668 {offsets = [0, 128], sizes = [4, 128], strides = [1, 1]} : vector<4x256xf32> to vector<4x128xf32>
    %673 = arith.select %2, %671, %672 : vector<4x128xi1>, vector<4x128xf32>
    %674 = arith.addf %670, %673 : vector<4x128xf32>
    %675 = vector.extract_strided_slice %674 {offsets = [0, 0], sizes = [4, 32], strides = [1, 1]} : vector<4x128xf32> to vector<4x32xf32>
    %cst_321 = arith.constant 5.000000e-01 : f32
    %676 = vector.broadcast %cst_321 : f32 to vector<4x32xf32>
    %677 = arith.mulf %676, %675 : vector<4x32xf32>
    %678 = math.tanh %677 : vector<4x32xf32>
    %cst_322 = arith.constant 5.000000e-01 : f32
    %679 = vector.broadcast %cst_322 : f32 to vector<4x32xf32>
    %680 = arith.mulf %679, %678 : vector<4x32xf32>
    %cst_323 = arith.constant 5.000000e-01 : f32
    %681 = vector.broadcast %cst_323 : f32 to vector<4x32xf32>
    %682 = arith.addf %680, %681 : vector<4x32xf32>
    %683 = vector.extract_strided_slice %674 {offsets = [0, 32], sizes = [4, 32], strides = [1, 1]} : vector<4x128xf32> to vector<4x32xf32>
    %cst_324 = arith.constant 5.000000e-01 : f32
    %684 = vector.broadcast %cst_324 : f32 to vector<4x32xf32>
    %685 = arith.mulf %684, %683 : vector<4x32xf32>
    %686 = math.tanh %685 : vector<4x32xf32>
    %cst_325 = arith.constant 5.000000e-01 : f32
    %687 = vector.broadcast %cst_325 : f32 to vector<4x32xf32>
    %688 = arith.mulf %687, %686 : vector<4x32xf32>
    %cst_326 = arith.constant 5.000000e-01 : f32
    %689 = vector.broadcast %cst_326 : f32 to vector<4x32xf32>
    %690 = arith.addf %688, %689 : vector<4x32xf32>
    %691 = vector.extract_strided_slice %674 {offsets = [0, 64], sizes = [4, 32], strides = [1, 1]} : vector<4x128xf32> to vector<4x32xf32>
    %692 = math.tanh %691 : vector<4x32xf32>
    %693 = vector.extract_strided_slice %674 {offsets = [0, 96], sizes = [4, 32], strides = [1, 1]} : vector<4x128xf32> to vector<4x32xf32>
    %cst_327 = arith.constant 5.000000e-01 : f32
    %694 = vector.broadcast %cst_327 : f32 to vector<4x32xf32>
    %695 = arith.mulf %694, %693 : vector<4x32xf32>
    %696 = math.tanh %695 : vector<4x32xf32>
    %cst_328 = arith.constant 5.000000e-01 : f32
    %697 = vector.broadcast %cst_328 : f32 to vector<4x32xf32>
    %698 = arith.mulf %697, %696 : vector<4x32xf32>
    %cst_329 = arith.constant 5.000000e-01 : f32
    %699 = vector.broadcast %cst_329 : f32 to vector<4x32xf32>
    %700 = arith.addf %698, %699 : vector<4x32xf32>
    %701 = arith.mulf %690, %661 : vector<4x32xf32>
    %702 = arith.mulf %682, %692 : vector<4x32xf32>
    %703 = arith.addf %701, %702 : vector<4x32xf32>
    %704 = math.tanh %703 : vector<4x32xf32>
    %705 = arith.mulf %700, %704 : vector<4x32xf32>
    %706 = vector.extract_strided_slice %705 {offsets = [0, 0], sizes = [2, 32], strides = [1, 1]} : vector<4x32xf32> to vector<2x32xf32>
    %c8_330 = arith.constant 8 : index
    %c0_331 = arith.constant 0 : index
    %707 = vector.load %arg10[%c8_330, %c0_331] : memref<16x64xf32, #tpu.memory_space<vmem>>, vector<2x32xf32>
    tpu.vector_store %arg10[%c8_330, %c0_331], %706 {strides = array<i32>} : memref<16x64xf32, #tpu.memory_space<vmem>>, vector<2x32xf32>,
    %708 = vector.extract_strided_slice %705 {offsets = [2, 0], sizes = [2, 32], strides = [1, 1]} : vector<4x32xf32> to vector<2x32xf32>
    %c6_332 = arith.constant 6 : index
    %c32_333 = arith.constant 32 : index
    %709 = vector.load %arg10[%c6_332, %c32_333] : memref<16x64xf32, #tpu.memory_space<vmem>>, vector<2x32xf32>
    tpu.vector_store %arg10[%c6_332, %c32_333], %708 {strides = array<i32>} : memref<16x64xf32, #tpu.memory_space<vmem>>, vector<2x32xf32>,
    %cst_334 = arith.constant dense<0.000000e+00> : vector<4x256xf32>
    %710 = tpu.matmul %705, %497, %cst_334 {dimension_numbers = #tpu.dot_dimension_numbers<[1], [0], [0], [1], [0, 0, 1, 1], [], []>} : vector<4x32xf32>, vector<32x256xf32>, vector<4x256xf32> -> vector<4x256xf32>
    %c5_335 = arith.constant 5 : index
    %c0_336 = arith.constant 0 : index
    %c0_337 = arith.constant 0 : index
    %711 = vector.load %arg14[%c5_335, %c0_336, %c0_337] : memref<8x4x128xf32, #tpu.memory_space<vmem>>, vector<1x4x128xf32>
    %712 = vector.shape_cast %711 : vector<1x4x128xf32> to vector<4x128xf32>
    %713 = vector.extract_strided_slice %710 {offsets = [0, 0], sizes = [4, 128], strides = [1, 1]} : vector<4x256xf32> to vector<4x128xf32>
    %714 = vector.extract_strided_slice %710 {offsets = [0, 128], sizes = [4, 128], strides = [1, 1]} : vector<4x256xf32> to vector<4x128xf32>
    %715 = arith.select %2, %713, %714 : vector<4x128xi1>, vector<4x128xf32>
    %716 = arith.addf %712, %715 : vector<4x128xf32>
    %717 = vector.extract_strided_slice %716 {offsets = [0, 0], sizes = [4, 32], strides = [1, 1]} : vector<4x128xf32> to vector<4x32xf32>
    %cst_338 = arith.constant 5.000000e-01 : f32
    %718 = vector.broadcast %cst_338 : f32 to vector<4x32xf32>
    %719 = arith.mulf %718, %717 : vector<4x32xf32>
    %720 = math.tanh %719 : vector<4x32xf32>
    %cst_339 = arith.constant 5.000000e-01 : f32
    %721 = vector.broadcast %cst_339 : f32 to vector<4x32xf32>
    %722 = arith.mulf %721, %720 : vector<4x32xf32>
    %cst_340 = arith.constant 5.000000e-01 : f32
    %723 = vector.broadcast %cst_340 : f32 to vector<4x32xf32>
    %724 = arith.addf %722, %723 : vector<4x32xf32>
    %725 = vector.extract_strided_slice %716 {offsets = [0, 32], sizes = [4, 32], strides = [1, 1]} : vector<4x128xf32> to vector<4x32xf32>
    %cst_341 = arith.constant 5.000000e-01 : f32
    %726 = vector.broadcast %cst_341 : f32 to vector<4x32xf32>
    %727 = arith.mulf %726, %725 : vector<4x32xf32>
    %728 = math.tanh %727 : vector<4x32xf32>
    %cst_342 = arith.constant 5.000000e-01 : f32
    %729 = vector.broadcast %cst_342 : f32 to vector<4x32xf32>
    %730 = arith.mulf %729, %728 : vector<4x32xf32>
    %cst_343 = arith.constant 5.000000e-01 : f32
    %731 = vector.broadcast %cst_343 : f32 to vector<4x32xf32>
    %732 = arith.addf %730, %731 : vector<4x32xf32>
    %733 = vector.extract_strided_slice %716 {offsets = [0, 64], sizes = [4, 32], strides = [1, 1]} : vector<4x128xf32> to vector<4x32xf32>
    %734 = math.tanh %733 : vector<4x32xf32>
    %735 = vector.extract_strided_slice %716 {offsets = [0, 96], sizes = [4, 32], strides = [1, 1]} : vector<4x128xf32> to vector<4x32xf32>
    %cst_344 = arith.constant 5.000000e-01 : f32
    %736 = vector.broadcast %cst_344 : f32 to vector<4x32xf32>
    %737 = arith.mulf %736, %735 : vector<4x32xf32>
    %738 = math.tanh %737 : vector<4x32xf32>
    %cst_345 = arith.constant 5.000000e-01 : f32
    %739 = vector.broadcast %cst_345 : f32 to vector<4x32xf32>
    %740 = arith.mulf %739, %738 : vector<4x32xf32>
    %cst_346 = arith.constant 5.000000e-01 : f32
    %741 = vector.broadcast %cst_346 : f32 to vector<4x32xf32>
    %742 = arith.addf %740, %741 : vector<4x32xf32>
    %743 = arith.mulf %732, %703 : vector<4x32xf32>
    %744 = arith.mulf %724, %734 : vector<4x32xf32>
    %745 = arith.addf %743, %744 : vector<4x32xf32>
    %746 = math.tanh %745 : vector<4x32xf32>
    %747 = arith.mulf %742, %746 : vector<4x32xf32>
    %748 = vector.extract_strided_slice %747 {offsets = [0, 0], sizes = [2, 32], strides = [1, 1]} : vector<4x32xf32> to vector<2x32xf32>
    %c10_347 = arith.constant 10 : index
    %c0_348 = arith.constant 0 : index
    %749 = vector.load %arg10[%c10_347, %c0_348] : memref<16x64xf32, #tpu.memory_space<vmem>>, vector<2x32xf32>
    tpu.vector_store %arg10[%c10_347, %c0_348], %748 {strides = array<i32>} : memref<16x64xf32, #tpu.memory_space<vmem>>, vector<2x32xf32>,
    %750 = vector.extract_strided_slice %747 {offsets = [2, 0], sizes = [2, 32], strides = [1, 1]} : vector<4x32xf32> to vector<2x32xf32>
    %c4_349 = arith.constant 4 : index
    %c32_350 = arith.constant 32 : index
    %751 = vector.load %arg10[%c4_349, %c32_350] : memref<16x64xf32, #tpu.memory_space<vmem>>, vector<2x32xf32>
    tpu.vector_store %arg10[%c4_349, %c32_350], %750 {strides = array<i32>} : memref<16x64xf32, #tpu.memory_space<vmem>>, vector<2x32xf32>,
    %cst_351 = arith.constant dense<0.000000e+00> : vector<4x256xf32>
    %752 = tpu.matmul %747, %497, %cst_351 {dimension_numbers = #tpu.dot_dimension_numbers<[1], [0], [0], [1], [0, 0, 1, 1], [], []>} : vector<4x32xf32>, vector<32x256xf32>, vector<4x256xf32> -> vector<4x256xf32>
    %c6_352 = arith.constant 6 : index
    %c0_353 = arith.constant 0 : index
    %c0_354 = arith.constant 0 : index
    %753 = vector.load %arg14[%c6_352, %c0_353, %c0_354] : memref<8x4x128xf32, #tpu.memory_space<vmem>>, vector<1x4x128xf32>
    %754 = vector.shape_cast %753 : vector<1x4x128xf32> to vector<4x128xf32>
    %755 = vector.extract_strided_slice %752 {offsets = [0, 0], sizes = [4, 128], strides = [1, 1]} : vector<4x256xf32> to vector<4x128xf32>
    %756 = vector.extract_strided_slice %752 {offsets = [0, 128], sizes = [4, 128], strides = [1, 1]} : vector<4x256xf32> to vector<4x128xf32>
    %757 = arith.select %2, %755, %756 : vector<4x128xi1>, vector<4x128xf32>
    %758 = arith.addf %754, %757 : vector<4x128xf32>
    %759 = vector.extract_strided_slice %758 {offsets = [0, 0], sizes = [4, 32], strides = [1, 1]} : vector<4x128xf32> to vector<4x32xf32>
    %cst_355 = arith.constant 5.000000e-01 : f32
    %760 = vector.broadcast %cst_355 : f32 to vector<4x32xf32>
    %761 = arith.mulf %760, %759 : vector<4x32xf32>
    %762 = math.tanh %761 : vector<4x32xf32>
    %cst_356 = arith.constant 5.000000e-01 : f32
    %763 = vector.broadcast %cst_356 : f32 to vector<4x32xf32>
    %764 = arith.mulf %763, %762 : vector<4x32xf32>
    %cst_357 = arith.constant 5.000000e-01 : f32
    %765 = vector.broadcast %cst_357 : f32 to vector<4x32xf32>
    %766 = arith.addf %764, %765 : vector<4x32xf32>
    %767 = vector.extract_strided_slice %758 {offsets = [0, 32], sizes = [4, 32], strides = [1, 1]} : vector<4x128xf32> to vector<4x32xf32>
    %cst_358 = arith.constant 5.000000e-01 : f32
    %768 = vector.broadcast %cst_358 : f32 to vector<4x32xf32>
    %769 = arith.mulf %768, %767 : vector<4x32xf32>
    %770 = math.tanh %769 : vector<4x32xf32>
    %cst_359 = arith.constant 5.000000e-01 : f32
    %771 = vector.broadcast %cst_359 : f32 to vector<4x32xf32>
    %772 = arith.mulf %771, %770 : vector<4x32xf32>
    %cst_360 = arith.constant 5.000000e-01 : f32
    %773 = vector.broadcast %cst_360 : f32 to vector<4x32xf32>
    %774 = arith.addf %772, %773 : vector<4x32xf32>
    %775 = vector.extract_strided_slice %758 {offsets = [0, 64], sizes = [4, 32], strides = [1, 1]} : vector<4x128xf32> to vector<4x32xf32>
    %776 = math.tanh %775 : vector<4x32xf32>
    %777 = vector.extract_strided_slice %758 {offsets = [0, 96], sizes = [4, 32], strides = [1, 1]} : vector<4x128xf32> to vector<4x32xf32>
    %cst_361 = arith.constant 5.000000e-01 : f32
    %778 = vector.broadcast %cst_361 : f32 to vector<4x32xf32>
    %779 = arith.mulf %778, %777 : vector<4x32xf32>
    %780 = math.tanh %779 : vector<4x32xf32>
    %cst_362 = arith.constant 5.000000e-01 : f32
    %781 = vector.broadcast %cst_362 : f32 to vector<4x32xf32>
    %782 = arith.mulf %781, %780 : vector<4x32xf32>
    %cst_363 = arith.constant 5.000000e-01 : f32
    %783 = vector.broadcast %cst_363 : f32 to vector<4x32xf32>
    %784 = arith.addf %782, %783 : vector<4x32xf32>
    %785 = arith.mulf %774, %745 : vector<4x32xf32>
    %786 = arith.mulf %766, %776 : vector<4x32xf32>
    %787 = arith.addf %785, %786 : vector<4x32xf32>
    %788 = math.tanh %787 : vector<4x32xf32>
    %789 = arith.mulf %784, %788 : vector<4x32xf32>
    %790 = vector.extract_strided_slice %789 {offsets = [0, 0], sizes = [2, 32], strides = [1, 1]} : vector<4x32xf32> to vector<2x32xf32>
    %c12_364 = arith.constant 12 : index
    %c0_365 = arith.constant 0 : index
    %791 = vector.load %arg10[%c12_364, %c0_365] : memref<16x64xf32, #tpu.memory_space<vmem>>, vector<2x32xf32>
    tpu.vector_store %arg10[%c12_364, %c0_365], %790 {strides = array<i32>} : memref<16x64xf32, #tpu.memory_space<vmem>>, vector<2x32xf32>,
    %792 = vector.extract_strided_slice %789 {offsets = [2, 0], sizes = [2, 32], strides = [1, 1]} : vector<4x32xf32> to vector<2x32xf32>
    %c2_366 = arith.constant 2 : index
    %c32_367 = arith.constant 32 : index
    %793 = vector.load %arg10[%c2_366, %c32_367] : memref<16x64xf32, #tpu.memory_space<vmem>>, vector<2x32xf32>
    tpu.vector_store %arg10[%c2_366, %c32_367], %792 {strides = array<i32>} : memref<16x64xf32, #tpu.memory_space<vmem>>, vector<2x32xf32>,
    %cst_368 = arith.constant dense<0.000000e+00> : vector<4x256xf32>
    %794 = tpu.matmul %789, %497, %cst_368 {dimension_numbers = #tpu.dot_dimension_numbers<[1], [0], [0], [1], [0, 0, 1, 1], [], []>} : vector<4x32xf32>, vector<32x256xf32>, vector<4x256xf32> -> vector<4x256xf32>
    %c7_369 = arith.constant 7 : index
    %c0_370 = arith.constant 0 : index
    %c0_371 = arith.constant 0 : index
    %795 = vector.load %arg14[%c7_369, %c0_370, %c0_371] : memref<8x4x128xf32, #tpu.memory_space<vmem>>, vector<1x4x128xf32>
    %796 = vector.shape_cast %795 : vector<1x4x128xf32> to vector<4x128xf32>
    %797 = vector.extract_strided_slice %794 {offsets = [0, 0], sizes = [4, 128], strides = [1, 1]} : vector<4x256xf32> to vector<4x128xf32>
    %798 = vector.extract_strided_slice %794 {offsets = [0, 128], sizes = [4, 128], strides = [1, 1]} : vector<4x256xf32> to vector<4x128xf32>
    %799 = arith.select %2, %797, %798 : vector<4x128xi1>, vector<4x128xf32>
    %800 = arith.addf %796, %799 : vector<4x128xf32>
    %801 = vector.extract_strided_slice %800 {offsets = [0, 0], sizes = [4, 32], strides = [1, 1]} : vector<4x128xf32> to vector<4x32xf32>
    %cst_372 = arith.constant 5.000000e-01 : f32
    %802 = vector.broadcast %cst_372 : f32 to vector<4x32xf32>
    %803 = arith.mulf %802, %801 : vector<4x32xf32>
    %804 = math.tanh %803 : vector<4x32xf32>
    %cst_373 = arith.constant 5.000000e-01 : f32
    %805 = vector.broadcast %cst_373 : f32 to vector<4x32xf32>
    %806 = arith.mulf %805, %804 : vector<4x32xf32>
    %cst_374 = arith.constant 5.000000e-01 : f32
    %807 = vector.broadcast %cst_374 : f32 to vector<4x32xf32>
    %808 = arith.addf %806, %807 : vector<4x32xf32>
    %809 = vector.extract_strided_slice %800 {offsets = [0, 32], sizes = [4, 32], strides = [1, 1]} : vector<4x128xf32> to vector<4x32xf32>
    %cst_375 = arith.constant 5.000000e-01 : f32
    %810 = vector.broadcast %cst_375 : f32 to vector<4x32xf32>
    %811 = arith.mulf %810, %809 : vector<4x32xf32>
    %812 = math.tanh %811 : vector<4x32xf32>
    %cst_376 = arith.constant 5.000000e-01 : f32
    %813 = vector.broadcast %cst_376 : f32 to vector<4x32xf32>
    %814 = arith.mulf %813, %812 : vector<4x32xf32>
    %cst_377 = arith.constant 5.000000e-01 : f32
    %815 = vector.broadcast %cst_377 : f32 to vector<4x32xf32>
    %816 = arith.addf %814, %815 : vector<4x32xf32>
    %817 = vector.extract_strided_slice %800 {offsets = [0, 64], sizes = [4, 32], strides = [1, 1]} : vector<4x128xf32> to vector<4x32xf32>
    %818 = math.tanh %817 : vector<4x32xf32>
    %819 = vector.extract_strided_slice %800 {offsets = [0, 96], sizes = [4, 32], strides = [1, 1]} : vector<4x128xf32> to vector<4x32xf32>
    %cst_378 = arith.constant 5.000000e-01 : f32
    %820 = vector.broadcast %cst_378 : f32 to vector<4x32xf32>
    %821 = arith.mulf %820, %819 : vector<4x32xf32>
    %822 = math.tanh %821 : vector<4x32xf32>
    %cst_379 = arith.constant 5.000000e-01 : f32
    %823 = vector.broadcast %cst_379 : f32 to vector<4x32xf32>
    %824 = arith.mulf %823, %822 : vector<4x32xf32>
    %cst_380 = arith.constant 5.000000e-01 : f32
    %825 = vector.broadcast %cst_380 : f32 to vector<4x32xf32>
    %826 = arith.addf %824, %825 : vector<4x32xf32>
    %827 = arith.mulf %816, %787 : vector<4x32xf32>
    %828 = arith.mulf %808, %818 : vector<4x32xf32>
    %829 = arith.addf %827, %828 : vector<4x32xf32>
    %830 = math.tanh %829 : vector<4x32xf32>
    %831 = arith.mulf %826, %830 : vector<4x32xf32>
    %832 = vector.extract_strided_slice %831 {offsets = [0, 0], sizes = [2, 32], strides = [1, 1]} : vector<4x32xf32> to vector<2x32xf32>
    %c14_381 = arith.constant 14 : index
    %c0_382 = arith.constant 0 : index
    %833 = vector.load %arg10[%c14_381, %c0_382] : memref<16x64xf32, #tpu.memory_space<vmem>>, vector<2x32xf32>
    tpu.vector_store %arg10[%c14_381, %c0_382], %832 {strides = array<i32>} : memref<16x64xf32, #tpu.memory_space<vmem>>, vector<2x32xf32>,
    %834 = vector.extract_strided_slice %831 {offsets = [2, 0], sizes = [2, 32], strides = [1, 1]} : vector<4x32xf32> to vector<2x32xf32>
    %c0_383 = arith.constant 0 : index
    %c32_384 = arith.constant 32 : index
    %835 = vector.load %arg10[%c0_383, %c32_384] : memref<16x64xf32, #tpu.memory_space<vmem>>, vector<2x32xf32>
    tpu.vector_store %arg10[%c0_383, %c32_384], %834 {strides = array<i32>} : memref<16x64xf32, #tpu.memory_space<vmem>>, vector<2x32xf32>,
    %836 = vector.extract_strided_slice %829 {offsets = [0, 0], sizes = [2, 32], strides = [1, 1]} : vector<4x32xf32> to vector<2x32xf32>
    %c2_385 = arith.constant 2 : index
    %c0_386 = arith.constant 0 : index
    %c0_387 = arith.constant 0 : index
    %837 = vector.load %arg12[%c2_385, %c0_386, %c0_387] : memref<4x2x32xf32, #tpu.memory_space<vmem>>, vector<1x2x32xf32>
    %838 = vector.shape_cast %837 : vector<1x2x32xf32> to vector<2x32xf32>
    %839 = vector.shape_cast %836 : vector<2x32xf32> to vector<1x2x32xf32>
    tpu.vector_store %arg12[%c2_385, %c0_386, %c0_387], %839 {strides = array<i32>} : memref<4x2x32xf32, #tpu.memory_space<vmem>>, vector<1x2x32xf32>,
    %840 = vector.extract_strided_slice %829 {offsets = [2, 0], sizes = [2, 32], strides = [1, 1]} : vector<4x32xf32> to vector<2x32xf32>
    %c3_388 = arith.constant 3 : index
    %c0_389 = arith.constant 0 : index
    %c0_390 = arith.constant 0 : index
    %841 = vector.load %arg12[%c3_388, %c0_389, %c0_390] : memref<4x2x32xf32, #tpu.memory_space<vmem>>, vector<1x2x32xf32>
    %842 = vector.shape_cast %841 : vector<1x2x32xf32> to vector<2x32xf32>
    %843 = vector.shape_cast %840 : vector<2x32xf32> to vector<1x2x32xf32>
    tpu.vector_store %arg12[%c3_388, %c0_389, %c0_390], %843 {strides = array<i32>} : memref<4x2x32xf32, #tpu.memory_space<vmem>>, vector<1x2x32xf32>,
    %c0_391 = arith.constant 0 : index
    %c0_392 = arith.constant 0 : index
    %844 = vector.load %arg8[%c0_391, %c0_392] : memref<64x32xf32, #tpu.memory_space<vmem>>, vector<64x32xf32>
    %845 = vector.extract_strided_slice %831 {offsets = [0, 0], sizes = [2, 32], strides = [1, 1]} : vector<4x32xf32> to vector<2x32xf32>
    %846 = vector.extract_strided_slice %844 {offsets = [0, 0], sizes = [32, 32], strides = [1, 1]} : vector<64x32xf32> to vector<32x32xf32>
    %cst_393 = arith.constant dense<0.000000e+00> : vector<2x32xf32>
    %847 = tpu.matmul %845, %846, %cst_393 {dimension_numbers = #tpu.dot_dimension_numbers<[1], [0], [0], [1], [0, 0, 1, 1], [], []>} : vector<2x32xf32>, vector<32x32xf32>, vector<2x32xf32> -> vector<2x32xf32>
    %848 = vector.extract_strided_slice %831 {offsets = [2, 0], sizes = [2, 32], strides = [1, 1]} : vector<4x32xf32> to vector<2x32xf32>
    %849 = vector.extract_strided_slice %844 {offsets = [32, 0], sizes = [32, 32], strides = [1, 1]} : vector<64x32xf32> to vector<32x32xf32>
    %cst_394 = arith.constant dense<0.000000e+00> : vector<2x32xf32>
    %850 = tpu.matmul %848, %849, %cst_394 {dimension_numbers = #tpu.dot_dimension_numbers<[1], [0], [0], [1], [0, 0, 1, 1], [], []>} : vector<2x32xf32>, vector<32x32xf32>, vector<2x32xf32> -> vector<2x32xf32>
    %851 = arith.addf %847, %850 : vector<2x32xf32>
    %c0_395 = arith.constant 0 : index
    %c0_396 = arith.constant 0 : index
    %852 = vector.load %arg9[%c0_395, %c0_396] : memref<1x32xf32, #tpu.memory_space<vmem>>, vector<1x32xf32>
    %853 = vector.broadcast %852 : vector<1x32xf32> to vector<2x32xf32>
    %854 = arith.addf %851, %853 : vector<2x32xf32>
    %855 = math.tanh %854 : vector<2x32xf32>
    %c0_397 = arith.constant 0 : index
    %c0_398 = arith.constant 0 : index
    %856 = vector.load %arg11[%c0_397, %c0_398] : memref<2x32xf32, #tpu.memory_space<vmem>>, vector<2x32xf32>
    tpu.vector_store %arg11[%c0_397, %c0_398], %855 {strides = array<i32>} : memref<2x32xf32, #tpu.memory_space<vmem>>, vector<2x32xf32>,
    return
  }
}

</mosaic_0001>

<bundles_post_ra>
// kernel: encoder_forward.1
= control target key start
LH: loop header
LB: loop body
LE: loop exit
PB: predicated region body
PF: predicated region fallthrough
CT: control target
= control target key end

     0   :  { %18 = vsyncpa [#allocation5], 0  ;;  %s2603_s0 = inlined_call_operand.vmem [shape: s32[16,1], index: 0, kind: input, shape index: {}]   ;;  %s2604_s1 = inlined_call_operand.vmem [shape: f32[128,16], index: 1, kind: input, shape index: {}]   ;;  %s2605_s2 = inlined_call_operand.vmem [shape: f32[16,256], index: 2, kind: input, shape index: {}]   ;;  %s2606_s3 = inlined_call_operand.vmem [shape: f32[32,256], index: 3, kind: input, shape index: {}]   ;;  %s2607_s4 = inlined_call_operand.vmem [shape: f32[1,256], index: 4, kind: input, shape index: {}]   ;;  %s2608_s5 = inlined_call_operand.vmem [shape: f32[64,256], index: 5, kind: input, shape index: {}]   ;;  %s2609_s6 = inlined_call_operand.hbm [shape: f32[32,256], index: 6, kind: input, shape index: {}]   ;;  %s2610_s7 = inlined_call_operand.vmem [shape: f32[1,256], index: 7, kind: input, shape index: {}]   ;;  %s2611_s8 = inlined_call_operand.vmem [shape: f32[64,32], index: 8, kind: input, shape index: {}]   ;;  %s2612_s9 = inlined_call_operand.vmem [shape: f32[1,32], index: 9, kind: input, shape index: {}]   ;;  %s2613_s10 = inlined_call_operand.hbm [shape: f32[16,64], index: 10, kind: output, shape index: {0}]   ;;  %s2614_s11 = inlined_call_operand.hbm [shape: f32[2,32], index: 11, kind: output, shape index: {1}]   ;;  %s2615_s12 = inlined_call_operand.hbm [shape: f32[4,2,32], index: 12, kind: output, shape index: {2}]  }
   0x1   :  { %19 = vsyncpa [#allocation6], 0 }
   0x2   :  { %20 = vsyncpa [#allocation9], 0  ;;  %s37_s23 = sshll.u32 %s2609_s6, 4  ;;  %s1916_s24 = smov [#allocation4]   ;;  %s38_s23 = int_to_ptr.hbm [resolvable:$true] %s37_s23 }
   0x3   :  { %s39_s25 = sshll.u32 %s1916_s24, 4  ;;  %s1917_s26 = smov 256   ;;  %s40_s25 = int_to_ptr.vmem [resolvable:$true] %s39_s25 }
   0x4   :  { %s1918_s27 = smov 16  }
   0x5   :  { %45 = dma.hbm_to_vmem [thread:$0]  %s38_s23, 1024, %s40_s25, [#allocation5], %s1917_s26, %s1917_s26, %s1918_s27  }
   0x6   :  { %1910 = dma.done.wait [#allocation5], 1024  }
   0x7   :  { %1911 = vsyncadd [#allocation5], 4294966272  ;;  %v1919_v0 = vmov 0   ;;  %v59_v1 = vld [vmem:[%s2603_s0] sm:$0xff]  ;;  %v90_v2 = vld [vmem:[%s2604_s1 + $0x78] sm:$0xff]  ;;  %v56_v24 = vlaneseq  ;;  %v1920_v27 = vmov 1.0  }
   0x8   :  { %1714 = vset.pattern.permute.xlu0 %v1919_v0  ;;  %91 = vmatpush.msra.mxu0 %v90_v2  ;;  %v89_v3 = vld [vmem:[%s2604_s1 + $0x70] sm:$0xff]  ;;  %v88_v4 = vld [vmem:[%s2604_s1 + $0x68] sm:$0xff]  ;;  %v87_v5 = vld [vmem:[%s2604_s1 + $0x60] sm:$0xff]  ;;  %v1921_v33 = vmov 0.0   ;;  %vm124_vm2 = vcmask 130048   ;;  %s1923_s28 = smov 32  }
   0x9   :  { %64 = vperm.xlu0 %1714, %v59_v1   ;;  %v60_v6 = vld [vmem:[%s2603_s0 + $0x8] sm:$0xff]  ;;  %v86_v7 = vld [vmem:[%s2604_s1 + $0x58] sm:$0xff]  ;;  %v85_v8 = vld [vmem:[%s2604_s1 + $0x50] sm:$0xff]  ;;  %v62_v25 = vand.u32 127, %v56_v24  ;;  %v2148_v51 = vshrl.u32 %v56_v24, 7  ;;  %vm281_vm4 = vcmask 254976  }
   0xa   :  { %92 = vmatpush.msra.mxu0 %v89_v3  ;;  %v84_v9 = vld [vmem:[%s2604_s1 + $0x48] sm:$0xff]  ;;  %v83_v10 = vld [vmem:[%s2604_s1 + $0x40] sm:$0xff]  ;;  %v82_v11 = vld [vmem:[%s2604_s1 + $0x38] sm:$0xff]  ;;  %vm208_vm5 = vcmask 261120   ;;  %vm286_vm6 = vcmask 519426   ;;  %vm852_vm7 = vcmask 523264  }
   0xb   :  { %v81_v12 = vld [vmem:[%s2604_s1 + $0x30] sm:$0xff]  ;;  %v80_v13 = vld [vmem:[%s2604_s1 + $0x28] sm:$0xff]  ;;  %v79_v14 = vld [vmem:[%s2604_s1 + $0x20] sm:$0xff]  ;;  %vm58_vm3 = vcmp.lt.s32.totalorder %v2148_v51, 2  ;;  %vm826_vm8 = vcmask 257026   ;;  %s1611_s15 = sshll.u32 %s2613_s10, 4  ;;  %s1612_s15 = int_to_ptr.hbm [resolvable:$true] %s1611_s15 }
   0xc   :  { %93 = vmatpush.msra.mxu0 %v88_v4  ;;  %v78_v15 = vld [vmem:[%s2604_s1 + $0x18] sm:$0xff]  ;;  %v77_v16 = vld [vmem:[%s2604_s1 + $0x10] sm:$0xff]  ;;  %v76_v17 = vld [vmem:[%s2604_s1 + $0x8] sm:$0xff]  ;;  %s1926_s16 = smov 128   ;;  %s1927_s17 = smov 8  }
   0xd   :  { %v75_v18 = vld [vmem:[%s2604_s1] sm:$0xff]  ;;  %v2056_v19 = vld [vmem:[%s2606_s3 + $0x30] sm:$0xff]  ;;  %v117_v22 = vld [vmem:[%s2605_s2 + $0x18] sm:$0xff]  ;;  %s1625_s10 = sshll.u32 %s2614_s11, 4  ;;  %s1928_s20 = smov [#allocation8]   ;;  %s1626_s10 = int_to_ptr.hbm [resolvable:$true] %s1625_s10 }
   0xe   :  { %94 = vmatpush.msra.mxu0 %v87_v5  ;;  %v2061_v20 = vld [vmem:[%s2606_s3 + $0x20] sm:$0xff]  ;;  %v116_v21 = vld [vmem:[%s2605_s2 + $0x10] sm:$0xff]  ;;  %224 = vmatpush.msra.mxu3 %v2056_v19  ;;  %v115_v30 = vld [vmem:[%s2605_s2 + $0x8] sm:$0xff]  ;;  %s1623_s21 = sshll.u32 %s1928_s20, 4  ;;  %s1635_s23 = sshll.u32 %s2615_s12, 4  ;;  %s1624_s21 = int_to_ptr.vmem [resolvable:$true] %s1623_s21  ;;  %s1636_s23 = int_to_ptr.hbm [resolvable:$true] %s1635_s23 }
   0xf   :  { %145 = vmatpush.msra.mxu1 %v116_v21  ;;  %168 = vmatpush.msra.mxu2 %v117_v22  ;;  %v2073_v23 = vld [vmem:[%s2606_s3 + $0x10] sm:$0xff]  ;;  %v114_v29 = vld [vmem:[%s2605_s2] sm:$0xff]  ;;  %v2093_v32 = vld [vmem:[%s2606_s3 + $0x38] sm:$0xff]  ;;  %s1929_s24 = smov [#allocation10]  }
  0x10   :  { %95 = vmatpush.msra.mxu0 %v86_v7  ;;  %225 = vmatpush.msra.mxu3 %v2061_v20  ;;  %v2087_v31 = vld [vmem:[%s2606_s3] sm:$0xff]  ;;  %v2100_v34 = vld [vmem:[%s2606_s3 + $0x28] sm:$0xff]  ;;  %v2108_v35 = vld [vmem:[%s2606_s3 + $0x18] sm:$0xff]  ;;  %s1633_s25 = sshll.u32 %s1929_s24, 4  ;;  %s1634_s25 = int_to_ptr.vmem [resolvable:$true] %s1633_s25 }
  0x11   :  { %67 = vperm.xlu0 %1714, %v60_v6   ;;  %146 = vmatpush.msra.mxu1 %v114_v29  ;;  %v2121_v36 = vld [vmem:[%s2606_s3 + $0x8] sm:$0xff]  ;;  %v118_v39 = vld [vmem:[%s2607_s4] sm:$0x3]  ;;  %s1922_s4 = smov 64  }
  0x12   :  { %96 = vmatpush.msra.mxu0 %v85_v8  ;;  %226 = vmatpush.msra.mxu3 %v2073_v23  ;;  %v120_v40 = vperm.slane %v118_v39, 0  ;;  %v121_v43 = vperm.slane %v118_v39, 1 }
  0x13   :  { %169 = vmatpush.msra.mxu2 %v115_v30  ;;  %302 = vmatpush.msrb.mxu1 %v2056_v19 }
  0x14   :  { %97 = vmatpush.msra.mxu0 %v84_v9  ;;  %227 = vmatpush.msra.mxu3 %v2087_v31 }
  0x15   :  { %228 = vmatmul.f32.vlgmr.msra.gmra.mxu3 %v1921_v33  ;;  %322 = vmatpush.msrb.mxu2 %v2093_v32 }
  0x16   :  { %98 = vmatpush.msra.mxu0 %v83_v10  ;;  %244 = vmatpush.msrb.mxu3 %v2093_v32 }
  0x17   :  { %303 = vmatpush.msrb.mxu1 %v2061_v20  ;;  %323 = vmatpush.msrb.mxu2 %v2100_v34 }
  0x18   :  { %99 = vmatpush.msra.mxu0 %v82_v11  ;;  %245 = vmatpush.msrb.mxu3 %v2100_v34 }
  0x19   :  { %304 = vmatpush.msrb.mxu1 %v2073_v23  ;;  %324 = vmatpush.msrb.mxu2 %v2108_v35 }
  0x1a   :  { %100 = vmatpush.msra.mxu0 %v81_v12  ;;  %246 = vmatpush.msrb.mxu3 %v2108_v35 }
  0x1b   :  { %305 = vmatpush.msrb.mxu1 %v2087_v31  ;;  %325 = vmatpush.msrb.mxu2 %v2121_v36 }
  0x1c   :  { %101 = vmatpush.msra.mxu0 %v80_v13  ;;  %247 = vmatpush.msrb.mxu3 %v2121_v36 }
  0x1d   :  { %248 = vmatmul.f32.vlgmr.msrb.gmra.mxu3 %v1921_v33 }
  0x1e   :  { %102 = vmatpush.msra.mxu0 %v79_v14  ;;  %378 = vmatpush.msra.mxu3 %v2056_v19 }
  0x20   :  { %103 = vmatpush.msra.mxu0 %v78_v15  ;;  %379 = vmatpush.msra.mxu3 %v2061_v20 }
  0x22   :  { %104 = vmatpush.msra.mxu0 %v77_v16  ;;  %380 = vmatpush.msra.mxu3 %v2073_v23 }
  0x24   :  { %105 = vmatpush.msra.mxu0 %v76_v17  ;;  %381 = vmatpush.msra.mxu3 %v2087_v31 }
  0x26   :  { %106 = vmatpush.msra.mxu0 %v75_v18  ;;  %474 = vmatpush.msrb.mxu3 %v2093_v32 }
  0x28   :  { %702 = vmatpush.msrb.mxu0 %v2093_v32  ;;  %475 = vmatpush.msrb.mxu3 %v2100_v34 }
  0x2a   :  { %703 = vmatpush.msrb.mxu0 %v2100_v34  ;;  %476 = vmatpush.msrb.mxu3 %v2108_v35 }
  0x2c   :  { %704 = vmatpush.msrb.mxu0 %v2108_v35  ;;  %477 = vmatpush.msrb.mxu3 %v2121_v36 }
  0x2e   :  { %705 = vmatpush.msrb.mxu0 %v2121_v36 }
  0x7b   :  { %v65_v26 = vpop.permute.xlu0 %64 }
  0x7c   :  { %vm69_vm0 = vcmp.eq.s32.totalorder %v65_v26, %v62_v25 }
  0x7d   :  { %1659 = vmatmul.msk.f32.vlgmr.msra.gmra.mxu0 %vm69_vm0, %v1920_v27 }
  0x83   :  { %v68_v28 = vpop.permute.xlu0 %67 }
  0x84   :  { %vm70_vm1 = vcmp.eq.s32.totalorder %v68_v28, %v62_v25 }
  0x85   :  { %1660 = vmatmul.msk.f32.gmra.mxu0 %vm70_vm1, %v1920_v27 }
  0x98   :  { %v229_v48 = vpop.f32.mrf.mxu3 }
  0xa0   :  { %v249_v52 = vpop.f32.mrf.mxu3 }
  0xa1   :  { %v253_v54 = vsel %vm58_vm3, %v229_v48, %v249_v52 }
  0xfa   :  { %v108_v37 = vpop.f32.mrf.mxu0 }
  0xfb   :  { %1661 = vmatmul.msk.f32.vlgmr.msra.gmra.mxu1 %vm124_vm2, %v108_v37  ;;  %1663 = vmatmul.msk.f32.vlgmr.msra.gmra.mxu2 %vm124_vm2, %v108_v37 }
  0xfc   :  { %398 = vmatpush.msra.mxu1 %v2093_v32  ;;  %454 = vmatpush.msra.mxu2 %v2056_v19 }
  0xfe   :  { %399 = vmatpush.msra.mxu1 %v2100_v34  ;;  %455 = vmatpush.msra.mxu2 %v2061_v20 }
 0x100   :  { %400 = vmatpush.msra.mxu1 %v2108_v35  ;;  %456 = vmatpush.msra.mxu2 %v2073_v23 }
 0x102   :  { %v111_v38 = vpop.f32.mrf.mxu0  ;;  %401 = vmatpush.msra.mxu1 %v2121_v36  ;;  %457 = vmatpush.msra.mxu2 %v2087_v31 }
 0x103   :  { %1662 = vmatmul.msk.f32.gmra.mxu1 %vm124_vm2, %v111_v38  ;;  %1664 = vmatmul.msk.f32.gmra.mxu2 %vm124_vm2, %v111_v38 }
 0x178   :  { %v148_v41 = vpop.f32.mrf.mxu1 }
 0x179   :  { %v149_v42 = vadd.f32 %v148_v41, %v120_v40 }
 0x17b   :  { %177 = vst [vmem:[#allocation3] sm:$0x3] %v149_v42 }
 0x17c   :  { %180 = vst [vmem:[#allocation3 + $0x2] sm:$0xc] %v149_v42 }
 0x17d   :  { %183 = vst [vmem:[#allocation3 + $0x4] sm:$0x30] %v149_v42 }
 0x17e   :  { %186 = vst [vmem:[#allocation3 + $0x6] sm:$0xc0] %v149_v42  ;;  %v171_v44 = vpop.f32.mrf.mxu2 }
 0x17f   :  { %v172_v45 = vadd.f32 %v171_v44, %v121_v43 }
 0x180   :  { %v151_v46 = vpop.f32.mrf.mxu1 }
 0x181   :  { %190 = vst [vmem:[#allocation3 + $0xc] sm:$0xc0] %v172_v45  ;;  %v152_v47 = vadd.f32 %v151_v46, %v120_v40 }
 0x182   :  { %193 = vst [vmem:[#allocation3 + $0x12] sm:$0x30] %v172_v45 }
 0x183   :  { %196 = vst [vmem:[#allocation3 + $0x18] sm:$0xc] %v172_v45 }
 0x184   :  { %199 = vst [vmem:[#allocation3 + $0x1e] sm:$0x3] %v172_v45 }
 0x185   :  { %189 = vst [vmem:[#allocation3 + $0x10] sm:$0x3] %v152_v47 }
 0x186   :  { %192 = vst [vmem:[#allocation3 + $0x12] sm:$0xc] %v152_v47  ;;  %v174_v49 = vpop.f32.mrf.mxu2 }
 0x187   :  { %195 = vst [vmem:[#allocation3 + $0x14] sm:$0x30] %v152_v47  ;;  %v175_v50 = vadd.f32 %v174_v49, %v121_v43 }
 0x188   :  { %198 = vst [vmem:[#allocation3 + $0x16] sm:$0xc0] %v152_v47 }
 0x189   :  { %178 = vst [vmem:[#allocation3 - $0x4] sm:$0xc0] %v175_v50 }
 0x18a   :  { %181 = vst [vmem:[#allocation3 + $0x2] sm:$0x30] %v175_v50 }
 0x18b   :  { %184 = vst [vmem:[#allocation3 + $0x8] sm:$0xc] %v175_v50 }
 0x18c   :  { %187 = vst [vmem:[#allocation3 + $0xe] sm:$0x3] %v175_v50 }
 0x190   :  { %v252_v53 = vld [vmem:[#allocation3] sm:$0xf] }
 0x191   :  { %v254_v55 = vadd.f32 %v253_v54, %v252_v53  ;;  %v330_v8 = vld [vmem:[#allocation3 + $0x4] sm:$0xf] }
 0x192   :  { %v406_v30 = vld [vmem:[#allocation3 + $0x8] sm:$0xf] }
 0x193   :  { %1716 = vtanh.f32 %v254_v55  ;;  %v255_v57 = vmul.f32 0.5, %v254_v55 }
 0x195   :  { %1718 = vtanh.f32 %v255_v57 }
 0x199   :  { %v1717_v56 = vpop.eup %1716 }
 0x19a   :  { %262 = vrot.lane.b32.xlu1 %v1717_v56, %s1922_s4  ;;  %v482_v56 = vld [vmem:[#allocation3 + $0xc] sm:$0xf] }
 0x19b   :  { %v1719_v58 = vpop.eup %1718 }
 0x19c   :  { %v257_v59 = vmul.f32 0.5, %v1719_v58 }
 0x19e   :  { %v258_v60 = vadd.f32 0.5, %v257_v59 }
 0x1a0   :  { %v260_v63 = vmul.f32 0.0, %v258_v60 }
 0x20c   :  { %v263_v61 = vpop.permute.xlu1 %262 }
 0x20d   :  { %v265_v62 = vmul.f32 %v263_v61, %v258_v60 }
 0x20f   :  { %267 = vrot.lane.b32.xlu1 %v265_v62, %s1923_s28 }
 0x281   :  { %v268_v0 = vpop.permute.xlu1 %267 }
 0x282   :  { %v270_v1 = vadd.f32 %v268_v0, %v260_v63 }
 0x284   :  { %1720 = vtanh.f32 %v270_v1 }
 0x28a   :  { %v1721_v2 = vpop.eup %1720 }
 0x28b   :  { %273 = vrot.lane.b32.xlu2 %v1721_v2, %s1922_s4 }
 0x2e5   :  { %v274_v3 = vpop.permute.xlu2 %273 }
 0x2e6   :  { %v2156_v4 = vmul.f32 %v274_v3, %v258_v60 }
 0x2e8   :  { %278 = vrot.lane.b32.xlu2 %v2156_v4, %s1923_s28 }
 0x342   :  { %v279_v5 = vpop.permute.xlu2 %278 }
 0x343   :  { %282 = vst.msk [vmem:[#allocation2] sm:$0x3] %vm281_vm4, %v279_v5  ;;  %1665 = vmatmul.msk.f32.vlgmr.msrb.gmra.mxu1 %vm208_vm5, %v279_v5  ;;  %1666 = vmatmul.msk.f32.vlgmr.msrb.gmra.mxu2 %vm208_vm5, %v279_v5 }
 0x344   :  { %550 = vmatpush.msrb.mxu2 %v2093_v32  ;;  %530 = vmatpush.msrb.mxu1 %v2056_v19 }
 0x346   :  { %551 = vmatpush.msrb.mxu2 %v2100_v34  ;;  %531 = vmatpush.msrb.mxu1 %v2061_v20 }
 0x348   :  { %552 = vmatpush.msrb.mxu2 %v2108_v35  ;;  %532 = vmatpush.msrb.mxu1 %v2073_v23 }
 0x34a   :  { %553 = vmatpush.msrb.mxu2 %v2121_v36  ;;  %533 = vmatpush.msrb.mxu1 %v2087_v31 }
 0x3c0   :  { %v307_v6 = vpop.f32.mrf.mxu1 }
 0x3c6   :  { %v327_v7 = vpop.f32.mrf.mxu2 }
 0x3c7   :  { %v331_v9 = vsel %vm58_vm3, %v307_v6, %v327_v7 }
 0x3c8   :  { %v332_v10 = vadd.f32 %v331_v9, %v330_v8  ;;  %v558_v8 = vld [vmem:[#allocation3 + $0x10] sm:$0xf] }
 0x3ca   :  { %1722 = vtanh.f32 %v332_v10  ;;  %v333_v12 = vmul.f32 0.5, %v332_v10 }
 0x3cc   :  { %1724 = vtanh.f32 %v333_v12 }
 0x3d0   :  { %v1723_v11 = vpop.eup %1722 }
 0x3d1   :  { %340 = vrot.lane.b32.xlu0 %v1723_v11, %s1922_s4 }
 0x3d2   :  { %v1725_v13 = vpop.eup %1724 }
 0x3d3   :  { %v335_v14 = vmul.f32 0.5, %v1725_v13 }
 0x3d5   :  { %v336_v15 = vadd.f32 0.5, %v335_v14 }
 0x3d7   :  { %v338_v18 = vmul.f32 %v336_v15, %v270_v1 }
 0x443   :  { %v341_v16 = vpop.permute.xlu0 %340 }
 0x444   :  { %v343_v17 = vmul.f32 %v341_v16, %v336_v15 }
 0x446   :  { %345 = vrot.lane.b32.xlu1 %v343_v17, %s1923_s28 }
 0x4b8   :  { %v346_v21 = vpop.permute.xlu1 %345 }
 0x4b9   :  { %v348_v22 = vadd.f32 %v346_v21, %v338_v18 }
 0x4bb   :  { %1726 = vtanh.f32 %v348_v22 }
 0x4c1   :  { %v1727_v24 = vpop.eup %1726 }
 0x4c2   :  { %351 = vrot.lane.b32.xlu2 %v1727_v24, %s1922_s4 }
 0x51c   :  { %v352_v25 = vpop.permute.xlu2 %351 }
 0x51d   :  { %v2176_v26 = vmul.f32 %v352_v25, %v336_v15 }
 0x51f   :  { %356 = vrot.lane.b32.xlu0 %v2176_v26, %s1923_s28 }
 0x591   :  { %v357_v27 = vpop.permute.xlu0 %356 }
 0x592   :  { %359 = vst.msk [vmem:[#allocation2 + $0x2] sm:$0x3] %vm281_vm4, %v357_v27  ;;  %1667 = vmatmul.msk.f32.vlgmr.msra.gmra.mxu3 %vm208_vm5, %v357_v27  ;;  %1668 = vmatmul.msk.f32.vlgmr.msra.gmra.mxu1 %vm208_vm5, %v357_v27  ;;  %v634_v27 = vld [vmem:[#allocation3 + $0x14] sm:$0xf] }
 0x593   :  { %606 = vmatpush.msra.mxu3 %v2056_v19  ;;  %626 = vmatpush.msra.mxu1 %v2093_v32 }
 0x595   :  { %607 = vmatpush.msra.mxu3 %v2061_v20  ;;  %627 = vmatpush.msra.mxu1 %v2100_v34 }
 0x597   :  { %608 = vmatpush.msra.mxu3 %v2073_v23  ;;  %628 = vmatpush.msra.mxu1 %v2108_v35 }
 0x599   :  { %609 = vmatpush.msra.mxu3 %v2087_v31  ;;  %629 = vmatpush.msra.mxu1 %v2121_v36 }
 0x60f   :  { %v403_v28 = vpop.f32.mrf.mxu1 }
 0x615   :  { %v383_v29 = vpop.f32.mrf.mxu3 }
 0x616   :  { %v407_v37 = vsel %vm58_vm3, %v383_v29, %v403_v28 }
 0x617   :  { %v408_v38 = vadd.f32 %v407_v37, %v406_v30 }
 0x619   :  { %1728 = vtanh.f32 %v408_v38  ;;  %v409_v40 = vmul.f32 0.5, %v408_v38 }
 0x61b   :  { %1730 = vtanh.f32 %v409_v40 }
 0x61f   :  { %v1729_v39 = vpop.eup %1728 }
 0x620   :  { %416 = vrot.lane.b32.xlu1 %v1729_v39, %s1922_s4 }
 0x621   :  { %v1731_v41 = vpop.eup %1730 }
 0x622   :  { %v411_v42 = vmul.f32 0.5, %v1731_v41 }
 0x624   :  { %v412_v43 = vadd.f32 0.5, %v411_v42 }
 0x626   :  { %v414_v46 = vmul.f32 %v412_v43, %v348_v22 }
 0x692   :  { %v417_v44 = vpop.permute.xlu1 %416 }
 0x693   :  { %v419_v45 = vmul.f32 %v417_v44, %v412_v43 }
 0x695   :  { %421 = vrot.lane.b32.xlu2 %v419_v45, %s1923_s28 }
 0x6ef   :  { %v422_v47 = vpop.permute.xlu2 %421 }
 0x6f0   :  { %v424_v48 = vadd.f32 %v422_v47, %v414_v46 }
 0x6f2   :  { %1732 = vtanh.f32 %v424_v48 }
 0x6f8   :  { %v1733_v49 = vpop.eup %1732 }
 0x6f9   :  { %427 = vrot.lane.b32.xlu0 %v1733_v49, %s1922_s4 }
 0x76b   :  { %v428_v50 = vpop.permute.xlu0 %427 }
 0x76c   :  { %v2196_v52 = vmul.f32 %v428_v50, %v412_v43 }
 0x76e   :  { %432 = vrot.lane.b32.xlu1 %v2196_v52, %s1923_s28 }
 0x7e0   :  { %v433_v53 = vpop.permute.xlu1 %432 }
 0x7e1   :  { %435 = vst.msk [vmem:[#allocation2 + $0x4] sm:$0x3] %vm281_vm4, %v433_v53  ;;  %1669 = vmatmul.msk.f32.vlgmr.msra.gmra.mxu2 %vm208_vm5, %v433_v53  ;;  %1670 = vmatmul.msk.f32.vlgmr.msrb.gmra.mxu3 %vm208_vm5, %v433_v53 }
 0x7e2   :  { %682 = vmatpush.msra.mxu2 %v2056_v19  ;;  %758 = vmatpush.msrb.mxu3 %v2056_v19 }
 0x7e4   :  { %683 = vmatpush.msra.mxu2 %v2061_v20  ;;  %759 = vmatpush.msrb.mxu3 %v2061_v20 }
 0x7e6   :  { %684 = vmatpush.msra.mxu2 %v2073_v23  ;;  %760 = vmatpush.msrb.mxu3 %v2073_v23 }
 0x7e8   :  { %685 = vmatpush.msra.mxu2 %v2087_v31  ;;  %761 = vmatpush.msrb.mxu3 %v2087_v31 }
 0x864   :  { %v459_v54 = vpop.f32.mrf.mxu2  ;;  %v479_v55 = vpop.f32.mrf.mxu3 }
 0x865   :  { %v483_v57 = vsel %vm58_vm3, %v459_v54, %v479_v55  ;;  %v710_v54 = vld [vmem:[#allocation3 + $0x18] sm:$0xf] }
 0x866   :  { %v484_v58 = vadd.f32 %v483_v57, %v482_v56 }
 0x868   :  { %1734 = vtanh.f32 %v484_v58  ;;  %v485_v20 = vmul.f32 0.5, %v484_v58 }
 0x86a   :  { %1736 = vtanh.f32 %v485_v20 }
 0x86e   :  { %v1735_v19 = vpop.eup %1734 }
 0x86f   :  { %492 = vrot.lane.b32.xlu2 %v1735_v19, %s1922_s4 }
 0x870   :  { %v1737_v59 = vpop.eup %1736 }
 0x871   :  { %v487_v60 = vmul.f32 0.5, %v1737_v59 }
 0x873   :  { %v488_v23 = vadd.f32 0.5, %v487_v60 }
 0x875   :  { %v490_v31 = vmul.f32 %v488_v23, %v424_v48 }
 0x8c9   :  { %v493_v61 = vpop.permute.xlu2 %492 }
 0x8ca   :  { %v495_v62 = vmul.f32 %v493_v61, %v488_v23 }
 0x8cc   :  { %497 = vrot.lane.b32.xlu0 %v495_v62, %s1923_s28 }
 0x93e   :  { %v498_v63 = vpop.permute.xlu0 %497 }
 0x93f   :  { %v500_v0 = vadd.f32 %v498_v63, %v490_v31 }
 0x941   :  { %1738 = vtanh.f32 %v500_v0 }
 0x947   :  { %v1739_v1 = vpop.eup %1738 }
 0x948   :  { %503 = vrot.lane.b32.xlu1 %v1739_v1, %s1922_s4 }
 0x9ba   :  { %v504_v2 = vpop.permute.xlu1 %503 }
 0x9bb   :  { %v2216_v3 = vmul.f32 %v504_v2, %v488_v23 }
 0x9bd   :  { %508 = vrot.lane.b32.xlu2 %v2216_v3, %s1923_s28 }
 0xa17   :  { %v509_v5 = vpop.permute.xlu2 %508 }
 0xa18   :  { %511 = vst.msk [vmem:[#allocation2 + $0x6] sm:$0x3] %vm281_vm4, %v509_v5  ;;  %1671 = vmatmul.msk.f32.vlgmr.msrb.gmra.mxu1 %vm208_vm5, %v509_v5  ;;  %1672 = vmatmul.msk.f32.vlgmr.msrb.gmra.mxu2 %vm208_vm5, %v509_v5 }
 0xa19   :  { %778 = vmatpush.msrb.mxu1 %v2093_v32 }
 0xa1b   :  { %779 = vmatpush.msrb.mxu1 %v2100_v34 }
 0xa1d   :  { %780 = vmatpush.msrb.mxu1 %v2108_v35 }
 0xa1f   :  { %781 = vmatpush.msrb.mxu1 %v2121_v36 }
 0xa95   :  { %v535_v6 = vpop.f32.mrf.mxu1 }
 0xa9b   :  { %v555_v7 = vpop.f32.mrf.mxu2 }
 0xa9c   :  { %v559_v9 = vsel %vm58_vm3, %v535_v6, %v555_v7  ;;  %v786_v7 = vld [vmem:[#allocation3 + $0x1c] sm:$0xf] }
 0xa9d   :  { %v560_v10 = vadd.f32 %v559_v9, %v558_v8 }
 0xa9f   :  { %1740 = vtanh.f32 %v560_v10  ;;  %v561_v12 = vmul.f32 0.5, %v560_v10 }
 0xaa1   :  { %1742 = vtanh.f32 %v561_v12 }
 0xaa5   :  { %v1741_v11 = vpop.eup %1740 }
 0xaa6   :  { %568 = vrot.lane.b32.xlu0 %v1741_v11, %s1922_s4 }
 0xaa7   :  { %v1743_v32 = vpop.eup %1742 }
 0xaa8   :  { %v563_v13 = vmul.f32 0.5, %v1743_v32 }
 0xaaa   :  { %v564_v34 = vadd.f32 0.5, %v563_v13 }
 0xaac   :  { %v566_v36 = vmul.f32 %v564_v34, %v500_v0 }
 0xb18   :  { %v569_v14 = vpop.permute.xlu0 %568 }
 0xb19   :  { %v571_v35 = vmul.f32 %v569_v14, %v564_v34 }
 0xb1b   :  { %573 = vrot.lane.b32.xlu1 %v571_v35, %s1923_s28 }
 0xb8d   :  { %v574_v15 = vpop.permute.xlu1 %573 }
 0xb8e   :  { %v576_v16 = vadd.f32 %v574_v15, %v566_v36 }
 0xb90   :  { %1744 = vtanh.f32 %v576_v16 }
 0xb96   :  { %v1745_v17 = vpop.eup %1744 }
 0xb97   :  { %579 = vrot.lane.b32.xlu2 %v1745_v17, %s1922_s4 }
 0xbf1   :  { %v580_v18 = vpop.permute.xlu2 %579 }
 0xbf2   :  { %v2232_v21 = vmul.f32 %v580_v18, %v564_v34 }
 0xbf4   :  { %584 = vrot.lane.b32.xlu0 %v2232_v21, %s1923_s28 }
 0xc66   :  { %v2236_v22 = vpop.permute.xlu0 %584 }
 0xc67   :  { %1673 = vmatmul.msk.f32.vlgmr.msra.gmra.mxu3 %vm208_vm5, %v2236_v22  ;;  %1674 = vmatmul.msk.f32.vlgmr.msra.gmra.mxu1 %vm208_vm5, %v2236_v22 }
 0xce4   :  { %v631_v24 = vpop.f32.mrf.mxu1 }
 0xcea   :  { %v611_v25 = vpop.f32.mrf.mxu3 }
 0xceb   :  { %v635_v28 = vsel %vm58_vm3, %v611_v25, %v631_v24 }
 0xcec   :  { %v636_v29 = vadd.f32 %v635_v28, %v634_v27  ;;  %v842_v28 = vld [vmem:[%s2608_s5 + $0x60] sm:$0xff] }
 0xcee   :  { %1746 = vtanh.f32 %v636_v29  ;;  %v637_v37 = vmul.f32 0.5, %v636_v29  ;;  %v840_v29 = vld [vmem:[%s2608_s5 + $0x50] sm:$0xff] }
 0xcf0   :  { %1748 = vtanh.f32 %v637_v37  ;;  %v838_v37 = vld [vmem:[%s2608_s5 + $0x40] sm:$0xff] }
 0xcf4   :  { %v1747_v30 = vpop.eup %1746 }
 0xcf5   :  { %644 = vrot.lane.b32.xlu1 %v1747_v30, %s1922_s4  ;;  %v841_v30 = vld [vmem:[%s2608_s5 + $0x58] sm:$0xff] }
 0xcf6   :  { %v1749_v38 = vpop.eup %1748 }
 0xcf7   :  { %v639_v39 = vmul.f32 0.5, %v1749_v38  ;;  %v839_v38 = vld [vmem:[%s2608_s5 + $0x48] sm:$0xff] }
 0xcf9   :  { %v640_v40 = vadd.f32 0.5, %v639_v39  ;;  %v836_v39 = vld [vmem:[%s2608_s5 + $0x30] sm:$0xff] }
 0xcfb   :  { %v642_v43 = vmul.f32 %v640_v40, %v576_v16 }
 0xd67   :  { %v645_v41 = vpop.permute.xlu1 %644 }
 0xd68   :  { %v647_v42 = vmul.f32 %v645_v41, %v640_v40  ;;  %v834_v41 = vld [vmem:[%s2608_s5 + $0x20] sm:$0xff] }
 0xd6a   :  { %649 = vrot.lane.b32.xlu2 %v647_v42, %s1923_s28  ;;  %v835_v42 = vld [vmem:[%s2608_s5 + $0x28] sm:$0xff] }
 0xdc4   :  { %v650_v44 = vpop.permute.xlu2 %649 }
 0xdc5   :  { %v652_v45 = vadd.f32 %v650_v44, %v642_v43  ;;  %v832_v43 = vld [vmem:[%s2608_s5 + $0x10] sm:$0xff]  ;;  %v833_v44 = vld [vmem:[%s2608_s5 + $0x18] sm:$0xff] }
 0xdc7   :  { %1750 = vtanh.f32 %v652_v45 }
 0xdcd   :  { %v1751_v46 = vpop.eup %1750 }
 0xdce   :  { %655 = vrot.lane.b32.xlu0 %v1751_v46, %s1922_s4  ;;  %v831_v46 = vld [vmem:[%s2608_s5 + $0x8] sm:$0xff] }
 0xe40   :  { %v656_v47 = vpop.permute.xlu0 %655 }
 0xe41   :  { %v658_v48 = vmul.f32 %v656_v47, %v640_v40  ;;  %v837_v40 = vld [vmem:[%s2608_s5 + $0x38] sm:$0xff] }
 0xe43   :  { %660 = vrot.lane.b32.xlu1 %v658_v48, %s1923_s28 }
 0xeb5   :  { %v2248_v49 = vpop.permute.xlu1 %660 }
 0xeb6   :  { %1675 = vmatmul.msk.f32.vlgmr.msra.gmra.mxu2 %vm208_vm5, %v2248_v49  ;;  %1676 = vmatmul.msk.f32.vlgmr.msrb.gmra.mxu0 %vm208_vm5, %v2248_v49 }
 0xf33   :  { %v707_v50 = vpop.f32.mrf.mxu0 }
 0xf39   :  { %v687_v53 = vpop.f32.mrf.mxu2 }
 0xf3a   :  { %v711_v55 = vsel %vm58_vm3, %v687_v53, %v707_v50  ;;  %v2344_v50 = vld [vmem:[#allocation4 + $0x20] sm:$0xff]  ;;  %v2348_v53 = vld [vmem:[#allocation4 + $0x10] sm:$0xff] }
 0xf3b   :  { %v712_v56 = vadd.f32 %v711_v55, %v710_v54  ;;  %v2354_v54 = vld [vmem:[#allocation4] sm:$0xff]  ;;  %v2356_v55 = vld [vmem:[#allocation4 + $0x38] sm:$0xff] }
 0xf3c   :  { %961 = vmatpush.msra.mxu1 %v2356_v55 }
 0xf3d   :  { %1752 = vtanh.f32 %v712_v56  ;;  %v713_v58 = vmul.f32 0.5, %v712_v56  ;;  %v2358_v56 = vld [vmem:[#allocation4 + $0x28] sm:$0xff] }
 0xf3e   :  { %962 = vmatpush.msra.mxu1 %v2358_v56 }
 0xf3f   :  { %1754 = vtanh.f32 %v713_v58  ;;  %v2368_v58 = vld [vmem:[#allocation4 + $0x8] sm:$0xff] }
 0xf43   :  { %v1753_v57 = vpop.eup %1752 }
 0xf44   :  { %720 = vrot.lane.b32.xlu2 %v1753_v57, %s1922_s4  ;;  %v2363_v57 = vld [vmem:[#allocation4 + $0x18] sm:$0xff] }
 0xf45   :  { %v1755_v19 = vpop.eup %1754  ;;  %963 = vmatpush.msra.mxu1 %v2363_v57 }
 0xf46   :  { %v715_v20 = vmul.f32 0.5, %v1755_v19 }
 0xf47   :  { %964 = vmatpush.msra.mxu1 %v2368_v58 }
 0xf48   :  { %v716_v59 = vadd.f32 0.5, %v715_v20 }
 0xf4a   :  { %v718_v61 = vmul.f32 %v716_v59, %v652_v45  ;;  %v830_v45 = vld [vmem:[%s2608_s5] sm:$0xff] }
 0xf9e   :  { %v721_v60 = vpop.permute.xlu2 %720 }
 0xf9f   :  { %v723_v23 = vmul.f32 %v721_v60, %v716_v59 }
 0xfa1   :  { %725 = vrot.lane.b32.xlu0 %v723_v23, %s1923_s28 }
0x1013   :  { %v726_v62 = vpop.permute.xlu0 %725 }
0x1014   :  { %v728_v31 = vadd.f32 %v726_v62, %v718_v61 }
0x1016   :  { %1756 = vtanh.f32 %v728_v31 }
0x101c   :  { %v1757_v63 = vpop.eup %1756 }
0x101d   :  { %731 = vrot.lane.b32.xlu1 %v1757_v63, %s1922_s4 }
0x108f   :  { %v732_v0 = vpop.permute.xlu1 %731 }
0x1090   :  { %v734_v1 = vmul.f32 %v732_v0, %v716_v59 }
0x1092   :  { %736 = vrot.lane.b32.xlu2 %v734_v1, %s1923_s28 }
0x10ec   :  { %v737_v2 = vpop.permute.xlu2 %736 }
0x10ed   :  { %1677 = vmatmul.msk.f32.vlgmr.msrb.gmra.mxu3 %vm208_vm5, %v737_v2  ;;  %1678 = vmatmul.msk.f32.vlgmr.msrb.gmra.mxu1 %vm208_vm5, %v737_v2 }
0x10ee   :  { %1037 = vmatpush.msrb.mxu1 %v2356_v55 }
0x10f0   :  { %1038 = vmatpush.msrb.mxu1 %v2358_v56 }
0x10f2   :  { %1039 = vmatpush.msrb.mxu1 %v2363_v57 }
0x10f4   :  { %1040 = vmatpush.msrb.mxu1 %v2368_v58 }
0x10f5   :  { %965 = vmatmul.f32.vlgmr.msra.gmra.mxu1 %v1921_v33 }
0x10f6   :  { %1113 = vmatpush.msra.mxu1 %v2356_v55 }
0x10f8   :  { %1114 = vmatpush.msra.mxu1 %v2358_v56 }
0x10fa   :  { %1115 = vmatpush.msra.mxu1 %v2363_v57 }
0x10fc   :  { %1116 = vmatpush.msra.mxu1 %v2368_v58 }
0x116a   :  { %v783_v5 = vpop.f32.mrf.mxu1 }
0x1170   :  { %v763_v6 = vpop.f32.mrf.mxu3 }
0x1171   :  { %v787_v8 = vsel %vm58_vm3, %v763_v6, %v783_v5 }
0x1172   :  { %v788_v9 = vadd.f32 %v787_v8, %v786_v7  ;;  %v966_v6 = vpop.f32.mrf.mxu1 }
0x1174   :  { %1758 = vtanh.f32 %v788_v9  ;;  %v789_v11 = vmul.f32 0.5, %v788_v9 }
0x1176   :  { %1760 = vtanh.f32 %v789_v11 }
0x117a   :  { %v1759_v10 = vpop.eup %1758 }
0x117b   :  { %796 = vrot.lane.b32.xlu0 %v1759_v10, %s1922_s4 }
0x117c   :  { %v1761_v12 = vpop.eup %1760 }
0x117d   :  { %v791_v32 = vmul.f32 0.5, %v1761_v12 }
0x117f   :  { %v792_v13 = vadd.f32 0.5, %v791_v32 }
0x1181   :  { %v794_v36 = vmul.f32 %v792_v13, %v728_v31 }
0x1183   :  { %588 = vrot.lane.b32.xlu0 %v2232_v21, %s1922_s4 }
0x11ed   :  { %v797_v34 = vpop.permute.xlu0 %796 }
0x11ee   :  { %v799_v14 = vmul.f32 %v797_v34, %v792_v13 }
0x11f0   :  { %801 = vrot.lane.b32.xlu1 %v799_v14, %s1923_s28 }
0x11f5   :  { %v589_v35 = vpop.permute.xlu0 %588 }
0x11f6   :  { %591 = vst.msk [vmem:[#allocation2 + $0x4] sm:$0xc] %vm286_vm6, %v589_v35 }
0x11f8   :  { %664 = vrot.lane.b32.xlu1 %v658_v48, %s1922_s4  ;;  %v2342_v48 = vld [vmem:[#allocation4 + $0x30] sm:$0xff] }
0x11f9   :  { %941 = vmatpush.msra.mxu3 %v2342_v48 }
0x11fb   :  { %942 = vmatpush.msra.mxu3 %v2344_v50 }
0x11fd   :  { %943 = vmatpush.msra.mxu3 %v2348_v53 }
0x11ff   :  { %944 = vmatpush.msra.mxu3 %v2354_v54 }
0x1200   :  { %283 = vrot.lane.b32.xlu1 %v2156_v4, %s1922_s4  ;;  %945 = vmatmul.f32.vlgmr.msra.gmra.mxu3 %v1921_v33 }
0x1201   :  { %1017 = vmatpush.msrb.mxu3 %v2342_v48 }
0x1203   :  { %1018 = vmatpush.msrb.mxu3 %v2344_v50 }
0x1205   :  { %1019 = vmatpush.msrb.mxu3 %v2348_v53 }
0x1207   :  { %1020 = vmatpush.msrb.mxu3 %v2354_v54 }
0x1208   :  { %512 = vrot.lane.b32.xlu1 %v2216_v3, %s1922_s4 }
0x1209   :  { %1093 = vmatpush.msra.mxu3 %v2342_v48 }
0x120b   :  { %1094 = vmatpush.msra.mxu3 %v2344_v50 }
0x120d   :  { %1095 = vmatpush.msra.mxu3 %v2348_v53 }
0x120f   :  { %1096 = vmatpush.msra.mxu3 %v2354_v54 }
0x1262   :  { %v802_v15 = vpop.permute.xlu1 %801 }
0x1263   :  { %v2274_v16 = vadd.f32 %v802_v15, %v794_v36 }
0x1265   :  { %1762 = vtanh.f32 %v2274_v16 }
0x126a   :  { %v665_v17 = vpop.permute.xlu1 %664 }
0x126b   :  { %v1763_v18 = vpop.eup %1762  ;;  %667 = vst.msk [vmem:[#allocation2 + $0x2] sm:$0xc] %vm286_vm6, %v665_v17 }
0x126c   :  { %807 = vrot.lane.b32.xlu2 %v1763_v18, %s1922_s4 }
0x1272   :  { %v284_v21 = vpop.permute.xlu1 %283 }
0x1273   :  { %287 = vst.msk [vmem:[#allocation2 + $0xc] sm:$0xc] %vm286_vm6, %v284_v21 }
0x1274   :  { %740 = vrot.lane.b32.xlu2 %v734_v1, %s1922_s4 }
0x127a   :  { %v513_v4 = vpop.permute.xlu1 %512 }
0x127b   :  { %515 = vst.msk [vmem:[#allocation2 + $0x6] sm:$0xc] %vm286_vm6, %v513_v4 }
0x127c   :  { %587 = vst.msk [vmem:[#allocation2 + $0x8] sm:$0x3] %vm281_vm4, %v2236_v22  ;;  %360 = vrot.lane.b32.xlu2 %v2176_v26, %s1922_s4  ;;  %v844_v26 = vld [vmem:[%s2608_s5 + $0x70] sm:$0xff]  ;;  %v845_v22 = vld [vmem:[%s2608_s5 + $0x78] sm:$0xff] }
0x127d   :  { %867 = vmatpush.msrb.mxu2 %v844_v26  ;;  %890 = vmatpush.msra.mxu0 %v845_v22 }
0x127f   :  { %868 = vmatpush.msrb.mxu2 %v842_v28 }
0x1281   :  { %869 = vmatpush.msrb.mxu2 %v840_v29 }
0x1283   :  { %870 = vmatpush.msrb.mxu2 %v838_v37 }
0x1285   :  { %871 = vmatpush.msrb.mxu2 %v836_v39 }
0x1287   :  { %872 = vmatpush.msrb.mxu2 %v834_v41 }
0x1289   :  { %873 = vmatpush.msrb.mxu2 %v832_v43 }
0x128b   :  { %874 = vmatpush.msrb.mxu2 %v830_v45 }
0x128d   :  { %1169 = vmatpush.msra.mxu2 %v2342_v48 }
0x128f   :  { %1170 = vmatpush.msra.mxu2 %v2344_v50 }
0x1291   :  { %1171 = vmatpush.msra.mxu2 %v2348_v53 }
0x1293   :  { %1172 = vmatpush.msra.mxu2 %v2354_v54 }
0x12c6   :  { %v808_v3 = vpop.permute.xlu2 %807 }
0x12c7   :  { %v810_v24 = vmul.f32 %v808_v3, %v792_v13 }
0x12c9   :  { %812 = vrot.lane.b32.xlu2 %v810_v24, %s1923_s28  ;;  %816 = vrot.lane.b32.xlu0 %v810_v24, %s1922_s4 }
0x12ce   :  { %v741_v25 = vpop.permute.xlu2 %740 }
0x12cf   :  { %743 = vst.msk [vmem:[#allocation2] sm:$0xc] %vm286_vm6, %v741_v25 }
0x12d1   :  { %436 = vrot.lane.b32.xlu0 %v2196_v52, %s1922_s4  ;;  %v843_v52 = vld [vmem:[%s2608_s5 + $0x68] sm:$0xff] }
0x12d2   :  { %891 = vmatpush.msra.mxu0 %v843_v52 }
0x12d4   :  { %892 = vmatpush.msra.mxu0 %v841_v30 }
0x12d6   :  { %v361_v27 = vpop.permute.xlu2 %360  ;;  %893 = vmatpush.msra.mxu0 %v839_v38 }
0x12d7   :  { %363 = vst.msk [vmem:[#allocation2 + $0xa] sm:$0xc] %vm286_vm6, %v361_v27 }
0x12d8   :  { %739 = vst.msk [vmem:[#allocation2 + $0xc] sm:$0x3] %vm281_vm4, %v737_v2  ;;  %894 = vmatpush.msra.mxu0 %v837_v40  ;;  %v946_v2 = vpop.f32.mrf.mxu3 }
0x12d9   :  { %v970_v8 = vsel %vm58_vm3, %v946_v2, %v966_v6 }
0x12da   :  { %895 = vmatpush.msra.mxu0 %v835_v42 }
0x12dc   :  { %896 = vmatpush.msra.mxu0 %v833_v44 }
0x12de   :  { %897 = vmatpush.msra.mxu0 %v831_v46 }
0x12e0   :  { %1189 = vmatpush.msrb.mxu0 %v2356_v55 }
0x12e2   :  { %1190 = vmatpush.msrb.mxu0 %v2358_v56 }
0x12e4   :  { %1191 = vmatpush.msrb.mxu0 %v2363_v57 }
0x12e6   :  { %1192 = vmatpush.msrb.mxu0 %v2368_v58 }
0x1323   :  { %v813_v47 = vpop.permute.xlu2 %812 }
0x1324   :  { %815 = vst.msk [vmem:[#allocation2 + $0xe] sm:$0x3] %vm281_vm4, %v813_v47 }
0x133b   :  { %v817_v19 = vpop.permute.xlu0 %816 }
0x133c   :  { %819 = vst.msk [vmem:[#allocation2 - $0x2] sm:$0xc] %vm286_vm6, %v817_v19 }
0x1343   :  { %v437_v33 = vpop.permute.xlu0 %436  ;;  %v828_v20 = vld [vmem:[#allocation2] sm:$0xff] }
0x1344   :  { %439 = vst.msk [vmem:[#allocation2 + $0x8] sm:$0xc] %vm286_vm6, %v437_v33  ;;  %1679 = vmatmul.msk.f32.vlgmr.msrb.gmra.mxu2 %vm852_vm7, %v828_v20  ;;  %1681 = vmatmul.msk.f32.vlgmr.msra.gmra.mxu0 %vm852_vm7, %v828_v20 }
0x1345   :  { %663 = vst.msk [vmem:[#allocation2 + $0xa] sm:$0x3] %vm281_vm4, %v2248_v49  ;;  %1321 = vmatpush.msrb.mxu2 %v2342_v48  ;;  %1341 = vmatpush.msra.mxu0 %v2356_v55  ;;  %v846_v49 = vld [vmem:[%s2610_s7] sm:$0x3]  ;;  %s1924_s7 = smov 96  }
0x1346   :  { %v849_v60 = vperm.slane %v846_v49, 1  ;;  %v848_v62 = vperm.slane %v846_v49, 0 }
0x1347   :  { %1322 = vmatpush.msrb.mxu2 %v2344_v50  ;;  %1342 = vmatpush.msra.mxu0 %v2358_v56 }
0x1349   :  { %1323 = vmatpush.msrb.mxu2 %v2348_v53  ;;  %1343 = vmatpush.msra.mxu0 %v2363_v57 }
0x134b   :  { %1324 = vmatpush.msrb.mxu2 %v2354_v54  ;;  %1344 = vmatpush.msra.mxu0 %v2368_v58 }
0x134c   :  { %v829_v59 = vld [vmem:[#allocation2 + $0x8] sm:$0xff] }
0x134d   :  { %1680 = vmatmul.msk.f32.gmra.mxu2 %vm852_vm7, %v829_v59  ;;  %1682 = vmatmul.msk.f32.gmra.mxu0 %vm852_vm7, %v829_v59 }
0x13c1   :  { %v899_v23 = vpop.f32.mrf.mxu0 }
0x13c2   :  { %v900_v61 = vadd.f32 %v899_v23, %v849_v60 }
0x13c4   :  { %914 = vst [vmem:[#allocation3 + $0xc] sm:$0xc0] %v900_v61 }
0x13c5   :  { %916 = vst [vmem:[#allocation3 + $0x12] sm:$0x30] %v900_v61 }
0x13c6   :  { %918 = vst [vmem:[#allocation3 + $0x18] sm:$0xc] %v900_v61 }
0x13c7   :  { %920 = vst [vmem:[#allocation3 + $0x1e] sm:$0x3] %v900_v61  ;;  %v876_v31 = vpop.f32.mrf.mxu2 }
0x13c8   :  { %v877_v63 = vadd.f32 %v876_v31, %v848_v62 }
0x13ca   :  { %905 = vst [vmem:[#allocation3] sm:$0x3] %v877_v63  ;;  %v902_v0 = vpop.f32.mrf.mxu0 }
0x13cb   :  { %907 = vst [vmem:[#allocation3 + $0x2] sm:$0xc] %v877_v63  ;;  %v903_v1 = vadd.f32 %v902_v0, %v849_v60 }
0x13cc   :  { %909 = vst [vmem:[#allocation3 + $0x4] sm:$0x30] %v877_v63 }
0x13cd   :  { %911 = vst [vmem:[#allocation3 + $0x6] sm:$0xc0] %v877_v63 }
0x13ce   :  { %906 = vst [vmem:[#allocation3 - $0x4] sm:$0xc0] %v903_v1 }
0x13cf   :  { %908 = vst [vmem:[#allocation3 + $0x2] sm:$0x30] %v903_v1 }
0x13d0   :  { %910 = vst [vmem:[#allocation3 + $0x8] sm:$0xc] %v903_v1  ;;  %v879_v5 = vpop.f32.mrf.mxu2 }
0x13d1   :  { %912 = vst [vmem:[#allocation3 + $0xe] sm:$0x3] %v903_v1  ;;  %v880_v7 = vadd.f32 %v879_v5, %v848_v62 }
0x13d3   :  { %913 = vst [vmem:[#allocation3 + $0x10] sm:$0x3] %v880_v7 }
0x13d4   :  { %915 = vst [vmem:[#allocation3 + $0x12] sm:$0xc] %v880_v7 }
0x13d5   :  { %917 = vst [vmem:[#allocation3 + $0x14] sm:$0x30] %v880_v7  ;;  %v969_v9 = vld [vmem:[#allocation3] sm:$0xf] }
0x13d6   :  { %919 = vst [vmem:[#allocation3 + $0x16] sm:$0xc0] %v880_v7  ;;  %v971_v10 = vadd.f32 %v970_v8, %v969_v9  ;;  %v1045_v27 = vld [vmem:[#allocation3 + $0x4] sm:$0xf] }
0x13d7   :  { %v1121_v33 = vld [vmem:[#allocation3 + $0x8] sm:$0xf] }
0x13d8   :  { %1764 = vtanh.f32 %v971_v10  ;;  %v972_v12 = vmul.f32 0.5, %v971_v10 }
0x13da   :  { %1766 = vtanh.f32 %v972_v12 }
0x13de   :  { %v1765_v11 = vpop.eup %1764 }
0x13df   :  { %979 = vrot.lane.b32.xlu0 %v1765_v11, %s1922_s4  ;;  %v1197_v11 = vld [vmem:[#allocation3 + $0xc] sm:$0xf] }
0x13e0   :  { %v1767_v32 = vpop.eup %1766 }
0x13e1   :  { %v974_v13 = vmul.f32 0.5, %v1767_v32 }
0x13e3   :  { %v975_v34 = vadd.f32 0.5, %v974_v13 }
0x13e5   :  { %v977_v36 = vmul.f32 0.0, %v975_v34 }
0x1451   :  { %v980_v14 = vpop.permute.xlu0 %979 }
0x1452   :  { %v982_v35 = vmul.f32 %v980_v14, %v975_v34 }
0x1454   :  { %984 = vrot.lane.b32.xlu1 %v982_v35, %s1923_s28 }
0x14c6   :  { %v985_v15 = vpop.permute.xlu1 %984 }
0x14c7   :  { %v987_v17 = vadd.f32 %v985_v15, %v977_v36 }
0x14c9   :  { %1768 = vtanh.f32 %v987_v17 }
0x14cf   :  { %v1769_v18 = vpop.eup %1768 }
0x14d0   :  { %990 = vrot.lane.b32.xlu2 %v1769_v18, %s1922_s4 }
0x152a   :  { %v991_v21 = vpop.permute.xlu2 %990 }
0x152b   :  { %v2416_v4 = vmul.f32 %v991_v21, %v975_v34  ;;  %v1273_v21 = vld [vmem:[#allocation3 + $0x10] sm:$0xf] }
0x152d   :  { %995 = vrot.lane.b32.xlu0 %v2416_v4, %s1923_s28 }
0x159f   :  { %v996_v3 = vpop.permute.xlu0 %995 }
0x15a0   :  { %998 = vst.msk [vmem:[#allocation7] sm:$0x3] %vm281_vm4, %v996_v3  ;;  %1683 = vmatmul.msk.f32.vlgmr.msrb.gmra.mxu3 %vm208_vm5, %v996_v3  ;;  %1684 = vmatmul.msk.f32.vlgmr.msrb.gmra.mxu1 %vm208_vm5, %v996_v3 }
0x15a1   :  { %1245 = vmatpush.msrb.mxu3 %v2342_v48  ;;  %1265 = vmatpush.msrb.mxu1 %v2356_v55 }
0x15a3   :  { %1246 = vmatpush.msrb.mxu3 %v2344_v50  ;;  %1266 = vmatpush.msrb.mxu1 %v2358_v56 }
0x15a5   :  { %1247 = vmatpush.msrb.mxu3 %v2348_v53  ;;  %1267 = vmatpush.msrb.mxu1 %v2363_v57 }
0x15a7   :  { %1248 = vmatpush.msrb.mxu3 %v2354_v54  ;;  %1268 = vmatpush.msrb.mxu1 %v2368_v58 }
0x161d   :  { %v1042_v24 = vpop.f32.mrf.mxu1 }
0x1623   :  { %v1022_v25 = vpop.f32.mrf.mxu3 }
0x1624   :  { %v1046_v26 = vsel %vm58_vm3, %v1022_v25, %v1042_v24 }
0x1625   :  { %v1047_v22 = vadd.f32 %v1046_v26, %v1045_v27 }
0x1627   :  { %1770 = vtanh.f32 %v1047_v22  ;;  %v1048_v52 = vmul.f32 0.5, %v1047_v22 }
0x1629   :  { %1772 = vtanh.f32 %v1048_v52 }
0x162d   :  { %v1771_v28 = vpop.eup %1770 }
0x162e   :  { %1055 = vrot.lane.b32.xlu1 %v1771_v28, %s1922_s4 }
0x162f   :  { %v1773_v29 = vpop.eup %1772 }
0x1630   :  { %v1050_v30 = vmul.f32 0.5, %v1773_v29 }
0x1632   :  { %v1051_v37 = vadd.f32 0.5, %v1050_v30 }
0x1634   :  { %v1053_v40 = vmul.f32 %v1051_v37, %v987_v17 }
0x16a0   :  { %v1056_v38 = vpop.permute.xlu1 %1055 }
0x16a1   :  { %v1058_v39 = vmul.f32 %v1056_v38, %v1051_v37 }
0x16a3   :  { %1060 = vrot.lane.b32.xlu2 %v1058_v39, %s1923_s28 }
0x16fd   :  { %v1061_v41 = vpop.permute.xlu2 %1060 }
0x16fe   :  { %v1063_v42 = vadd.f32 %v1061_v41, %v1053_v40 }
0x1700   :  { %1774 = vtanh.f32 %v1063_v42 }
0x1706   :  { %v1775_v43 = vpop.eup %1774 }
0x1707   :  { %1066 = vrot.lane.b32.xlu0 %v1775_v43, %s1922_s4 }
0x1779   :  { %v1067_v44 = vpop.permute.xlu0 %1066 }
0x177a   :  { %v2436_v45 = vmul.f32 %v1067_v44, %v1051_v37 }
0x177c   :  { %1071 = vrot.lane.b32.xlu1 %v2436_v45, %s1923_s28 }
0x17ee   :  { %v1072_v46 = vpop.permute.xlu1 %1071 }
0x17ef   :  { %1074 = vst.msk [vmem:[#allocation7 + $0x2] sm:$0x3] %vm281_vm4, %v1072_v46  ;;  %1685 = vmatmul.msk.f32.vlgmr.msra.gmra.mxu3 %vm208_vm5, %v1072_v46  ;;  %1686 = vmatmul.msk.f32.vlgmr.msra.gmra.mxu1 %vm208_vm5, %v1072_v46  ;;  %v1349_v46 = vld [vmem:[#allocation3 + $0x14] sm:$0xf] }
0x17f0   :  { %1397 = vmatpush.msra.mxu3 %v2342_v48  ;;  %1417 = vmatpush.msra.mxu1 %v2356_v55 }
0x17f2   :  { %1398 = vmatpush.msra.mxu3 %v2344_v50  ;;  %1418 = vmatpush.msra.mxu1 %v2358_v56 }
0x17f4   :  { %1399 = vmatpush.msra.mxu3 %v2348_v53  ;;  %1419 = vmatpush.msra.mxu1 %v2363_v57 }
0x17f6   :  { %1400 = vmatpush.msra.mxu3 %v2354_v54  ;;  %1420 = vmatpush.msra.mxu1 %v2368_v58 }
0x186c   :  { %v1118_v47 = vpop.f32.mrf.mxu1 }
0x1872   :  { %v1098_v19 = vpop.f32.mrf.mxu3 }
0x1873   :  { %v1122_v20 = vsel %vm58_vm3, %v1098_v19, %v1118_v47 }
0x1874   :  { %v1123_v59 = vadd.f32 %v1122_v20, %v1121_v33 }
0x1876   :  { %1776 = vtanh.f32 %v1123_v59  ;;  %v1124_v60 = vmul.f32 0.5, %v1123_v59 }
0x1878   :  { %1778 = vtanh.f32 %v1124_v60 }
0x187c   :  { %v1777_v49 = vpop.eup %1776 }
0x187d   :  { %1131 = vrot.lane.b32.xlu2 %v1777_v49, %s1922_s4 }
0x187e   :  { %v1779_v23 = vpop.eup %1778 }
0x187f   :  { %v1126_v61 = vmul.f32 0.5, %v1779_v23 }
0x1881   :  { %v1127_v62 = vadd.f32 0.5, %v1126_v61 }
0x1883   :  { %v1129_v0 = vmul.f32 %v1127_v62, %v1063_v42 }
0x18d7   :  { %v1132_v31 = vpop.permute.xlu2 %1131 }
0x18d8   :  { %v1134_v63 = vmul.f32 %v1132_v31, %v1127_v62 }
0x18da   :  { %1136 = vrot.lane.b32.xlu0 %v1134_v63, %s1923_s28 }
0x194c   :  { %v1137_v1 = vpop.permute.xlu0 %1136 }
0x194d   :  { %v1139_v2 = vadd.f32 %v1137_v1, %v1129_v0 }
0x194f   :  { %1780 = vtanh.f32 %v1139_v2 }
0x1955   :  { %v1781_v5 = vpop.eup %1780 }
0x1956   :  { %1142 = vrot.lane.b32.xlu1 %v1781_v5, %s1922_s4 }
0x19c8   :  { %v1143_v6 = vpop.permute.xlu1 %1142 }
0x19c9   :  { %v2456_v7 = vmul.f32 %v1143_v6, %v1127_v62 }
0x19cb   :  { %1147 = vrot.lane.b32.xlu2 %v2456_v7, %s1923_s28 }
0x1a25   :  { %v1148_v8 = vpop.permute.xlu2 %1147 }
0x1a26   :  { %1150 = vst.msk [vmem:[#allocation7 + $0x4] sm:$0x3] %vm281_vm4, %v1148_v8  ;;  %1687 = vmatmul.msk.f32.vlgmr.msra.gmra.mxu2 %vm208_vm5, %v1148_v8  ;;  %1688 = vmatmul.msk.f32.vlgmr.msrb.gmra.mxu0 %vm208_vm5, %v1148_v8 }
0x1a27   :  { %1473 = vmatpush.msra.mxu2 %v2342_v48  ;;  %1493 = vmatpush.msrb.mxu0 %v2356_v55 }
0x1a29   :  { %1474 = vmatpush.msra.mxu2 %v2344_v50  ;;  %1494 = vmatpush.msrb.mxu0 %v2358_v56 }
0x1a2b   :  { %1475 = vmatpush.msra.mxu2 %v2348_v53  ;;  %1495 = vmatpush.msrb.mxu0 %v2363_v57 }
0x1a2d   :  { %1476 = vmatpush.msra.mxu2 %v2354_v54  ;;  %1496 = vmatpush.msrb.mxu0 %v2368_v58 }
0x1aa3   :  { %v1194_v9 = vpop.f32.mrf.mxu0 }
0x1aa9   :  { %v1174_v10 = vpop.f32.mrf.mxu2 }
0x1aaa   :  { %v1198_v48 = vsel %vm58_vm3, %v1174_v10, %v1194_v9  ;;  %v1425_v9 = vld [vmem:[#allocation3 + $0x18] sm:$0xf] }
0x1aab   :  { %v1199_v12 = vadd.f32 %v1198_v48, %v1197_v11 }
0x1aad   :  { %1782 = vtanh.f32 %v1199_v12  ;;  %v1200_v50 = vmul.f32 0.5, %v1199_v12 }
0x1aaf   :  { %1784 = vtanh.f32 %v1200_v50 }
0x1ab3   :  { %v1783_v55 = vpop.eup %1782 }
0x1ab4   :  { %1207 = vrot.lane.b32.xlu0 %v1783_v55, %s1922_s4 }
0x1ab5   :  { %v1785_v53 = vpop.eup %1784 }
0x1ab6   :  { %v1202_v56 = vmul.f32 0.5, %v1785_v53 }
0x1ab8   :  { %v1203_v57 = vadd.f32 0.5, %v1202_v56 }
0x1aba   :  { %v1205_v58 = vmul.f32 %v1203_v57, %v1139_v2 }
0x1b26   :  { %v1208_v32 = vpop.permute.xlu0 %1207 }
0x1b27   :  { %v1210_v54 = vmul.f32 %v1208_v32, %v1203_v57 }
0x1b29   :  { %1212 = vrot.lane.b32.xlu1 %v1210_v54, %s1923_s28 }
0x1b9b   :  { %v1213_v13 = vpop.permute.xlu1 %1212 }
0x1b9c   :  { %v1215_v34 = vadd.f32 %v1213_v13, %v1205_v58 }
0x1b9e   :  { %1786 = vtanh.f32 %v1215_v34 }
0x1ba4   :  { %v1787_v14 = vpop.eup %1786 }
0x1ba5   :  { %1218 = vrot.lane.b32.xlu2 %v1787_v14, %s1922_s4 }
0x1bff   :  { %v1219_v35 = vpop.permute.xlu2 %1218 }
0x1c00   :  { %v2476_v36 = vmul.f32 %v1219_v35, %v1203_v57 }
0x1c02   :  { %1223 = vrot.lane.b32.xlu0 %v2476_v36, %s1923_s28 }
0x1c74   :  { %v1224_v15 = vpop.permute.xlu0 %1223 }
0x1c75   :  { %1226 = vst.msk [vmem:[#allocation7 + $0x6] sm:$0x3] %vm281_vm4, %v1224_v15  ;;  %1689 = vmatmul.msk.f32.vlgmr.msrb.gmra.mxu3 %vm208_vm5, %v1224_v15  ;;  %1690 = vmatmul.msk.f32.vlgmr.msrb.gmra.mxu1 %vm208_vm5, %v1224_v15 }
0x1cf2   :  { %v1270_v17 = vpop.f32.mrf.mxu1 }
0x1cf8   :  { %v1250_v18 = vpop.f32.mrf.mxu3 }
0x1cf9   :  { %v1274_v3 = vsel %vm58_vm3, %v1250_v18, %v1270_v17  ;;  %v1501_v18 = vld [vmem:[#allocation3 + $0x1c] sm:$0xf] }
0x1cfa   :  { %v1275_v24 = vadd.f32 %v1274_v3, %v1273_v21 }
0x1cfc   :  { %1788 = vtanh.f32 %v1275_v24  ;;  %v1276_v27 = vmul.f32 0.5, %v1275_v24 }
0x1cfe   :  { %1790 = vtanh.f32 %v1276_v27 }
0x1d02   :  { %v1789_v25 = vpop.eup %1788 }
0x1d03   :  { %1283 = vrot.lane.b32.xlu1 %v1789_v25, %s1922_s4 }
0x1d04   :  { %v1791_v26 = vpop.eup %1790 }
0x1d05   :  { %v1278_v22 = vmul.f32 0.5, %v1791_v26 }
0x1d07   :  { %v1279_v28 = vadd.f32 0.5, %v1278_v22 }
0x1d09   :  { %v1281_v30 = vmul.f32 %v1279_v28, %v1215_v34 }
0x1d75   :  { %v1284_v52 = vpop.permute.xlu1 %1283 }
0x1d76   :  { %v1286_v29 = vmul.f32 %v1284_v52, %v1279_v28 }
0x1d78   :  { %1288 = vrot.lane.b32.xlu2 %v1286_v29, %s1923_s28 }
0x1dd2   :  { %v1289_v37 = vpop.permute.xlu2 %1288 }
0x1dd3   :  { %v1291_v38 = vadd.f32 %v1289_v37, %v1281_v30 }
0x1dd5   :  { %1792 = vtanh.f32 %v1291_v38 }
0x1ddb   :  { %v1793_v39 = vpop.eup %1792 }
0x1ddc   :  { %1294 = vrot.lane.b32.xlu0 %v1793_v39, %s1922_s4 }
0x1e4e   :  { %v1295_v40 = vpop.permute.xlu0 %1294 }
0x1e4f   :  { %v2488_v41 = vmul.f32 %v1295_v40, %v1279_v28  ;;  %v1546_v40 = vld [vmem:[%s2611_s8 + $0x18] sm:$0xff] }
0x1e50   :  { %1590 = vmatpush.msrb.mxu1 %v1546_v40 }
0x1e51   :  { %1299 = vrot.lane.b32.xlu1 %v2488_v41, %s1923_s28 }
0x1ec3   :  { %v2492_v42 = vpop.permute.xlu1 %1299 }
0x1ec4   :  { %1691 = vmatmul.msk.f32.vlgmr.msrb.gmra.mxu2 %vm208_vm5, %v2492_v42  ;;  %1692 = vmatmul.msk.f32.vlgmr.msra.gmra.mxu0 %vm208_vm5, %v2492_v42 }
0x1f41   :  { %v1346_v43 = vpop.f32.mrf.mxu0 }
0x1f47   :  { %v1326_v44 = vpop.f32.mrf.mxu2 }
0x1f48   :  { %v1350_v47 = vsel %vm58_vm3, %v1326_v44, %v1346_v43  ;;  %v1545_v43 = vld [vmem:[%s2611_s8 + $0x10] sm:$0xff]  ;;  %v1543_v44 = vld [vmem:[%s2611_s8] sm:$0xff] }
0x1f49   :  { %v1351_v19 = vadd.f32 %v1350_v47, %v1349_v46  ;;  %1591 = vmatpush.msrb.mxu1 %v1545_v43 }
0x1f4b   :  { %1794 = vtanh.f32 %v1351_v19  ;;  %v1352_v20 = vmul.f32 0.5, %v1351_v19 }
0x1f4d   :  { %1796 = vtanh.f32 %v1352_v20 }
0x1f51   :  { %v1795_v33 = vpop.eup %1794 }
0x1f52   :  { %1359 = vrot.lane.b32.xlu2 %v1795_v33, %s1922_s4 }
0x1f53   :  { %v1797_v59 = vpop.eup %1796 }
0x1f54   :  { %v1354_v49 = vmul.f32 0.5, %v1797_v59 }
0x1f56   :  { %v1355_v60 = vadd.f32 0.5, %v1354_v49 }
0x1f58   :  { %v1357_v62 = vmul.f32 %v1355_v60, %v1291_v38 }
0x1fac   :  { %v1360_v23 = vpop.permute.xlu2 %1359 }
0x1fad   :  { %v1362_v61 = vmul.f32 %v1360_v23, %v1355_v60 }
0x1faf   :  { %1364 = vrot.lane.b32.xlu0 %v1362_v61, %s1923_s28 }
0x2021   :  { %v1365_v31 = vpop.permute.xlu0 %1364 }
0x2022   :  { %v1367_v63 = vadd.f32 %v1365_v31, %v1357_v62  ;;  %v1715_v31 = vld [vmem:[%s2612_s9] ss:$0 sm:$0xff]  ;;  %s1930_s9 = smov 2  }
0x2024   :  { %1798 = vtanh.f32 %v1367_v63 }
0x202a   :  { %v1799_v0 = vpop.eup %1798 }
0x202b   :  { %1370 = vrot.lane.b32.xlu1 %v1799_v0, %s1922_s4 }
0x209d   :  { %v1371_v1 = vpop.permute.xlu1 %1370 }
0x209e   :  { %v1373_v2 = vmul.f32 %v1371_v1, %v1355_v60 }
0x20a0   :  { %1375 = vrot.lane.b32.xlu2 %v1373_v2, %s1923_s28 }
0x20fa   :  { %v2504_v5 = vpop.permute.xlu2 %1375 }
0x20fb   :  { %1693 = vmatmul.msk.f32.vlgmr.msra.gmra.mxu3 %vm208_vm5, %v2504_v5  ;;  %1694 = vmatmul.msk.f32.vlgmr.msra.gmra.mxu1 %vm208_vm5, %v2504_v5 }
0x2178   :  { %v1422_v6 = vpop.f32.mrf.mxu1 }
0x217e   :  { %v1402_v8 = vpop.f32.mrf.mxu3 }
0x217f   :  { %v1426_v10 = vsel %vm58_vm3, %v1402_v8, %v1422_v6 }
0x2180   :  { %v1427_v11 = vadd.f32 %v1426_v10, %v1425_v9 }
0x2182   :  { %1800 = vtanh.f32 %v1427_v11  ;;  %v1428_v12 = vmul.f32 0.5, %v1427_v11 }
0x2184   :  { %1802 = vtanh.f32 %v1428_v12 }
0x2188   :  { %v1801_v48 = vpop.eup %1800 }
0x2189   :  { %1435 = vrot.lane.b32.xlu0 %v1801_v48, %s1922_s4 }
0x218a   :  { %v1803_v55 = vpop.eup %1802 }
0x218b   :  { %v1430_v50 = vmul.f32 0.5, %v1803_v55 }
0x218d   :  { %v1431_v53 = vadd.f32 0.5, %v1430_v50 }
0x218f   :  { %v1433_v32 = vmul.f32 %v1431_v53, %v1367_v63 }
0x21fb   :  { %v1436_v56 = vpop.permute.xlu0 %1435 }
0x21fc   :  { %v1438_v57 = vmul.f32 %v1436_v56, %v1431_v53 }
0x21fe   :  { %1440 = vrot.lane.b32.xlu1 %v1438_v57, %s1923_s28 }
0x2270   :  { %v1441_v54 = vpop.permute.xlu1 %1440 }
0x2271   :  { %v1443_v58 = vadd.f32 %v1441_v54, %v1433_v32 }
0x2273   :  { %1804 = vtanh.f32 %v1443_v58 }
0x2279   :  { %v1805_v13 = vpop.eup %1804 }
0x227a   :  { %1446 = vrot.lane.b32.xlu2 %v1805_v13, %s1922_s4 }
0x22d4   :  { %v1447_v34 = vpop.permute.xlu2 %1446 }
0x22d5   :  { %v1449_v14 = vmul.f32 %v1447_v34, %v1431_v53 }
0x22d7   :  { %1451 = vrot.lane.b32.xlu0 %v1449_v14, %s1923_s28 }
0x2349   :  { %v2516_v35 = vpop.permute.xlu0 %1451 }
0x234a   :  { %1695 = vmatmul.msk.f32.vlgmr.msra.gmra.mxu2 %vm208_vm5, %v2516_v35  ;;  %1696 = vmatmul.msk.f32.vlgmr.msrb.gmra.mxu0 %vm208_vm5, %v2516_v35 }
0x23c7   :  { %v1498_v15 = vpop.f32.mrf.mxu0 }
0x23cd   :  { %v1478_v17 = vpop.f32.mrf.mxu2 }
0x23ce   :  { %v1502_v21 = vsel %vm58_vm3, %v1478_v17, %v1498_v15 }
0x23cf   :  { %v1503_v3 = vadd.f32 %v1502_v21, %v1501_v18 }
0x23d1   :  { %1806 = vtanh.f32 %v1503_v3  ;;  %v1504_v25 = vmul.f32 0.5, %v1503_v3 }
0x23d3   :  { %1808 = vtanh.f32 %v1504_v25 }
0x23d7   :  { %v1807_v24 = vpop.eup %1806 }
0x23d8   :  { %1511 = vrot.lane.b32.xlu1 %v1807_v24, %s1922_s4 }
0x23d9   :  { %v1809_v27 = vpop.eup %1808 }
0x23da   :  { %v1506_v26 = vmul.f32 0.5, %v1809_v27 }
0x23dc   :  { %v1507_v22 = vadd.f32 0.5, %v1506_v26 }
0x23de   :  { %v1509_v29 = vmul.f32 %v1507_v22, %v1443_v58 }
0x244a   :  { %v1512_v28 = vpop.permute.xlu1 %1511 }
0x244b   :  { %v1514_v52 = vmul.f32 %v1512_v28, %v1507_v22 }
0x244d   :  { %1516 = vrot.lane.b32.xlu2 %v1514_v52, %s1923_s28 }
0x24a7   :  { %v1517_v30 = vpop.permute.xlu2 %1516 }
0x24a8   :  { %v1519_v37 = vadd.f32 %v1517_v30, %v1509_v29 }
0x24aa   :  { %1810 = vtanh.f32 %v1519_v37 }
0x24b0   :  { %v1811_v51 = vpop.eup %1810 }
0x24b1   :  { %1522 = vrot.lane.b32.xlu0 %v1811_v51, %s1922_s4 }
0x24b9   :  { %999 = vrot.lane.b32.xlu0 %v2416_v4, %s1922_s4 }
0x24c1   :  { %1227 = vrot.lane.b32.xlu0 %v2476_v36, %s1922_s4  ;;  %v1544_v36 = vld [vmem:[%s2611_s8 + $0x8] sm:$0xff] }
0x24c2   :  { %1592 = vmatpush.msrb.mxu1 %v1544_v36 }
0x24c4   :  { %1593 = vmatpush.msrb.mxu1 %v1543_v44 }
0x24c9   :  { %1379 = vrot.lane.b32.xlu0 %v1373_v2, %s1922_s4 }
0x24d1   :  { %1536 = vrot.lane.b32.xlu0 %v1519_v37, %s1924_s7 }
0x2523   :  { %v1523_v38 = vpop.permute.xlu0 %1522 }
0x2524   :  { %v1525_v39 = vmul.f32 %v1523_v38, %v1507_v22 }
0x2526   :  { %1527 = vrot.lane.b32.xlu2 %v1525_v39, %s1923_s28  ;;  %v1551_v4 = vrot.slane %v1525_v39, 2 }
0x2528   :  { %1552 = vrot.lane.b32.xlu1 %v1551_v4, %s1923_s28 }
0x252b   :  { %v1000_v46 = vpop.permute.xlu0 %999 }
0x252c   :  { %1002 = vst.msk [vmem:[#allocation7 + $0xc] sm:$0xc] %vm286_vm6, %v1000_v46 }
0x252e   :  { %1151 = vrot.lane.b32.xlu2 %v2456_v7, %s1922_s4  ;;  %v1550_v7 = vld [vmem:[%s2611_s8 + $0x38] sm:$0xff] }
0x252f   :  { %1568 = vmatpush.msrb.mxu3 %v1550_v7 }
0x2530   :  { %1075 = vrot.lane.b32.xlu1 %v2436_v45, %s1922_s4 }
0x2533   :  { %v1228_v47 = vpop.permute.xlu0 %1227 }
0x2534   :  { %1230 = vst.msk [vmem:[#allocation7 + $0x6] sm:$0xc] %vm286_vm6, %v1228_v47 }
0x2535   :  { %1302 = vst.msk [vmem:[#allocation7 + $0x8] sm:$0x3] %vm281_vm4, %v2492_v42  ;;  %v1547_v42 = vld [vmem:[%s2611_s8 + $0x20] sm:$0xff] }
0x2536   :  { %1303 = vrot.lane.b32.xlu2 %v2488_v41, %s1922_s4  ;;  %v1548_v41 = vld [vmem:[%s2611_s8 + $0x28] sm:$0xff] }
0x2538   :  { %821 = vrot.lane.b32.xlu1 %v2274_v16, %s1924_s7  ;;  %v1549_v16 = vld [vmem:[%s2611_s8 + $0x30] sm:$0xff]  ;;  %s1925_s8 = smov [#allocation7]  }
0x2539   :  { %1569 = vmatpush.msrb.mxu3 %v1549_v16  ;;  %s1609_s13 = sshll.u32 %s1925_s8, 4  ;;  %s1610_s13 = int_to_ptr.vmem [resolvable:$true] %s1609_s13 }
0x253b   :  { %v1380_v19 = vpop.permute.xlu0 %1379  ;;  %1570 = vmatpush.msrb.mxu3 %v1548_v41 }
0x253c   :  { %1382 = vst.msk [vmem:[#allocation7 + $0x2] sm:$0xc] %vm286_vm6, %v1380_v19 }
0x253d   :  { %1571 = vmatpush.msrb.mxu3 %v1547_v42 }
0x253e   :  { %1531 = vrot.lane.b32.xlu2 %v1525_v39, %s1922_s4 }
0x2540   :  { %1455 = vrot.lane.b32.xlu1 %v1449_v14, %s1922_s4 }
0x2543   :  { %v1537_v45 = vpop.permute.xlu0 %1536 }
0x2544   :  { %1540 = vst.msk [vmem:[#allocation10 + $0x4] sm:$0x3] %vm281_vm4, %v1537_v45 }
0x2545   :  { %1542 = vst.msk [vmem:[#allocation10 + $0x4] sm:$0xc] %vm826_vm8, %v1537_v45 }
0x2580   :  { %v1528_v33 = vpop.permute.xlu2 %1527 }
0x2581   :  { %1530 = vst.msk [vmem:[#allocation7 + $0xe] sm:$0x3] %vm281_vm4, %v1528_v33  ;;  %1698 = vmatmul.msk.f32.vlgmr.msrb.gmra.mxu1 %vm208_vm5, %v1528_v33 }
0x2588   :  { %v1152_v20 = vpop.permute.xlu2 %1151 }
0x2589   :  { %1154 = vst.msk [vmem:[#allocation7 + $0x8] sm:$0xc] %vm286_vm6, %v1152_v20 }
0x258a   :  { %1378 = vst.msk [vmem:[#allocation7 + $0xa] sm:$0x3] %vm281_vm4, %v2504_v5 }
0x2590   :  { %v1304_v59 = vpop.permute.xlu2 %1303 }
0x2591   :  { %1306 = vst.msk [vmem:[#allocation7 + $0x4] sm:$0xc] %vm286_vm6, %v1304_v59 }
0x2598   :  { %v1532_v49 = vpop.permute.xlu2 %1531 }
0x2599   :  { %1534 = vst.msk [vmem:[#allocation7 - $0x2] sm:$0xc] %vm286_vm6, %v1532_v49 }
0x259a   :  { %v1553_v60 = vpop.permute.xlu1 %1552 }
0x259b   :  { %1697 = vmatmul.msk.f32.vlgmr.msrb.gmra.mxu3 %vm208_vm5, %v1553_v60 }
0x25a2   :  { %v1076_v23 = vpop.permute.xlu1 %1075 }
0x25a3   :  { %1078 = vst.msk [vmem:[#allocation7 + $0xa] sm:$0xc] %vm286_vm6, %v1076_v23 }
0x25a4   :  { %1454 = vst.msk [vmem:[#allocation7 + $0xc] sm:$0x3] %vm281_vm4, %v2516_v35 }
0x25aa   :  { %v822_v61 = vpop.permute.xlu1 %821 }
0x25ab   :  { %824 = vst.msk [vmem:[#allocation10] sm:$0x3] %vm281_vm4, %v822_v61 }
0x25ac   :  { %827 = vst.msk [vmem:[#allocation10] sm:$0xc] %vm826_vm8, %v822_v61 }
0x25b2   :  { %v1456_v62 = vpop.permute.xlu1 %1455 }
0x25b3   :  { %1458 = vst.msk [vmem:[#allocation7] sm:$0xc] %vm286_vm6, %v1456_v62 }
0x25b4   :  { %1617 = dma.vmem_to_hbm [thread:$0]  %s1610_s13, 256, %s1612_s15, [#allocation6], %s1926_s16, %s1926_s16, %s1927_s17  }
0x25fe   :  { %v1595_v63 = vpop.f32.mrf.mxu1 }
0x261e   :  { %v1573_v0 = vpop.f32.mrf.mxu3 }
0x261f   :  { %v1596_v1 = vadd.f32 %v1595_v63, %v1573_v0 }
0x2621   :  { %v1602_v2 = vadd.f32 %v1715_v31, %v1596_v1 }
0x2623   :  { %1812 = vtanh.f32 %v1602_v2 }
0x2629   :  { %v1813_v5 = vpop.eup %1812 }
0x262a   :  { %1604 = vst.msk [vmem:[#allocation8] sm:$0x3] %vm281_vm4, %v1813_v5 }
0x262b   :  { %1628 = dma.vmem_to_hbm [thread:$0]  %s1624_s21, 32, %s1626_s10, [#allocation9]  }
0x262c   :  { %1641 = dma.vmem_to_hbm [thread:$0]  %s1634_s25, 128, %s1636_s23, [#allocation9], %s1923_s28, %s1923_s28, %s1930_s9  }
0x262d   :  { %1912 = dma.done.wait [#allocation6], 256  }
0x262e   :  { %1913 = vsyncadd [#allocation6], 4294967040 }
0x262f   :  { %1914 = dma.done.wait [#allocation9], 160  }
0x2630   :  { %1915 = vsyncadd [#allocation9], 4294967136 }
0x2631   :  { %1654 = vsyncpa [#allocation5], 1 }
0x2632   :  { %1655 = vsyncpa [#allocation6], 1 }
0x2633   :  { %1656 = vsyncpa [#allocation9], 1 }

</bundles_post_ra>
